<compile_context>
chip_gen: v6e
topology: v6e:2x2x1
jax: 0.10.0
libtpu: 0.0.40
codegen_flags: <defaults>
</compile_context>

<pallas_src>
import functools

import numpy as np
import jax
import jax.numpy as jnp
from jax.experimental import pallas as pl
from jax.experimental.pallas import tpu as pltpu

CONV_OUT = 32
KSIZE = 3
NOUT_PAD = 128    # logits lane-padded to one full vreg; sliced back to 10 outside the kernel


# ----------------------------- Pallas kernel --------------------------------------------

def _cnn_kernel(xbd_ref, scat_ref, gwm_ref, bias_ref, w4_ref, fcb_ref, out_ref,
                *, nb, pho, lanes_pad):
    """Fused resize + pad(114) + conv3x3(+bias) + relu + maxpool2x2 + fc for nb images.

    Row layout of the (pho*nb, ...) intermediates: row = k*nb + b (k = pooled-H index,
    b = image within the step); lane = w_pool*CONV_OUT + c (padded to lanes_pad).
    """
    mrows = pho * nb

    # Stage 1: every row-band (3 dy taps x 2 H-pool parities x all nb images) in ONE MXU dot.
    # xbd is the block-diagonal dy-replication of the input tile, so the result comes out
    # already K-concatenated (K = 3*iw) for the fused conv dot below.
    band = jnp.dot(scat_ref[...], xbd_ref[...],
                   preferred_element_type=jnp.float32).astype(jnp.bfloat16)   # (2*mrows, 3*iw)

    # Stage 2: conv3x3 (+ pad-ring/bias constant) and 2x2 max-pool.  gwm N-concats the
    # even-W || odd-W column banks, so each H parity is a single dot; the pool is an
    # elementwise max of the two lane halves and the two parities (accumulators consumed
    # sequentially -> at most two large f32 live values).
    gwm = gwm_ref[...]                                                         # (3*iw, 2*lanes_pad)
    acc = jnp.dot(band[0:mrows, :], gwm,
                  preferred_element_type=jnp.float32) + bias_ref[0]            # even conv rows
    pooled = jnp.maximum(acc[:, 0:lanes_pad], acc[:, lanes_pad:])
    acc = jnp.dot(band[mrows:2 * mrows, :], gwm,
                  preferred_element_type=jnp.float32) + bias_ref[1]            # odd conv rows
    pooled = jnp.maximum(pooled, jnp.maximum(acc[:, 0:lanes_pad], acc[:, lanes_pad:]))

    act = jnp.maximum(pooled, 0.0)                            # ReLU (commutes with the max)
    act = act.reshape(pho, nb, lanes_pad).astype(jnp.bfloat16)   # row = k*nb + b -> (k, b, lane)

    # Stage 3: FC.  One batched matmul over k, then a k-reduction:
    #   logits[b] = sum_k act[k, b, :] @ w4[k]  (fc weight pre-permuted/padded on the host).
    part = jnp.einsum('kbl,klo->kbo', act, w4_ref[...],
                      preferred_element_type=jnp.float32)                      # (pho, nb, NOUT_PAD)
    out_ref[...] = jnp.sum(part, axis=0) + fcb_ref[...]


# ----------------------------- host-side constant construction --------------------------

def _round_up(v, m):
    return ((v + m - 1) // m) * m


def _bilinear_resize_matrix(out_size, in_size):
    """Row-interpolation matrix matching F.interpolate(mode='bilinear', align_corners=False)."""
    scale = in_size / out_size
    o = np.arange(out_size, dtype=np.float64)
    src = np.maximum((o + 0.5) * scale - 0.5, 0.0)           # PyTorch clamps negative coords
    i0 = np.minimum(np.floor(src).astype(np.int64), in_size - 1)
    i1 = np.minimum(i0 + 1, in_size - 1)
    lam = src - i0
    m = np.zeros((out_size, in_size), np.float32)
    rows = np.arange(out_size)
    np.add.at(m, (rows, i0), 1.0 - lam)
    np.add.at(m, (rows, i1), lam)
    return m


def _build_constants(conv_w, conv_b, fc_w, fc_b, ih, iw, oh, ow, ph, pw, nb):
    cph, cpw = oh + 2 * ph, ow + 2 * pw                      # conv input spatial size (28, 28)
    pho, pwo = cph // 2, cpw // 2                            # pooled output size (14, 14)
    co = conv_w.shape[0]
    lanes = pwo * co                                         # 448
    lanes_pad = _round_up(lanes, 128)                        # 512: full-vreg lane blocks
    w = conv_w.reshape(co, KSIZE, KSIZE).astype(np.float32)  # [c, dy, dx]

    # resize matrices embedded into the (F.pad + conv zero-pad) coordinate frame
    rh = _bilinear_resize_matrix(oh, ih)                     # (oh, ih)
    rw = _bilinear_resize_matrix(ow, iw)                     # (ow, iw)
    gh = np.zeros((cph + 2, ih), np.float32)
    gh[1 + ph:1 + ph + oh, :] = rh
    gwt = np.zeros((iw, cpw + 2), np.float32)
    gwt[:, 1 + pw:1 + pw + ow] = rw.T
    cpad = np.zeros((cph + 2, cpw + 2), np.float32)          # 114 F.pad ring, 0 conv ring/center
    cpad[1:1 + cph, 1:1 + cpw] = 114.0
    cpad[1 + ph:1 + ph + oh, 1 + pw:1 + pw + ow] = 0.0

    # banded conv matrices: even (w=2j) / odd (w=2j+1) output columns, lane = j*co + c
    me = np.zeros((KSIZE, cpw + 2, lanes), np.float32)
    mo = np.zeros((KSIZE, cpw + 2, lanes), np.float32)
    for dy in range(KSIZE):
        for dx in range(KSIZE):
            for j in range(pwo):
                me[dy, 2 * j + dx, j * co:(j + 1) * co] = w[:, dy, dx]
                mo[dy, 2 * j + 1 + dx, j * co:(j + 1) * co] = w[:, dy, dx]

    # fold the column-resize in; K-concat the dy taps; N-concat (evenW || oddW):
    #   gwm[dy*iw + u, wp*lanes_pad + j*co + c]
    gwme = np.einsum('uv,dvl->dul', gwt, me)                 # (KSIZE, iw, lanes)
    gwmo = np.einsum('uv,dvl->dul', gwt, mo)
    gwm = np.zeros((KSIZE * iw, 2 * lanes_pad), np.float32)
    for dy in range(KSIZE):
        gwm[dy * iw:(dy + 1) * iw, :lanes] = gwme[dy]
        gwm[dy * iw:(dy + 1) * iw, lanes_pad:lanes_pad + lanes] = gwmo[dy]

    # conv response of the constant padding ring (+ conv bias), per conv output row h,
    # laid out to match the accumulator (evenW lanes || oddW lanes)
    bias_e = np.zeros((cph, lanes), np.float32)
    bias_o = np.zeros((cph, lanes), np.float32)
    for dy in range(KSIZE):
        bias_e += cpad[dy:dy + cph, :] @ me[dy]
        bias_o += cpad[dy:dy + cph, :] @ mo[dy]
    cb = np.tile(conv_b.astype(np.float32), pwo)[None, :]
    bias_full = np.zeros((cph, 2 * lanes_pad), np.float32)
    bias_full[:, :lanes] = bias_e + cb
    bias_full[:, lanes_pad:lanes_pad + lanes] = bias_o + cb
    # split by conv-row parity and repeat across the nb images of a step (row = k*nb + b)
    biases = np.stack([np.repeat(bias_full[0::2], nb, axis=0),
                       np.repeat(bias_full[1::2], nb, axis=0)], 0)   # (2, pho*nb, 2*lanes_pad)

    # fused band selector: row = parity*(pho*nb) + k*nb + b, col = dy*(nb*ih) + b*ih + r,
    # value gh[2k + parity + dy, r]  (folds row-resize, H-pool parity, and the dy K-concat)
    scat = np.zeros((2 * pho * nb, KSIZE * nb * ih), np.float32)
    for p in range(2):
        for dy in range(KSIZE):
            for k in range(pho):
                for b in range(nb):
                    scat[p * pho * nb + k * nb + b,
                         dy * nb * ih + b * ih:dy * nb * ih + (b + 1) * ih] = gh[2 * k + p + dy]

    # FC weight permuted to the (k, lane=j*co+c, o) layout; lane / output dims zero-padded
    nout = fc_w.shape[0]
    f3 = fc_w.astype(np.float32).reshape(nout, co, pho, pwo)         # [o, c, k, j]
    w4 = np.zeros((pho, lanes_pad, NOUT_PAD), np.float32)
    w4[:, :lanes, :nout] = np.transpose(f3, (2, 3, 1, 0)).reshape(pho, lanes, nout)
    fcb = np.zeros((1, NOUT_PAD), np.float32)
    fcb[0, :nout] = fc_b.astype(np.float32)

    return scat, gwm, biases, w4, fcb, pho, lanes, lanes_pad


# ----------------------------- forward ---------------------------------------------------

def make_simple_cnn_forward(params, size, pad, x_shape):
    """Build constants / upload them / compile ONCE for a fixed (params, size, pad, x_shape)."""
    conv_w, conv_b, fc_w, fc_b = (np.asarray(p) for p in params)
    n, cin, ih, iw = map(int, x_shape)
    assert cin == 1
    # TODO(synk): torch treats `size`/`pad` as runtime tensors; they determine output shapes,
    # so here they must be static Python ints (same restriction torch.onnx export hits).
    oh, ow = int(size[0, 0]), int(size[0, 1])
    ph, pw = int(pad[0, 0]), int(pad[0, 1])
    cph, cpw = oh + 2 * ph, ow + 2 * pw
    assert cph == 28 and cpw == 28, "fc layer expects a 28x28 conv input (32*14*14 features)"
    assert fc_w.shape[1] == conv_w.shape[0] * (cph // 2) * (cpw // 2)

    # images per grid step: 16 for big batches (per review); 8 for small ones so grid_n >= 2
    # is still reachable (v7x has 2 TensorCores and shards the "parallel" batch-tile axis).
    nb = 8 if n <= 16 else 16
    n_pad = ((n + nb - 1) // nb) * nb
    grid_n = n_pad // nb
    nout = fc_w.shape[0]

    scat, gwm, biases, w4, fcb, pho, lanes, lanes_pad = _build_constants(
        conv_w, conv_b, fc_w, fc_b, ih, iw, oh, ow, ph, pw, nb)

    # device-resident constants, uploaded once; bf16 MXU operands (f32 accumulation in-kernel)
    scat_d = jnp.asarray(scat, jnp.bfloat16)
    gwm_d = jnp.asarray(gwm, jnp.bfloat16)
    bias_d = jnp.asarray(biases, jnp.bfloat16)
    w4_d = jnp.asarray(w4, jnp.bfloat16)
    fcb_d = jnp.asarray(fcb, jnp.float32)

    kern = functools.partial(_cnn_kernel, nb=nb, pho=pho, lanes_pad=lanes_pad)
    call = pl.pallas_call(
        kern,
        out_shape=jax.ShapeDtypeStruct((n_pad, NOUT_PAD), jnp.float32),
        grid_spec=pltpu.PrefetchScalarGridSpec(
            num_scalar_prefetch=0,
            grid=(grid_n,),
            in_specs=[
                pl.BlockSpec((KSIZE * nb * ih, KSIZE * iw), lambda g: (g, 0)),
                pl.BlockSpec(scat.shape, lambda g: (0, 0)),
                pl.BlockSpec(gwm.shape, lambda g: (0, 0)),
                pl.BlockSpec(biases.shape, lambda g: (0, 0, 0)),
                pl.BlockSpec(w4.shape, lambda g: (0, 0, 0)),
                pl.BlockSpec(fcb.shape, lambda g: (0, 0)),
            ],
            out_specs=pl.BlockSpec((nb, NOUT_PAD), lambda g: (g, 0)),
        ),
        compiler_params=pltpu.CompilerParams(
            dimension_semantics=("parallel",),        # batch tiles are independent
            vmem_limit_bytes=32 * 1024 * 1024,        # footprint < 10 MiB: safe on v5e/v6e/v7x
        ),
    )

    @jax.jit
    def forward(x):
        xf = jnp.asarray(x, jnp.float32).reshape(n, ih, iw)
        if n_pad != n:
            xf = jnp.concatenate([xf, jnp.zeros((n_pad - n, ih, iw), jnp.float32)], axis=0)
        x3 = xf.astype(jnp.bfloat16).reshape(grid_n, nb * ih, iw)      # per-step image stack
        z = jnp.zeros_like(x3)
        # Block-diagonal dy-replication (layout plumbing only, ~72 KiB/step): row block dy
        # carries the images at lane block dy, so the in-kernel band dot emits all three conv
        # row taps already K-concatenated for the fused K=3*iw conv matmul.
        xbd = jnp.concatenate([
            jnp.concatenate([x3, z, z], axis=2),
            jnp.concatenate([z, x3, z], axis=2),
            jnp.concatenate([z, z, x3], axis=2)], axis=1)              # (grid_n, 3*nb*ih, 3*iw)
        xbd = xbd.reshape(grid_n * KSIZE * nb * ih, KSIZE * iw)
        out = call(xbd, scat_d, gwm_d, bias_d, w4_d, fcb_d)
        return out[:n, :nout]

    return forward


def simple_cnn_forward(x, size, pad, params):
    """One-shot convenience wrapper (rebuilds constants; prefer make_simple_cnn_forward)."""
    return make_simple_cnn_forward(params, size, pad, x.shape)(x)


# ----------------------------- demo ------------------------------------------------------

if __name__ == "__main__":
    key = jax.random.PRNGKey(0)
    kx, kcw, kcb, kfw, kfb = jax.random.split(key, 5)

    x = jax.random.normal(kx, (2, 1, 16, 16), jnp.float32)        # NCHW, C_in = 1
    size = np.array([[24, 24]], dtype=np.int32)                    # resize target (static)
    pad = np.array([[2, 2]], dtype=np.int32)                       # F.pad amounts: 24 + 2*2 = 28

    # deterministic synthetic parameters matching the torch module's shapes
    conv_w = 0.1 * jax.random.normal(kcw, (CONV_OUT, 1, KSIZE, KSIZE), jnp.float32)
    conv_b = 0.1 * jax.random.normal(kcb, (CONV_OUT,), jnp.float32)
    fc_w = 0.01 * jax.random.normal(kfw, (10, CONV_OUT * 14 * 14), jnp.float32)
    fc_b = 0.01 * jax.random.normal(kfb, (10,), jnp.float32)

    fwd = make_simple_cnn_forward((conv_w, conv_b, fc_w, fc_b), size, pad, x.shape)
    out = jax.block_until_ready(fwd(x))
    assert out.shape == (2, 10) and out.dtype == jnp.float32
    print("KERNEL_OK")
</pallas_src>

<mosaic_0001>
module attributes {stable_mosaic.version = 11 : i64} {
  func.func @_cnn_kernel(%arg0: i32, %arg1: memref<384x48xbf16, #tpu.memory_space<vmem>>, %arg2: memref<224x384xbf16, #tpu.memory_space<vmem>>, %arg3: memref<48x1024xbf16, #tpu.memory_space<vmem>>, %arg4: memref<2x112x1024xbf16, #tpu.memory_space<vmem>>, %arg5: memref<14x512x128xbf16, #tpu.memory_space<vmem>>, %arg6: memref<1x128xf32, #tpu.memory_space<vmem>>, %arg7: memref<8x128xf32, #tpu.memory_space<vmem>>) attributes {dimension_semantics = [#tpu.dimension_semantics<parallel>], iteration_bounds = array<i64: 1>, scalar_prefetch = 0 : i64, scratch_operands = 0 : i64, tpu.core_type = #tpu.core_type<tc>, window_params = [{transform_indices = @transform_0, window_bounds = array<i64: 384, 48>}, {pipeline_mode = #tpu.pipeline_mode<synchronous>, transform_indices = @transform_1, window_bounds = array<i64: 224, 384>}, {pipeline_mode = #tpu.pipeline_mode<synchronous>, transform_indices = @transform_2, window_bounds = array<i64: 48, 1024>}, {pipeline_mode = #tpu.pipeline_mode<synchronous>, transform_indices = @transform_3, window_bounds = array<i64: 2, 112, 1024>}, {pipeline_mode = #tpu.pipeline_mode<synchronous>, transform_indices = @transform_4, window_bounds = array<i64: 14, 512, 128>}, {pipeline_mode = #tpu.pipeline_mode<synchronous>, transform_indices = @transform_5, window_bounds = array<i64: 1, 128>}, {transform_indices = @transform_6, window_bounds = array<i64: 8, 128>}]} {
    %c0 = arith.constant 0 : index
    %c0_0 = arith.constant 0 : index
    %0 = vector.load %arg2[%c0, %c0_0] : memref<224x384xbf16, #tpu.memory_space<vmem>>, vector<224x384xbf16>
    %c0_1 = arith.constant 0 : index
    %c0_2 = arith.constant 0 : index
    %1 = vector.load %arg1[%c0_1, %c0_2] : memref<384x48xbf16, #tpu.memory_space<vmem>>, vector<384x48xbf16>
    %cst = arith.constant dense<0.000000e+00> : vector<224x48xf32>
    %2 = tpu.matmul %0, %1, %cst {dimension_numbers = #tpu.dot_dimension_numbers<[1], [0], [0], [1], [0, 0, 1, 1], [], []>} : vector<224x384xbf16>, vector<384x48xbf16>, vector<224x48xf32> -> vector<224x48xf32>
    %3 = arith.truncf %2 : vector<224x48xf32> to vector<224x48xbf16>
    %c0_3 = arith.constant 0 : index
    %c0_4 = arith.constant 0 : index
    %4 = vector.load %arg3[%c0_3, %c0_4] : memref<48x1024xbf16, #tpu.memory_space<vmem>>, vector<48x1024xbf16>
    %5 = vector.extract_strided_slice %3 {offsets = [0, 0], sizes = [112, 48], strides = [1, 1]} : vector<224x48xbf16> to vector<112x48xbf16>
    %cst_5 = arith.constant dense<0.000000e+00> : vector<112x1024xf32>
    %6 = tpu.matmul %5, %4, %cst_5 {dimension_numbers = #tpu.dot_dimension_numbers<[1], [0], [0], [1], [0, 0, 1, 1], [], []>} : vector<112x48xbf16>, vector<48x1024xbf16>, vector<112x1024xf32> -> vector<112x1024xf32>
    %c0_6 = arith.constant 0 : index
    %c0_7 = arith.constant 0 : index
    %c0_8 = arith.constant 0 : index
    %7 = vector.load %arg4[%c0_6, %c0_7, %c0_8] : memref<2x112x1024xbf16, #tpu.memory_space<vmem>>, vector<1x112x1024xbf16>
    %8 = vector.shape_cast %7 : vector<1x112x1024xbf16> to vector<112x1024xbf16>
    %9 = arith.extf %8 : vector<112x1024xbf16> to vector<112x1024xf32>
    %10 = arith.addf %6, %9 : vector<112x1024xf32>
    %11 = vector.extract_strided_slice %10 {offsets = [0, 0], sizes = [112, 512], strides = [1, 1]} : vector<112x1024xf32> to vector<112x512xf32>
    %12 = vector.extract_strided_slice %10 {offsets = [0, 512], sizes = [112, 512], strides = [1, 1]} : vector<112x1024xf32> to vector<112x512xf32>
    %13 = arith.maximumf %11, %12 : vector<112x512xf32>
    %14 = vector.extract_strided_slice %3 {offsets = [112, 0], sizes = [112, 48], strides = [1, 1]} : vector<224x48xbf16> to vector<112x48xbf16>
    %cst_9 = arith.constant dense<0.000000e+00> : vector<112x1024xf32>
    %15 = tpu.matmul %14, %4, %cst_9 {dimension_numbers = #tpu.dot_dimension_numbers<[1], [0], [0], [1], [0, 0, 1, 1], [], []>} : vector<112x48xbf16>, vector<48x1024xbf16>, vector<112x1024xf32> -> vector<112x1024xf32>
    %c1 = arith.constant 1 : index
    %c0_10 = arith.constant 0 : index
    %c0_11 = arith.constant 0 : index
    %16 = vector.load %arg4[%c1, %c0_10, %c0_11] : memref<2x112x1024xbf16, #tpu.memory_space<vmem>>, vector<1x112x1024xbf16>
    %17 = vector.shape_cast %16 : vector<1x112x1024xbf16> to vector<112x1024xbf16>
    %18 = arith.extf %17 : vector<112x1024xbf16> to vector<112x1024xf32>
    %19 = arith.addf %15, %18 : vector<112x1024xf32>
    %20 = vector.extract_strided_slice %19 {offsets = [0, 0], sizes = [112, 512], strides = [1, 1]} : vector<112x1024xf32> to vector<112x512xf32>
    %21 = vector.extract_strided_slice %19 {offsets = [0, 512], sizes = [112, 512], strides = [1, 1]} : vector<112x1024xf32> to vector<112x512xf32>
    %22 = arith.maximumf %20, %21 : vector<112x512xf32>
    %23 = arith.maximumf %13, %22 : vector<112x512xf32>
    %cst_12 = arith.constant 0.000000e+00 : f32
    %24 = vector.broadcast %cst_12 : f32 to vector<112x512xf32>
    %25 = arith.maximumf %23, %24 : vector<112x512xf32>
    %26 = vector.shape_cast %25 : vector<112x512xf32> to vector<14x8x512xf32>
    %27 = arith.truncf %26 : vector<14x8x512xf32> to vector<14x8x512xbf16>
    %c0_13 = arith.constant 0 : index
    %c0_14 = arith.constant 0 : index
    %c0_15 = arith.constant 0 : index
    %28 = vector.load %arg5[%c0_13, %c0_14, %c0_15] : memref<14x512x128xbf16, #tpu.memory_space<vmem>>, vector<14x512x128xbf16>
    "tpu.trace_start"() <{level = 10 : i32, message = "kbl,klo->kbo"}> : () -> ()
    %cst_16 = arith.constant dense<0.000000e+00> : vector<14x8x128xf32>
    %29 = tpu.matmul %27, %28, %cst_16 {dimension_numbers = #tpu.dot_dimension_numbers<[2], [1], [1], [2], [0, 0, 0, 1, 1, 2], [0], [0]>} : vector<14x8x512xbf16>, vector<14x512x128xbf16>, vector<14x8x128xf32> -> vector<14x8x128xf32>
    "tpu.trace_stop"() : () -> ()
    %cst_17 = arith.constant dense<0.000000e+00> : vector<8x128xf32>
    %30 = vector.multi_reduction <add>, %29, %cst_17 [0] : vector<14x8x128xf32> to vector<8x128xf32>
    %c0_18 = arith.constant 0 : index
    %c0_19 = arith.constant 0 : index
    %31 = vector.load %arg6[%c0_18, %c0_19] : memref<1x128xf32, #tpu.memory_space<vmem>>, vector<1x128xf32>
    %32 = vector.broadcast %31 : vector<1x128xf32> to vector<8x128xf32>
    %33 = arith.addf %30, %32 : vector<8x128xf32>
    %c0_20 = arith.constant 0 : index
    %c0_21 = arith.constant 0 : index
    %34 = vector.load %arg7[%c0_20, %c0_21] : memref<8x128xf32, #tpu.memory_space<vmem>>, vector<8x128xf32>
    tpu.vector_store %arg7[%c0_20, %c0_21], %33 {strides = array<i32>} : memref<8x128xf32, #tpu.memory_space<vmem>>, vector<8x128xf32>,
    return
  }
  func.func @transform_0(%arg0: i32) -> (i32, i32) {
    %c0_i32 = arith.constant 0 : i32
    %c0_i32_0 = arith.constant 0 : i32
    return %arg0, %c0_i32 : i32, i32
  }
  func.func @transform_1(%arg0: i32) -> (i32, i32) {
    %c0_i32 = arith.constant 0 : i32
    %c0_i32_0 = arith.constant 0 : i32
    %c0_i32_1 = arith.constant 0 : i32
    return %c0_i32, %c0_i32_0 : i32, i32
  }
  func.func @transform_2(%arg0: i32) -> (i32, i32) {
    %c0_i32 = arith.constant 0 : i32
    %c0_i32_0 = arith.constant 0 : i32
    %c0_i32_1 = arith.constant 0 : i32
    return %c0_i32, %c0_i32_0 : i32, i32
  }
  func.func @transform_3(%arg0: i32) -> (i32, i32, i32) {
    %c0_i32 = arith.constant 0 : i32
    %c0_i32_0 = arith.constant 0 : i32
    %c0_i32_1 = arith.constant 0 : i32
    %c0_i32_2 = arith.constant 0 : i32
    return %c0_i32, %c0_i32_0, %c0_i32_1 : i32, i32, i32
  }
  func.func @transform_4(%arg0: i32) -> (i32, i32, i32) {
    %c0_i32 = arith.constant 0 : i32
    %c0_i32_0 = arith.constant 0 : i32
    %c0_i32_1 = arith.constant 0 : i32
    %c0_i32_2 = arith.constant 0 : i32
    return %c0_i32, %c0_i32_0, %c0_i32_1 : i32, i32, i32
  }
  func.func @transform_5(%arg0: i32) -> (i32, i32) {
    %c0_i32 = arith.constant 0 : i32
    %c0_i32_0 = arith.constant 0 : i32
    %c0_i32_1 = arith.constant 0 : i32
    return %c0_i32, %c0_i32_0 : i32, i32
  }
  func.func @transform_6(%arg0: i32) -> (i32, i32) {
    %c0_i32 = arith.constant 0 : i32
    %c0_i32_0 = arith.constant 0 : i32
    return %arg0, %c0_i32 : i32, i32
  }
}

</mosaic_0001>

<bundles_post_ra>
// kernel: forward.1
= control target key start
LH: loop header
LB: loop body
LE: loop exit
PB: predicated region body
PF: predicated region fallthrough
CT: control target
= control target key end

     0   :  { %11 = vsyncpa [#allocation3], 0  ;;  %s11197_s0 = inlined_call_operand.vmem [shape: bf16[384,48], index: 0, kind: input, shape index: {}]   ;;  %s11198_s1 = inlined_call_operand.hbm [shape: bf16[224,384], index: 1, kind: input, shape index: {}]   ;;  %s11199_s2 = inlined_call_operand.hbm [shape: bf16[48,1024], index: 2, kind: input, shape index: {}]   ;;  %s11200_s3 = inlined_call_operand.hbm [shape: bf16[2,112,1024], index: 3, kind: input, shape index: {}]   ;;  %s11201_s4 = inlined_call_operand.hbm [shape: bf16[14,512,128], index: 4, kind: input, shape index: {}]   ;;  %s11202_s5 = inlined_call_operand.hbm [shape: f32[1,128], index: 5, kind: input, shape index: {}]   ;;  %s11203_s6 = inlined_call_operand.vmem [shape: f32[8,128], index: 6, kind: output, shape index: {}]  }
   0x1   :  { %12 = vsyncpa [#allocation5], 0 }
   0x2   :  { %13 = vsyncpa [#allocation8], 0  ;;  %s9284_s21 = smov [#allocation4]  }
   0x3   :  { %s33_s22 = sshll.u32 %s9284_s21, 4  ;;  %s34_s22 = int_to_ptr.vmem [resolvable:$true] %s33_s22 }
   0x4   :  { %s9186_s23 = scalar_lea.vmem %s34_s22, 3072  ;;  %p9191_p1 = scmp.lt.s32.totalorder %s34_s22, %s34_s22 }
   0x5   :  { %p9187_p0 = scmp.ne.s32.totalorder %s34_s22, %s9186_s23  ;;  %p9192_p2 = scmp.lt.s32.totalorder %s9186_s23, %s9186_s23 }
   0x7   :  { %p9193_p3 = por %p9192_p2, %p9191_p1 }
   0x9   :  { %p9194_p4 = pnand %p9193_p3, %p9187_p0 }
   0xb   :  { %9197 = shalt.err (!%p9194_p4)
}
   0xc   :  { %s9285_s24 = smov 512   ;;  %s9286_s25 = smov 32  }
   0xd   :  { %39 = dma.hbm_to_vmem [thread:$0]  %s11199_s2, 3072, %s34_s22, [#allocation5], %s9285_s24, %s9285_s24, %s9286_s25  }
   0xe   :  { %s9287_s28 = smov [#allocation7]  }
   0xf   :  { %s57_s29 = sshll.u32 %s9287_s28, 4  ;;  %s58_s29 = int_to_ptr.vmem [resolvable:$true] %s57_s29 }
  0x10   :  { %s9206_s30 = scalar_lea.vmem %s58_s29, 57344  ;;  %p9211_p6 = scmp.lt.s32.totalorder %s58_s29, %s58_s29 }
  0x11   :  { %p9207_p5 = scmp.ne.s32.totalorder %s58_s29, %s9206_s30  ;;  %p9212_p7 = scmp.lt.s32.totalorder %s9206_s30, %s9206_s30 }
  0x13   :  { %p9213_p8 = por %p9212_p7, %p9211_p6 }
  0x15   :  { %p9214_p9 = pnand %p9213_p8, %p9207_p5 }
  0x17   :  { %9217 = shalt.err (!%p9214_p9)
}
  0x18   :  { %s9288_s7 = smov 64   ;;  %s9289_s8 = smov 4  }
  0x19   :  { %63 = dma.hbm_to_vmem [thread:$0]  %s11201_s4, 57344, %s58_s29, [#allocation8], %s9288_s7, %s9288_s7, %s9289_s8  }
  0x1a   :  { %s9290_s11 = smov [#allocation2]  }
  0x1b   :  { %s21_s12 = sshll.u32 %s9290_s11, 4  ;;  %s22_s12 = int_to_ptr.vmem [resolvable:$true] %s21_s12 }
  0x1c   :  { %s9226_s2 = scalar_lea.vmem %s22_s12, 5376  ;;  %p9231_p11 = scmp.lt.s32.totalorder %s22_s12, %s22_s12 }
  0x1d   :  { %p9227_p10 = scmp.ne.s32.totalorder %s22_s12, %s9226_s2  ;;  %p9232_p12 = scmp.lt.s32.totalorder %s9226_s2, %s9226_s2 }
  0x1f   :  { %p9233_p13 = por %p9232_p12, %p9231_p11 }
  0x21   :  { %p9234_p0 = pnand %p9233_p13, %p9227_p10 }
  0x23   :  { %9237 = shalt.err (!%p9234_p0)
}
  0x24   :  { %s9291_s13 = smov 192   ;;  %s9292_s14 = smov 12  }
  0x25   :  { %27 = dma.hbm_to_vmem [thread:$0]  %s11198_s1, 5376, %s22_s12, [#allocation3], %s9291_s13, %s9291_s13, %s9292_s14  }
  0x26   :  { %s9293_s17 = smov [#allocation6]   ;;  %s9294_s4 = smov [#allocation9]  }
  0x27   :  { %s45_s18 = sshll.u32 %s9293_s17, 4  ;;  %s70_s19 = sshll.u32 %s9294_s4, 4  ;;  %s46_s18 = int_to_ptr.vmem [resolvable:$true] %s45_s18  ;;  %s71_s19 = int_to_ptr.vmem [resolvable:$true] %s70_s19 }
  0x28   :  { %s9246_s20 = scalar_lea.vmem %s46_s18, 14336  ;;  %p9251_p2 = scmp.lt.s32.totalorder %s46_s18, %s46_s18 }
  0x29   :  { %p9247_p1 = scmp.ne.s32.totalorder %s46_s18, %s9246_s20  ;;  %p9252_p3 = scmp.lt.s32.totalorder %s9246_s20, %s9246_s20 }
  0x2b   :  { %p9253_p4 = por %p9252_p3, %p9251_p2 }
  0x2d   :  { %p9254_p5 = pnand %p9253_p4, %p9247_p1 }
  0x2f   :  { %9257 = shalt.err (!%p9254_p5)
}
  0x30   :  { %51 = dma.hbm_to_vmem [thread:$0]  %s11200_s3, 14336, %s46_s18, [#allocation5], %s9285_s24, %s9285_s24, %s9286_s25  }
  0x31   :  { %s9266_s1 = scalar_lea.vmem %s71_s19, 16  ;;  %s9270_s23 = scalar_lea.vmem %s71_s19, 32 }
  0x32   :  { %p9267_p6 = scmp.ne.s32.totalorder %s71_s19, %s9266_s1  ;;  %p9271_p7 = scmp.lt.s32.totalorder %s71_s19, %s71_s19 }
  0x33   :  { %p9272_p8 = scmp.lt.s32.totalorder %s9270_s23, %s9266_s1 }
  0x35   :  { %p9273_p9 = por %p9272_p8, %p9271_p7 }
  0x37   :  { %p9274_p10 = pnand %p9273_p9, %p9267_p6 }
  0x39   :  { %9277 = shalt.err (!%p9274_p10)
}
  0x3a   :  { %73 = dma.hbm_to_vmem [thread:$0]  %s11202_s5, 16, %s71_s19, [#allocation8]  }
  0x3b   :  { %9278 = dma.done.wait [#allocation3], 5376  }
  0x3c   :  { %9279 = vsyncadd [#allocation3], 4294961920 }
  0x3d   :  { %9280 = dma.done.wait [#allocation5], 17408  }
  0x3e   :  { %9281 = vsyncadd [#allocation5], 4294949888 }
  0x3f   :  { %9282 = dma.done.wait [#allocation8], 57360  }
  0x40   :  { %9283 = vsyncadd [#allocation8], 4294909936  ;;  %v8616_v0 = vld [vmem:[%s11197_s0 + $0x78] sm:$0xff]   ;;  %v8619_v3 = vld [vmem:[%s11197_s0 + $0x70] sm:$0xff]   ;;  %vm1178_vm0 = vcmask 392192  }
  0x41   :  { %v8617_v1 = vld [vmem:[%s11197_s0 + $0xb8] sm:$0xff]   ;;  %7822 = vmatprep.subr.bf16.mxu0 %v8616_v0  ;;  %v8620_v4 = vld [vmem:[%s11197_s0 + $0xb0] sm:$0xff]   ;;  %v8622_v6 = vld [vmem:[%s11197_s0 + $0x68] sm:$0xff]  }
  0x42   :  { %v8618_v2 = vld [vmem:[%s11197_s0 + $0x38] sm:$0xff]   ;;  %8560 = vmatprep.subr.bf16.mxu1 %v8617_v1  ;;  %v8621_v5 = vld [vmem:[%s11197_s0 + $0x30] sm:$0xff]   ;;  %v8623_v7 = vld [vmem:[%s11197_s0 + $0xa8] sm:$0xff]  }
  0x43   :  { %7823 = vmatpush3.bf16.msra.mxu0 %v8618_v2  ;;  %8561 = vmatpush3.bf16.msra.mxu1 %v8617_v1  ;;  %v8624_v8 = vld [vmem:[%s11197_s0 + $0x28] sm:$0xff]   ;;  %v8625_v9 = vld [vmem:[%s11197_s0 + $0x60] sm:$0xff]   ;;  %v8628_v12 = vld [vmem:[%s11197_s0 + $0x58] sm:$0xff]  }
  0x44   :  { %7824 = vmatprep.subr.bf16.mxu0 %v8619_v3  ;;  %8562 = vmatprep.subr.bf16.mxu1 %v8620_v4  ;;  %v8626_v10 = vld [vmem:[%s11197_s0 + $0xa0] sm:$0xff]   ;;  %v8629_v13 = vld [vmem:[%s11197_s0 + $0x98] sm:$0xff]   ;;  %v8631_v15 = vld [vmem:[%s11197_s0 + $0x50] sm:$0xff]  }
  0x45   :  { %v8627_v11 = vld [vmem:[%s11197_s0 + $0x20] sm:$0xff]   ;;  %v8630_v14 = vld [vmem:[%s11197_s0 + $0x18] sm:$0xff]   ;;  %v8632_v16 = vld [vmem:[%s11197_s0 + $0x90] sm:$0xff]  }
  0x46   :  { %v8633_v17 = vld [vmem:[%s11197_s0 + $0x10] sm:$0xff]   ;;  %v8634_v18 = vld [vmem:[%s11197_s0 + $0x48] sm:$0xff]   ;;  %v8637_v21 = vld [vmem:[%s11197_s0 + $0x40] sm:$0xff]  }
  0x47   :  { %7825 = vmatpush3.bf16.msra.mxu0 %v8621_v5  ;;  %8563 = vmatpush3.bf16.msra.mxu1 %v8620_v4  ;;  %v8635_v19 = vld [vmem:[%s11197_s0 + $0x88] sm:$0xff]   ;;  %v8638_v22 = vld [vmem:[%s11197_s0 + $0x80] sm:$0xff]   ;;  %v8649_v31 = vld [vmem:[#allocation2 + $0x50] ss:$12 sps:$4 sm:$0xff]  }
  0x48   :  { %7826 = vmatprep.subr.bf16.mxu0 %v8622_v6  ;;  %8564 = vmatprep.subr.bf16.mxu1 %v8623_v7  ;;  %v8636_v20 = vld [vmem:[%s11197_s0 + $0x8] sm:$0xff]   ;;  %v8642_v23 = vld [vmem:[#allocation2 + $0x4] ss:$12 sps:$4 sm:$0xff]   ;;  %v8650_v32 = vld [vmem:[#allocation2 + $0x34] ss:$12 sps:$4 sm:$0xff]  }
  0x49   :  { %v8643_v24 = vld [vmem:[#allocation2 + $0x8] ss:$12 sps:$4 sm:$0xff]   ;;  %594 = vmatprep.mubr.bf16.mxu0 %v8642_v23  ;;  %v8639_v25 = vld [vmem:[%s11197_s0] sm:$0xff]   ;;  %v8652_v34 = vld [vmem:[#allocation2 + $0x30] ss:$12 sps:$4 sm:$0xff]  }
  0x4a   :  { %v8640_v26 = vld [vmem:[#allocation2] ss:$12 sps:$4 sm:$0xff]   ;;  %8576 = vmatprep.mubr.bf16.mxu1 %v8643_v24  ;;  %v8645_v28 = vld [vmem:[#allocation2 + $0x1c] ss:$12 sps:$4 sm:$0xff]   ;;  %v8648_v29 = vld [vmem:[#allocation2 + $0x38] ss:$12 sps:$4 sm:$0xff]  }
  0x4b   :  { %7827 = vmatpush3.bf16.msra.mxu0 %v8624_v8  ;;  %8565 = vmatpush3.bf16.msra.mxu1 %v8623_v7  ;;  %v8644_v27 = vld [vmem:[#allocation2 + $0x20] ss:$12 sps:$4 sm:$0xff]   ;;  %v8647_v30 = vld [vmem:[#allocation2 + $0x18] ss:$12 sps:$4 sm:$0xff]   ;;  %v8656_v33 = vld [vmem:[#allocation2 + $0x68] ss:$12 sps:$4 sm:$0xff]  }
  0x4c   :  { %7828 = vmatprep.subr.bf16.mxu0 %v8625_v9  ;;  %8566 = vmatprep.subr.bf16.mxu1 %v8626_v10  ;;  %v8657_v35 = vld [vmem:[#allocation2 + $0x80] ss:$12 sps:$4 sm:$0xff]   ;;  %v8664_v37 = vld [vmem:[#allocation2 + $0x98] ss:$12 sps:$4 sm:$0xff]   ;;  %v8655_v42 = vld [vmem:[#allocation2 + $0x48] ss:$12 sps:$4 sm:$0xff]  }
  0x4d   :  { %v8653_v36 = vld [vmem:[#allocation2 + $0x4c] ss:$12 sps:$4 sm:$0xff]   ;;  %v8658_v43 = vld [vmem:[#allocation2 + $0x64] ss:$12 sps:$4 sm:$0xff]   ;;  %v8678_v45 = vld [vmem:[#allocation2 + $0xc8] ss:$12 sps:$4 sm:$0xff]  }
  0x4e   :  { %v883_v38 = vld [vmem:[#allocation4 + $0x88] sm:$0xff]  ;;  %v882_v46 = vld [vmem:[#allocation4 + $0x80] sm:$0xff]  ;;  %v8660_v59 = vld [vmem:[#allocation2 + $0x60] ss:$12 sps:$4 sm:$0xff]  }
  0x4f   :  { %7829 = vmatpush3.bf16.msra.mxu0 %v8627_v11  ;;  %8567 = vmatpush3.bf16.msra.mxu1 %v8626_v10  ;;  %v887_v39 = vld [vmem:[#allocation4 + $0xa8] sm:$0xff]  ;;  %v886_v47 = vld [vmem:[#allocation4 + $0xa0] sm:$0xff]  ;;  %v8679_v60 = vld [vmem:[#allocation2 + $0xe0] ss:$12 sps:$4 sm:$0xff]  }
  0x50   :  { %7830 = vmatprep.subr.bf16.mxu0 %v8628_v12  ;;  %8568 = vmatprep.subr.bf16.mxu1 %v8629_v13  ;;  %v9424_v40 = vcombine.low %v883_v38, %v887_v39  ;;  %v9426_v41 = vcombine.high %v883_v38, %v887_v39  ;;  %v8665_v44 = vld [vmem:[#allocation2 + $0xb0] ss:$12 sps:$4 sm:$0xff]   ;;  %v9430_v48 = vcombine.low %v882_v46, %v886_v47  ;;  %v8686_v62 = vld [vmem:[#allocation2 + $0xf8] ss:$12 sps:$4 sm:$0xff]   ;;  %v8666_v4 = vld [vmem:[#allocation2 + $0x94] ss:$12 sps:$4 sm:$0xff]  }
  0x51   :  { %v9432_v49 = vcombine.high %v882_v46, %v886_v47  ;;  %v875_v50 = vld [vmem:[#allocation4 + $0x48] sm:$0xff]  ;;  %v874_v52 = vld [vmem:[#allocation4 + $0x40] sm:$0xff]  ;;  %v8695_v7 = vld [vmem:[#allocation2 + $0x140] ss:$12 sps:$4 sm:$0xff]  }
  0x52   :  { %v879_v51 = vld [vmem:[#allocation4 + $0x68] sm:$0xff]  ;;  %v878_v55 = vld [vmem:[#allocation4 + $0x60] sm:$0xff]  ;;  %v8674_v11 = vld [vmem:[#allocation2 + $0xc0] ss:$12 sps:$4 sm:$0xff]  }
  0x53   :  { %7831 = vmatpush3.bf16.msra.mxu0 %v8630_v14  ;;  %8569 = vmatpush3.bf16.msra.mxu1 %v8629_v13  ;;  %v9434_v53 = vcombine.low %v875_v50, %v879_v51  ;;  %v9436_v54 = vcombine.high %v875_v50, %v879_v51  ;;  %v9438_v56 = vcombine.high %v874_v52, %v878_v55  ;;  %v866_v57 = vld [vmem:[#allocation4] sm:$0xff]  ;;  %v8661_v61 = vld [vmem:[#allocation2 + $0x7c] ss:$12 sps:$4 sm:$0xff]   ;;  %v8663_v2 = vld [vmem:[#allocation2 + $0x78] ss:$12 sps:$4 sm:$0xff]  }
  0x54   :  { %7832 = vmatprep.subr.bf16.mxu0 %v8631_v15  ;;  %8570 = vmatprep.subr.bf16.mxu1 %v8632_v16  ;;  %v870_v58 = vld [vmem:[#allocation4 + $0x20] sm:$0xff]  ;;  %v9444_v63 = vcombine.low %v874_v52, %v878_v55  ;;  %v8669_v8 = vld [vmem:[#allocation2 + $0xac] ss:$12 sps:$4 sm:$0xff]   ;;  %v8675_v12 = vld [vmem:[#allocation2 + $0xdc] ss:$12 sps:$4 sm:$0xff]  }
  0x55   :  { %v9447_v0 = vcombine.high %v866_v57, %v870_v58  ;;  %v9450_v1 = vcombine.low %v866_v57, %v870_v58  ;;  %v8687_v3 = vld [vmem:[#allocation2 + $0x110] ss:$12 sps:$4 sm:$0xff]   ;;  %v8694_v5 = vld [vmem:[#allocation2 + $0x128] ss:$12 sps:$4 sm:$0xff]   ;;  %v8677_v13 = vld [vmem:[#allocation2 + $0xd8] ss:$12 sps:$4 sm:$0xff]  }
  0x56   :  { %v8668_v6 = vld [vmem:[#allocation2 + $0x90] ss:$12 sps:$4 sm:$0xff]   ;;  %v8671_v9 = vld [vmem:[#allocation2 + $0xa8] ss:$12 sps:$4 sm:$0xff]   ;;  %v888_v23 = vld [vmem:[#allocation4 + $0xb0] sm:$0xff] }
  0x57   :  { %7833 = vmatpush3.bf16.msra.mxu0 %v8633_v17  ;;  %8571 = vmatpush3.bf16.msra.mxu1 %v8632_v16  ;;  %v8672_v10 = vld [vmem:[#allocation2 + $0xc4] ss:$12 sps:$4 sm:$0xff]   ;;  %v8680_v14 = vld [vmem:[#allocation2 + $0xf4] ss:$12 sps:$4 sm:$0xff]   ;;  %v867_v15 = vld [vmem:[#allocation4 + $0x8] sm:$0xff] }
  0x58   :  { %7834 = vmatprep.subr.bf16.mxu0 %v8634_v18  ;;  %8572 = vmatprep.subr.bf16.mxu1 %v8635_v19  ;;  %v871_v16 = vld [vmem:[#allocation4 + $0x28] sm:$0xff]  ;;  %v880_v46 = vld [vmem:[#allocation4 + $0x70] sm:$0xff]  ;;  %v877_v52 = vld [vmem:[#allocation4 + $0x58] sm:$0xff] }
  0x59   :  { %v9454_v17 = vcombine.high %v867_v15, %v871_v16  ;;  %v9456_v18 = vcombine.low %v867_v15, %v871_v16  ;;  %v881_v55 = vld [vmem:[#allocation4 + $0x78] sm:$0xff] }
  0x5a   :  { %v9491_v15 = vcombine.low %v877_v52, %v881_v55 }
  0x5b   :  { %7835 = vmatpush3.bf16.msra.mxu0 %v8636_v20  ;;  %8573 = vmatpush3.bf16.msra.mxu1 %v8635_v19  ;;  %v8682_v19 = vld [vmem:[#allocation2 + $0xf0] ss:$12 sps:$4 sm:$0xff]   ;;  %v8683_v20 = vld [vmem:[#allocation2 + $0x10c] ss:$12 sps:$4 sm:$0xff]  }
  0x5c   :  { %7836 = vmatprep.subr.bf16.mxu0 %v8637_v21  ;;  %8574 = vmatprep.subr.bf16.mxu1 %v8638_v22  ;;  %v9295_v21 = vmov 0  }
  0x5f   :  { %7837 = vmatpush3.bf16.msra.mxu0 %v8639_v25  ;;  %8575 = vmatpush3.bf16.msra.mxu1 %v8638_v22  ;;  %v884_v22 = vld [vmem:[#allocation4 + $0x90] sm:$0xff] }
  0x60   :  { %1313 = vmatprep.subr.bf16.mxu0 %v9426_v41  ;;  %1210 = vmatprep.subr.bf16.mxu1 %v9432_v49  ;;  %v9461_v24 = vcombine.low %v884_v22, %v888_v23  ;;  %v9463_v25 = vcombine.high %v884_v22, %v888_v23 }
  0x62   :  { %595 = vmatmul.mubr.bf16.vlgmr.msra.gmra.mxu0 %v8640_v26  ;;  %8577 = vmatmul.mubr.bf16.vlgmr.msra.gmra.mxu1 %v8644_v27  ;;  %v8685_v26 = vld [vmem:[#allocation2 + $0x108] ss:$12 sps:$4 sm:$0xff]   ;;  %v8688_v27 = vld [vmem:[#allocation2 + $0x124] ss:$12 sps:$4 sm:$0xff]  }
  0x63   :  { %602 = vmatprep.mubr.bf16.mxu0 %v8645_v28  ;;  %8580 = vmatprep.mubr.bf16.mxu1 %v8648_v29  ;;  %v8690_v28 = vld [vmem:[#allocation2 + $0x120] ss:$12 sps:$4 sm:$0xff]   ;;  %v8691_v29 = vld [vmem:[#allocation2 + $0x13c] ss:$12 sps:$4 sm:$0xff]  }
  0x64   :  { %1314 = vmatpush1.bf16.msra.mxu0 %v9424_v40  ;;  %1211 = vmatpush1.bf16.msra.mxu1 %v9430_v48 }
  0x65   :  { %1315 = vmatprep.subr.bf16.mxu0 %v9436_v54  ;;  %1212 = vmatprep.subr.bf16.mxu1 %v9438_v56 }
  0x68   :  { %1316 = vmatpush1.bf16.msra.mxu0 %v9434_v53  ;;  %1213 = vmatpush1.bf16.msra.mxu1 %v9444_v63 }
  0x69   :  { %1214 = vmatprep.subr.bf16.mxu1 %v9447_v0  ;;  %1317 = vmatprep.subr.bf16.mxu0 %v9454_v17 }
  0x6a   :  { %603 = vmatmul.mubr.bf16.gmra.mxu0 %v8647_v30  ;;  %8581 = vmatmul.mubr.bf16.gmra.mxu1 %v8649_v31  ;;  %v8693_v30 = vld [vmem:[#allocation2 + $0x138] ss:$12 sps:$4 sm:$0xff]   ;;  %v885_v31 = vld [vmem:[#allocation4 + $0x98] sm:$0xff] }
  0x6b   :  { %610 = vmatprep.mubr.bf16.mxu0 %v8650_v32  ;;  %8584 = vmatprep.mubr.bf16.mxu1 %v8656_v33  ;;  %v889_v32 = vld [vmem:[#allocation4 + $0xb8] sm:$0xff] }
  0x6c   :  { %1215 = vmatpush1.bf16.msra.mxu1 %v9450_v1  ;;  %1318 = vmatpush1.bf16.msra.mxu0 %v9456_v18  ;;  %v9467_v33 = vcombine.low %v885_v31, %v889_v32 }
  0x6d   :  { %1416 = vmatprep.subr.bf16.mxu1 %v9463_v25 }
  0x72   :  { %611 = vmatmul.mubr.bf16.gmra.mxu0 %v8652_v34  ;;  %8585 = vmatmul.mubr.bf16.gmra.mxu1 %v8657_v35  ;;  %v9469_v34 = vcombine.high %v885_v31, %v889_v32 }
  0x73   :  { %618 = vmatprep.mubr.bf16.mxu0 %v8653_v36  ;;  %8588 = vmatprep.mubr.bf16.mxu1 %v8664_v37 }
  0x74   :  { %1519 = vmatprep.subr.bf16.mxu0 %v9469_v34 }
  0x7a   :  { %619 = vmatmul.mubr.bf16.gmra.mxu0 %v8655_v42  ;;  %8589 = vmatmul.mubr.bf16.gmra.mxu1 %v8665_v44 }
  0x7b   :  { %626 = vmatprep.mubr.bf16.mxu0 %v8658_v43  ;;  %8592 = vmatprep.mubr.bf16.mxu1 %v8678_v45  ;;  %v876_v45 = vld [vmem:[#allocation4 + $0x50] sm:$0xff] }
  0x82   :  { %627 = vmatmul.mubr.bf16.gmra.mxu0 %v8660_v59  ;;  %8593 = vmatmul.mubr.bf16.gmra.mxu1 %v8679_v60  ;;  %v868_v60 = vld [vmem:[#allocation4 + $0x10] sm:$0xff] }
  0x83   :  { %634 = vmatprep.mubr.bf16.mxu0 %v8661_v61  ;;  %8596 = vmatprep.mubr.bf16.mxu1 %v8686_v62  ;;  %v872_v61 = vld [vmem:[#allocation4 + $0x30] sm:$0xff] }
  0x84   :  { %v9497_v23 = vcombine.low %v868_v60, %v872_v61 }
  0x8a   :  { %635 = vmatmul.mubr.bf16.gmra.mxu0 %v8663_v2  ;;  %8597 = vmatmul.mubr.bf16.gmra.mxu1 %v8687_v3  ;;  %v9474_v2 = vcombine.high %v876_v45, %v880_v46 }
  0x8b   :  { %642 = vmatprep.mubr.bf16.mxu0 %v8666_v4  ;;  %8600 = vmatprep.mubr.bf16.mxu1 %v8694_v5 }
  0x92   :  { %643 = vmatmul.mubr.bf16.gmra.mxu0 %v8668_v6  ;;  %8601 = vmatmul.mubr.bf16.gmra.mxu1 %v8695_v7  ;;  %v9480_v6 = vcombine.high %v877_v52, %v881_v55 }
  0x93   :  { %650 = vmatprep.mubr.bf16.mxu0 %v8669_v8  ;;  %1232 = vmatprep.mubr.bf16.mxu1 %v9295_v21  ;;  %v9484_v8 = vcombine.low %v876_v45, %v880_v46 }
  0x9a   :  { %651 = vmatmul.mubr.bf16.gmra.mxu0 %v8671_v9  ;;  %v869_v9 = vld [vmem:[#allocation4 + $0x18] sm:$0xff] }
  0x9b   :  { %658 = vmatprep.mubr.bf16.mxu0 %v8672_v10  ;;  %v873_v10 = vld [vmem:[#allocation4 + $0x38] sm:$0xff] }
  0xa2   :  { %659 = vmatmul.mubr.bf16.gmra.mxu0 %v8674_v11 }
  0xa3   :  { %666 = vmatprep.mubr.bf16.mxu0 %v8675_v12  ;;  %v9488_v12 = vcombine.high %v868_v60, %v872_v61 }
  0xaa   :  { %667 = vmatmul.mubr.bf16.gmra.mxu0 %v8677_v13 }
  0xab   :  { %674 = vmatprep.mubr.bf16.mxu0 %v8680_v14 }
  0xb2   :  { %675 = vmatmul.mubr.bf16.gmra.mxu0 %v8682_v19 }
  0xb3   :  { %682 = vmatprep.mubr.bf16.mxu0 %v8683_v20 }
  0xba   :  { %683 = vmatmul.mubr.bf16.gmra.mxu0 %v8685_v26  ;;  %v9500_v26 = vcombine.high %v869_v9, %v873_v10 }
  0xbb   :  { %690 = vmatprep.mubr.bf16.mxu0 %v8688_v27 }
  0xc2   :  { %691 = vmatmul.mubr.bf16.gmra.mxu0 %v8690_v28 }
  0xc3   :  { %698 = vmatprep.mubr.bf16.mxu0 %v8691_v29  ;;  %v9503_v29 = vcombine.low %v869_v9, %v873_v10 }
  0xca   :  { %699 = vmatmul.mubr.bf16.gmra.mxu0 %v8693_v30 }
  0xcb   :  { %1335 = vmatprep.mubr.bf16.mxu0 %v9295_v21 }
 0x122   :  { %v7838_v35 = vpop.f32.mrf.mxu0  ;;  %v8578_v36 = vpop.f32.mrf.mxu1 }
 0x124   :  { %v7839_v37 = vpop.f32.mrf.mxu0  ;;  %v741_v38 = vpop.f32.mrf.mxu1 }
 0x125   :  { %v7840_v43 = vadd.f32 %v7839_v37, %v7838_v35 }
 0x126   :  { %v7841_v39 = vpop.f32.mrf.mxu0  ;;  %v8579_v42 = vpop.f32.mrf.mxu1 }
 0x127   :  { %v742_v57 = vadd.f32 %v7840_v43, %v741_v38 }
 0x128   :  { %v7842_v44 = vpop.f32.mrf.mxu0  ;;  %v744_v50 = vpop.f32.mrf.mxu1 }
 0x129   :  { %v7843_v47 = vadd.f32 %v7842_v44, %v7841_v39 }
 0x12a   :  { %v7844_v51 = vpop.f32.mrf.mxu0  ;;  %v8582_v4 = vpop.f32.mrf.mxu1 }
 0x12b   :  { %v745_v58 = vadd.f32 %v7843_v47, %v744_v50 }
 0x12c   :  { %v7845_v59 = vpop.f32.mrf.mxu0  ;;  %v757_v13 = vpop.f32.mrf.mxu1 }
 0x12d   :  { %v9472_v62 = vpack.c.bf16 %v745_v58, %v742_v57  ;;  %v7846_v5 = vadd.f32 %v7845_v59, %v7844_v51 }
 0x12e   :  { %v7847_v3 = vpop.f32.mrf.mxu0  ;;  %v8583_v27 = vpop.f32.mrf.mxu1 }
 0x12f   :  { %7317 = vmatmul.mubr.msk.bf16.vlgmr.msra.gmra.mxu1 %vm1178_vm0, %v9472_v62  ;;  %7324 = vmatmul.mubr.msk.bf16.vlgmr.msra.gmra.mxu0 %vm1178_vm0, %v9472_v62  ;;  %v750_v16 = vadd.f32 %v8578_v36, %v7846_v5 }
 0x130   :  { %1417 = vmatpush1.bf16.msra.mxu1 %v9461_v24  ;;  %v7848_v7 = vpop.f32.mrf.mxu0  ;;  %1242 = vmatprep.mubr.bf16.mxu1 %v9295_v21  ;;  %v760_v35 = vpop.f32.mrf.mxu1 }
 0x131   :  { %v7849_v11 = vadd.f32 %v7848_v7, %v7847_v3  ;;  %1345 = vmatprep.mubr.bf16.mxu0 %v9295_v21  ;;  %1418 = vmatprep.subr.bf16.mxu1 %v9474_v2 }
 0x132   :  { %v7850_v14 = vpop.f32.mrf.mxu0  ;;  %1520 = vmatpush1.bf16.msra.mxu0 %v9467_v33  ;;  %v8586_v44 = vpop.f32.mrf.mxu1 }
 0x133   :  { %v753_v19 = vadd.f32 %v8579_v42, %v7849_v11  ;;  %1521 = vmatprep.subr.bf16.mxu0 %v9480_v6 }
 0x134   :  { %v7851_v20 = vpop.f32.mrf.mxu0  ;;  %1419 = vmatpush1.bf16.msra.mxu1 %v9484_v8  ;;  %v773_v47 = vpop.f32.mrf.mxu1 }
 0x135   :  { %v9495_v22 = vpack.c.bf16 %v753_v19, %v750_v16  ;;  %1420 = vmatprep.subr.bf16.mxu1 %v9488_v12  ;;  %v7852_v30 = vadd.f32 %v7851_v20, %v7850_v14 }
 0x136   :  { %v7853_v28 = vpop.f32.mrf.mxu0  ;;  %1522 = vmatpush1.bf16.msra.mxu0 %v9491_v15  ;;  %v8587_v57 = vpop.f32.mrf.mxu1 }
 0x137   :  { %7318 = vmatmul.mubr.msk.bf16.gmra.mxu1 %vm1178_vm0, %v9495_v22  ;;  %7325 = vmatmul.mubr.msk.bf16.gmra.mxu0 %vm1178_vm0, %v9495_v22  ;;  %v758_v37 = vadd.f32 %v7852_v30, %v757_v13 }
 0x138   :  { %v7854_v31 = vpop.f32.mrf.mxu0  ;;  %1252 = vmatprep.mubr.bf16.mxu1 %v9295_v21  ;;  %1355 = vmatprep.mubr.bf16.mxu0 %v9295_v21  ;;  %v776_v3 = vpop.f32.mrf.mxu1 }
 0x139   :  { %v7855_v32 = vadd.f32 %v7854_v31, %v7853_v28  ;;  %1421 = vmatpush1.bf16.msra.mxu1 %v9497_v23  ;;  %1523 = vmatprep.subr.bf16.mxu0 %v9500_v26 }
 0x13a   :  { %v7856_v36 = vpop.f32.mrf.mxu0  ;;  %1524 = vmatpush1.bf16.msra.mxu0 %v9503_v29  ;;  %1868 = vmatprep.subr.bf16.mxu1 %v9432_v49  ;;  %v8590_v13 = vpop.f32.mrf.mxu1 }
 0x13b   :  { %v761_v38 = vadd.f32 %v7855_v32, %v760_v35  ;;  %1971 = vmatprep.subr.bf16.mxu0 %v9426_v41 }
 0x13c   :  { %v7857_v39 = vpop.f32.mrf.mxu0  ;;  %v789_v20 = vpop.f32.mrf.mxu1 }
 0x13d   :  { %v9516_v42 = vpack.c.bf16 %v761_v38, %v758_v37  ;;  %v7858_v45 = vadd.f32 %v7857_v39, %v7856_v36 }
 0x13e   :  { %v7859_v43 = vpop.f32.mrf.mxu0  ;;  %v8591_v35 = vpop.f32.mrf.mxu1 }
 0x13f   :  { %7319 = vmatmul.mubr.msk.bf16.gmra.mxu1 %vm1178_vm0, %v9516_v42  ;;  %7326 = vmatmul.mubr.msk.bf16.gmra.mxu0 %vm1178_vm0, %v9516_v42  ;;  %v766_v50 = vadd.f32 %v8582_v4, %v7858_v45 }
 0x140   :  { %v7860_v46 = vpop.f32.mrf.mxu0  ;;  %1262 = vmatprep.mubr.bf16.mxu1 %v9295_v21  ;;  %1365 = vmatprep.mubr.bf16.mxu0 %v9295_v21 }
 0x141   :  { %v7861_v49 = vadd.f32 %v7860_v46, %v7859_v43  ;;  %v792_v43 = vpop.f32.mrf.mxu1 }
 0x142   :  { %v7862_v41 = vpop.f32.mrf.mxu0 }
 0x143   :  { %v769_v51 = vadd.f32 %v8583_v27, %v7861_v49 }
 0x144   :  { %v7863_v52 = vpop.f32.mrf.mxu0 }
 0x145   :  { %v9524_v55 = vpack.c.bf16 %v769_v51, %v766_v50  ;;  %v7864_v59 = vadd.f32 %v7863_v52, %v7862_v41 }
 0x146   :  { %v7865_v58 = vpop.f32.mrf.mxu0 }
 0x147   :  { %7320 = vmatmul.mubr.msk.bf16.gmra.mxu1 %vm1178_vm0, %v9524_v55  ;;  %7327 = vmatmul.mubr.msk.bf16.gmra.mxu0 %vm1178_vm0, %v9524_v55  ;;  %v774_v5 = vadd.f32 %v7864_v59, %v773_v47 }
 0x148   :  { %v7866_v60 = vpop.f32.mrf.mxu0  ;;  %1272 = vmatprep.mubr.bf16.mxu1 %v9295_v21  ;;  %1375 = vmatprep.mubr.bf16.mxu0 %v9295_v21 }
 0x149   :  { %v7867_v61 = vadd.f32 %v7866_v60, %v7865_v58 }
 0x14a   :  { %v7868_v4 = vpop.f32.mrf.mxu0 }
 0x14b   :  { %v777_v7 = vadd.f32 %v7867_v61, %v776_v3 }
 0x14c   :  { %v7869_v9 = vpop.f32.mrf.mxu0 }
 0x14d   :  { %v9532_v10 = vpack.c.bf16 %v777_v7, %v774_v5  ;;  %v7870_v14 = vadd.f32 %v7869_v9, %v7868_v4 }
 0x14e   :  { %v7871_v11 = vpop.f32.mrf.mxu0 }
 0x14f   :  { %7321 = vmatmul.mubr.msk.bf16.gmra.mxu1 %vm1178_vm0, %v9532_v10  ;;  %7328 = vmatmul.mubr.msk.bf16.gmra.mxu0 %vm1178_vm0, %v9532_v10  ;;  %v782_v28 = vadd.f32 %v8586_v44, %v7870_v14 }
 0x150   :  { %v7872_v16 = vpop.f32.mrf.mxu0  ;;  %1282 = vmatprep.mubr.bf16.mxu1 %v9295_v21  ;;  %1385 = vmatprep.mubr.bf16.mxu0 %v9295_v21 }
 0x151   :  { %v7873_v19 = vadd.f32 %v7872_v16, %v7871_v11 }
 0x152   :  { %v7874_v27 = vpop.f32.mrf.mxu0 }
 0x153   :  { %v785_v30 = vadd.f32 %v8587_v57, %v7873_v19 }
 0x154   :  { %v7875_v31 = vpop.f32.mrf.mxu0 }
 0x155   :  { %v9540_v32 = vpack.c.bf16 %v785_v30, %v782_v28  ;;  %v7876_v37 = vadd.f32 %v7875_v31, %v7874_v27 }
 0x156   :  { %v7877_v36 = vpop.f32.mrf.mxu0 }
 0x157   :  { %7322 = vmatmul.mubr.msk.bf16.gmra.mxu1 %vm1178_vm0, %v9540_v32  ;;  %7329 = vmatmul.mubr.msk.bf16.gmra.mxu0 %vm1178_vm0, %v9540_v32  ;;  %v790_v45 = vadd.f32 %v7876_v37, %v789_v20 }
 0x158   :  { %v7878_v38 = vpop.f32.mrf.mxu0  ;;  %1292 = vmatprep.mubr.bf16.mxu1 %v9295_v21  ;;  %1395 = vmatprep.mubr.bf16.mxu0 %v9295_v21 }
 0x159   :  { %v7879_v39 = vadd.f32 %v7878_v38, %v7877_v36 }
 0x15a   :  { %v7880_v44 = vpop.f32.mrf.mxu0 }
 0x15b   :  { %v793_v46 = vadd.f32 %v7879_v39, %v792_v43 }
 0x15c   :  { %v7881_v49 = vpop.f32.mrf.mxu0 }
 0x15d   :  { %v9548_v47 = vpack.c.bf16 %v793_v46, %v790_v45  ;;  %v7882_v50 = vadd.f32 %v7881_v49, %v7880_v44 }
 0x15e   :  { %v7883_v41 = vpop.f32.mrf.mxu0 }
 0x15f   :  { %7323 = vmatmul.mubr.msk.bf16.gmra.mxu1 %vm1178_vm0, %v9548_v47  ;;  %7330 = vmatmul.mubr.msk.bf16.gmra.mxu0 %vm1178_vm0, %v9548_v47  ;;  %v798_v57 = vadd.f32 %v8590_v13, %v7882_v50 }
 0x160   :  { %v7884_v51 = vpop.f32.mrf.mxu0  ;;  %1438 = vmatprep.mubr.bf16.mxu1 %v9295_v21  ;;  %1541 = vmatprep.mubr.bf16.mxu0 %v9295_v21 }
 0x161   :  { %v7885_v52 = vadd.f32 %v7884_v51, %v7883_v41 }
 0x162   :  { %v7886_v60 = vpop.f32.mrf.mxu0 }
 0x163   :  { %v801_v58 = vadd.f32 %v8591_v35, %v7885_v52 }
 0x164   :  { %v7887_v61 = vpop.f32.mrf.mxu0 }
 0x165   :  { %v9556_v59 = vpack.c.bf16 %v801_v58, %v798_v57 }
 0x166   :  { %v7889_v3 = vpop.f32.mrf.mxu0 }
 0x167   :  { %7331 = vmatmul.mubr.msk.bf16.vlgmr.msra.gmra.mxu1 %vm1178_vm0, %v9472_v62  ;;  %7338 = vmatmul.mubr.msk.bf16.vlgmr.msra.gmra.mxu0 %vm1178_vm0, %v9472_v62 }
 0x168   :  { %1869 = vmatpush1.bf16.msra.mxu1 %v9430_v48  ;;  %1448 = vmatprep.mubr.bf16.mxu1 %v9295_v21 }
 0x169   :  { %1551 = vmatprep.mubr.bf16.mxu0 %v9295_v21  ;;  %1870 = vmatprep.subr.bf16.mxu1 %v9438_v56 }
 0x16a   :  { %1972 = vmatpush1.bf16.msra.mxu0 %v9424_v40  ;;  %v7890_v40 = vpop.f32.mrf.mxu0 }
 0x16b   :  { %1973 = vmatprep.subr.bf16.mxu0 %v9436_v54 }
 0x16c   :  { %1871 = vmatpush1.bf16.msra.mxu1 %v9444_v63  ;;  %v7892_v48 = vpop.f32.mrf.mxu0 }
 0x16d   :  { %1872 = vmatprep.subr.bf16.mxu1 %v9447_v0 }
 0x16e   :  { %1974 = vmatpush1.bf16.msra.mxu0 %v9434_v53  ;;  %v7893_v53 = vpop.f32.mrf.mxu0 }
 0x16f   :  { %7332 = vmatmul.mubr.msk.bf16.gmra.mxu1 %vm1178_vm0, %v9495_v22  ;;  %7339 = vmatmul.mubr.msk.bf16.gmra.mxu0 %vm1178_vm0, %v9495_v22  ;;  %v7894_v13 = vadd.f32 %v7893_v53, %v7892_v48  ;;  %v8697_v48 = vld [vmem:[#allocation7 + $0x38] sm:$0xff]  }
 0x170   :  { %1458 = vmatprep.mubr.bf16.mxu1 %v9295_v21  ;;  %1561 = vmatprep.mubr.bf16.mxu0 %v9295_v21  ;;  %v7895_v54 = vpop.f32.mrf.mxu0 }
 0x171   :  { %1873 = vmatpush1.bf16.msra.mxu1 %v9450_v1  ;;  %1975 = vmatprep.subr.bf16.mxu0 %v9454_v17  ;;  %v8594_v17 = vpop.f32.mrf.mxu1 }
 0x172   :  { %1976 = vmatpush1.bf16.msra.mxu0 %v9456_v18  ;;  %2074 = vmatprep.subr.bf16.mxu1 %v9463_v25  ;;  %v7896_v56 = vpop.f32.mrf.mxu0 }
 0x173   :  { %2177 = vmatprep.subr.bf16.mxu0 %v9469_v34  ;;  %v805_v25 = vpop.f32.mrf.mxu1  ;;  %v7897_v14 = vadd.f32 %v7896_v56, %v7895_v54 }
 0x174   :  { %v7898_v63 = vpop.f32.mrf.mxu0 }
 0x175   :  { %v8595_v62 = vpop.f32.mrf.mxu1 }
 0x176   :  { %v7899_v0 = vpop.f32.mrf.mxu0 }
 0x177   :  { %7333 = vmatmul.mubr.msk.bf16.gmra.mxu1 %vm1178_vm0, %v9516_v42  ;;  %7340 = vmatmul.mubr.msk.bf16.gmra.mxu0 %vm1178_vm0, %v9516_v42  ;;  %v7888_v42 = vadd.f32 %v7887_v61, %v7886_v60  ;;  %v808_v4 = vpop.f32.mrf.mxu1 }
 0x178   :  { %1468 = vmatprep.mubr.bf16.mxu1 %v9295_v21  ;;  %1571 = vmatprep.mubr.bf16.mxu0 %v9295_v21  ;;  %v7901_v1 = vpop.f32.mrf.mxu0 }
 0x179   :  { %v806_v7 = vadd.f32 %v7888_v42, %v805_v25 }
 0x17a   :  { %v7902_v18 = vpop.f32.mrf.mxu0 }
 0x17b   :  { %v7903_v20 = vadd.f32 %v7902_v18, %v7901_v1 }
 0x17c   :  { %v7904_v34 = vpop.f32.mrf.mxu0 }
 0x17e   :  { %v7905_v22 = vpop.f32.mrf.mxu0 }
 0x17f   :  { %7334 = vmatmul.mubr.msk.bf16.gmra.mxu1 %vm1178_vm0, %v9524_v55  ;;  %7341 = vmatmul.mubr.msk.bf16.gmra.mxu0 %vm1178_vm0, %v9524_v55  ;;  %v7891_v55 = vadd.f32 %v7890_v40, %v7889_v3 }
 0x180   :  { %1478 = vmatprep.mubr.bf16.mxu1 %v9295_v21  ;;  %1581 = vmatprep.mubr.bf16.mxu0 %v9295_v21  ;;  %v7907_v5 = vpop.f32.mrf.mxu0 }
 0x181   :  { %v809_v9 = vadd.f32 %v7891_v55, %v808_v4  ;;  %v8700_v4 = vld [vmem:[#allocation7 + $0x68] sm:$0xff]  }
 0x182   :  { %v7908_v11 = vpop.f32.mrf.mxu0 }
 0x183   :  { %v9623_v16 = vpack.c.bf16 %v809_v9, %v806_v7  ;;  %v7909_v35 = vadd.f32 %v7908_v11, %v7907_v5  ;;  %v8701_v9 = vld [vmem:[#allocation7 + $0x28] sm:$0xff]  }
 0x184   :  { %v7910_v19 = vpop.f32.mrf.mxu0 }
 0x187   :  { %7335 = vmatmul.mubr.msk.bf16.gmra.mxu1 %vm1178_vm0, %v9532_v10  ;;  %7342 = vmatmul.mubr.msk.bf16.gmra.mxu0 %vm1178_vm0, %v9532_v10  ;;  %v8598_v10 = vpop.f32.mrf.mxu1 }
 0x188   :  { %1488 = vmatprep.mubr.bf16.mxu1 %v9295_v21  ;;  %1591 = vmatprep.mubr.bf16.mxu0 %v9295_v21 }
 0x18f   :  { %7336 = vmatmul.mubr.msk.bf16.gmra.mxu1 %vm1178_vm0, %v9540_v32  ;;  %7343 = vmatmul.mubr.msk.bf16.gmra.mxu0 %vm1178_vm0, %v9540_v32  ;;  %v7906_v32 = vadd.f32 %v7905_v22, %v7904_v34  ;;  %v8699_v34 = vld [vmem:[#allocation7 + $0x30] sm:$0xff]  }
 0x190   :  { %1498 = vmatprep.mubr.bf16.mxu1 %v9295_v21  ;;  %1601 = vmatprep.mubr.bf16.mxu0 %v9295_v21 }
 0x191   :  { %v830_v38 = vadd.f32 %v8598_v10, %v7906_v32 }
 0x197   :  { %7337 = vmatmul.mubr.msk.bf16.gmra.mxu1 %vm1178_vm0, %v9548_v47  ;;  %7344 = vmatmul.mubr.msk.bf16.gmra.mxu0 %vm1178_vm0, %v9548_v47 }
 0x198   :  { %1890 = vmatprep.mubr.bf16.mxu1 %v9295_v21  ;;  %1993 = vmatprep.mubr.bf16.mxu0 %v9295_v21 }
 0x19f   :  { %7345 = vmatmul.mubr.msk.bf16.vlgmr.msra.gmra.mxu1 %vm1178_vm0, %v9556_v59  ;;  %7352 = vmatmul.mubr.msk.bf16.vlgmr.msra.gmra.mxu0 %vm1178_vm0, %v9556_v59 }
 0x1a0   :  { %2075 = vmatpush1.bf16.msra.mxu1 %v9461_v24  ;;  %1900 = vmatprep.mubr.bf16.mxu1 %v9295_v21  ;;  %v821_v24 = vpop.f32.mrf.mxu1 }
 0x1a1   :  { %2003 = vmatprep.mubr.bf16.mxu0 %v9295_v21  ;;  %2076 = vmatprep.subr.bf16.mxu1 %v9474_v2  ;;  %v817_v2 = vadd.f32 %v8595_v62, %v7897_v14 }
 0x1a2   :  { %2178 = vmatpush1.bf16.msra.mxu0 %v9467_v33  ;;  %v814_v33 = vadd.f32 %v8594_v17, %v7894_v13  ;;  %v8698_v17 = vld [vmem:[#allocation7 + $0x70] sm:$0xff]  }
 0x1a3   :  { %2179 = vmatprep.subr.bf16.mxu0 %v9480_v6  ;;  %v8599_v6 = vpop.f32.mrf.mxu1 }
 0x1a4   :  { %2077 = vmatpush1.bf16.msra.mxu1 %v9484_v8  ;;  %v7911_v8 = vpop.f32.mrf.mxu0  ;;  %v833_v39 = vadd.f32 %v8599_v6, %v7909_v35 }
 0x1a5   :  { %2078 = vmatprep.subr.bf16.mxu1 %v9488_v12  ;;  %v861_v12 = vpack.c.bf16 %v817_v2, %v814_v33  ;;  %v824_v27 = vpop.f32.mrf.mxu1  ;;  %v7912_v46 = vadd.f32 %v7911_v8, %v7910_v19  ;;  %v8702_v19 = vld [vmem:[#allocation7 + $0x60] sm:$0xff]  }
 0x1a6   :  { %2180 = vmatpush1.bf16.msra.mxu0 %v9491_v15  ;;  %v7900_v15 = vadd.f32 %v7899_v0, %v7898_v63  ;;  %v7913_v28 = vpop.f32.mrf.mxu0  ;;  %v825_v30 = vadd.f32 %v7903_v20, %v824_v27  ;;  %v863_v45 = vpack.c.bf16 %v833_v39, %v830_v38  ;;  %v8703_v33 = vld [vmem:[#allocation7 + $0x20] sm:$0xff]   ;;  %v8707_v27 = vld [vmem:[#allocation7 + $0x138] sm:$0xff]   ;;  %v8712_v38 = vld [vmem:[#allocation7 + $0x168] sm:$0xff]  }
 0x1a7   :  { %7346 = vmatmul.mubr.msk.bf16.gmra.mxu1 %vm1178_vm0, %v9623_v16  ;;  %7353 = vmatmul.mubr.msk.bf16.gmra.mxu0 %vm1178_vm0, %v9623_v16  ;;  %v8602_v31 = vpop.f32.mrf.mxu1 }
 0x1a8   :  { %1910 = vmatprep.mubr.bf16.mxu1 %v9295_v21  ;;  %2013 = vmatprep.mubr.bf16.mxu0 %v9295_v21 }
 0x1a9   :  { %2079 = vmatpush1.bf16.msra.mxu1 %v9497_v23  ;;  %2181 = vmatprep.subr.bf16.mxu0 %v9500_v26  ;;  %v822_v23 = vadd.f32 %v7900_v15, %v821_v24  ;;  %v7914_v26 = vpop.f32.mrf.mxu0  ;;  %v837_v37 = vpop.f32.mrf.mxu1  ;;  %v8705_v15 = vld [vmem:[#allocation7 + $0x178] sm:$0xff]  }
 0x1aa   :  { %2182 = vmatpush1.bf16.msra.mxu0 %v9503_v29  ;;  %v7915_v49 = vadd.f32 %v7914_v26, %v7913_v28  ;;  %v838_v50 = vadd.f32 %v7912_v46, %v837_v37  ;;  %v8704_v28 = vld [vmem:[#allocation7 + $0x58] sm:$0xff]   ;;  %v8711_v46 = vld [vmem:[#allocation7 + $0x10] sm:$0xff]  }
 0x1ab   :  { %v862_v29 = vpack.c.bf16 %v825_v30, %v822_v23  ;;  %v7916_v36 = vpop.f32.mrf.mxu0  ;;  %v8603_v44 = vpop.f32.mrf.mxu1  ;;  %7988 = vmatprep.subr.bf16.mxu0 %v8705_v15  ;;  %v8706_v26 = vld [vmem:[#allocation7 + $0x18] sm:$0xff]  }
 0x1ad   :  { %v7917_v43 = vpop.f32.mrf.mxu0  ;;  %v840_v41 = vpop.f32.mrf.mxu1 }
 0x1ae   :  { %v841_v51 = vadd.f32 %v7915_v49, %v840_v41  ;;  %v7918_v57 = vadd.f32 %v7917_v43, %v7916_v36  ;;  %v8714_v41 = vld [vmem:[#allocation7 + $0x160] sm:$0xff]  }
 0x1af   :  { %7347 = vmatmul.mubr.msk.bf16.gmra.mxu1 %vm1178_vm0, %v861_v12  ;;  %7354 = vmatmul.mubr.msk.bf16.gmra.mxu0 %vm1178_vm0, %v861_v12  ;;  %v7919_v47 = vpop.f32.mrf.mxu0 }
 0x1b0   :  { %1920 = vmatprep.mubr.bf16.mxu1 %v9295_v21  ;;  %2023 = vmatprep.mubr.bf16.mxu0 %v9295_v21  ;;  %v9648_v60 = vpack.c.bf16 %v841_v51, %v838_v50  ;;  %v846_v61 = vadd.f32 %v8602_v31, %v7918_v57  ;;  %v8708_v31 = vld [vmem:[#allocation7 + $0x170] sm:$0xff]  }
 0x1b1   :  { %v7920_v52 = vpop.f32.mrf.mxu0 }
 0x1b2   :  { %v7921_v58 = vadd.f32 %v7920_v52, %v7919_v47  ;;  %v8715_v52 = vld [vmem:[#allocation7 + $0x120] sm:$0xff]  }
 0x1b4   :  { %v849_v3 = vadd.f32 %v8603_v44, %v7921_v58  ;;  %v8713_v44 = vld [vmem:[#allocation7 + $0x128] sm:$0xff]  }
 0x1b6   :  { %v9656_v40 = vpack.c.bf16 %v849_v3, %v846_v61  ;;  %v8718_v61 = vld [vmem:[#allocation7 + $0x158] sm:$0xff]  }
 0x1b7   :  { %7348 = vmatmul.mubr.msk.bf16.gmra.mxu1 %vm1178_vm0, %v862_v29  ;;  %7355 = vmatmul.mubr.msk.bf16.gmra.mxu0 %vm1178_vm0, %v862_v29 }
 0x1b8   :  { %1930 = vmatprep.mubr.bf16.mxu1 %v9295_v21  ;;  %2033 = vmatprep.mubr.bf16.mxu0 %v9295_v21 }
 0x1bf   :  { %7349 = vmatmul.mubr.msk.bf16.gmra.mxu1 %vm1178_vm0, %v863_v45  ;;  %7356 = vmatmul.mubr.msk.bf16.gmra.mxu0 %vm1178_vm0, %v863_v45 }
 0x1c0   :  { %1940 = vmatprep.mubr.bf16.mxu1 %v9295_v21  ;;  %2043 = vmatprep.mubr.bf16.mxu0 %v9295_v21 }
 0x1c7   :  { %7350 = vmatmul.mubr.msk.bf16.gmra.mxu1 %vm1178_vm0, %v9648_v60  ;;  %7357 = vmatmul.mubr.msk.bf16.gmra.mxu0 %vm1178_vm0, %v9648_v60 }
 0x1c8   :  { %1950 = vmatprep.mubr.bf16.mxu1 %v9295_v21  ;;  %2053 = vmatprep.mubr.bf16.mxu0 %v9295_v21 }
 0x1cf   :  { %7351 = vmatmul.mubr.msk.bf16.gmra.mxu1 %vm1178_vm0, %v9656_v40  ;;  %7358 = vmatmul.mubr.msk.bf16.gmra.mxu0 %vm1178_vm0, %v9656_v40 }
 0x1d0   :  { %2096 = vmatprep.mubr.bf16.mxu1 %v9295_v21  ;;  %2199 = vmatprep.mubr.bf16.mxu0 %v9295_v21 }
 0x1d7   :  { %7359 = vmatmul.mubr.msk.bf16.vlgmr.msra.gmra.mxu1 %vm1178_vm0, %v9556_v59  ;;  %7366 = vmatmul.mubr.msk.bf16.vlgmr.msra.gmra.mxu0 %vm1178_vm0, %v9556_v59  ;;  %v8696_v59 = vld [vmem:[#allocation7 + $0x78] sm:$0xff]  }
 0x1d8   :  { %2106 = vmatprep.mubr.bf16.mxu1 %v9295_v21  ;;  %2209 = vmatprep.mubr.bf16.mxu0 %v9295_v21 }
 0x1d9   :  { %7944 = vmatprep.subr.bf16.mxu1 %v8696_v59  ;;  %7989 = vmatpush3.bf16.msra.mxu0 %v8707_v27  ;;  %v8719_v59 = vld [vmem:[#allocation7 + $0x118] sm:$0xff]  }
 0x1da   :  { %7945 = vmatpush3.bf16.msra.mxu1 %v8697_v48  ;;  %7990 = vmatprep.subr.bf16.mxu0 %v8708_v31  ;;  %v8721_v31 = vld [vmem:[#allocation7 + $0x40] sm:$0xff]  }
 0x1db   :  { %7946 = vmatprep.subr.bf16.mxu1 %v8698_v17 }
 0x1de   :  { %7947 = vmatpush3.bf16.msra.mxu1 %v8699_v34 }
 0x1df   :  { %7360 = vmatmul.mubr.msk.bf16.gmra.mxu1 %vm1178_vm0, %v9623_v16  ;;  %7367 = vmatmul.mubr.msk.bf16.gmra.mxu0 %vm1178_vm0, %v9623_v16 }
 0x1e0   :  { %2116 = vmatprep.mubr.bf16.mxu1 %v9295_v21  ;;  %2219 = vmatprep.mubr.bf16.mxu0 %v9295_v21 }
 0x1e1   :  { %7948 = vmatprep.subr.bf16.mxu1 %v8700_v4 }
 0x1e2   :  { %7949 = vmatpush3.bf16.msra.mxu1 %v8701_v9  ;;  %v8717_v9 = vld [vmem:[#allocation7 + $0x8] sm:$0xff]  }
 0x1e3   :  { %7950 = vmatprep.subr.bf16.mxu1 %v8702_v19  ;;  %v8720_v19 = vld [vmem:[#allocation7 + $0x150] sm:$0xff]  }
 0x1e6   :  { %7951 = vmatpush3.bf16.msra.mxu1 %v8703_v33  ;;  %v8722_v33 = vld [vmem:[#allocation7 + $0x110] sm:$0xff]  }
 0x1e7   :  { %7361 = vmatmul.mubr.msk.bf16.gmra.mxu1 %vm1178_vm0, %v861_v12  ;;  %7368 = vmatmul.mubr.msk.bf16.gmra.mxu0 %vm1178_vm0, %v861_v12 }
 0x1e8   :  { %2126 = vmatprep.mubr.bf16.mxu1 %v9295_v21  ;;  %2229 = vmatprep.mubr.bf16.mxu0 %v9295_v21 }
 0x1e9   :  { %7952 = vmatprep.subr.bf16.mxu1 %v8704_v28 }
 0x1ea   :  { %7953 = vmatpush3.bf16.msra.mxu1 %v8706_v26 }
 0x1ef   :  { %v9680_v53 = vpop.f32.mrf.mxu1  ;;  %v9682_v54 = vpop.f32.mrf.mxu0  ;;  %7362 = vmatmul.mubr.msk.bf16.gmra.mxu1 %vm1178_vm0, %v862_v29  ;;  %7369 = vmatmul.mubr.msk.bf16.gmra.mxu0 %vm1178_vm0, %v862_v29  ;;  %v8709_v29 = vld [vmem:[#allocation7 + $0x130] sm:$0xff]  }
 0x1f0   :  { %2136 = vmatprep.mubr.bf16.mxu1 %v9295_v21  ;;  %2239 = vmatprep.mubr.bf16.mxu0 %v9295_v21 }
 0x1f1   :  { %v9688_v56 = vpop.f32.mrf.mxu1  ;;  %v9690_v63 = vpop.f32.mrf.mxu0  ;;  %7991 = vmatpush3.bf16.msra.mxu0 %v8709_v29  ;;  %v8724_v29 = vld [vmem:[#allocation7 + $0x148] sm:$0xff]  }
 0x1f2   :  { %7992 = vmatprep.subr.bf16.mxu0 %v8712_v38  ;;  %v890_v38 = vld [vmem:[#allocation6] sm:$0xff] }
 0x1f3   :  { %v9692_v0 = vpop.f32.mrf.mxu1  ;;  %v9694_v1 = vpop.f32.mrf.mxu0 }
 0x1f5   :  { %v9696_v18 = vpop.f32.mrf.mxu1  ;;  %v9698_v25 = vpop.f32.mrf.mxu0  ;;  %7993 = vmatpush3.bf16.msra.mxu0 %v8713_v44  ;;  %v8723_v44 = vld [vmem:[#allocation7] sm:$0xff]  }
 0x1f6   :  { %11328 = vst [vmem:[#allocation13_spill] sm:$0xff] %v9696_v18  ;;  %11329 = vst [vmem:[#allocation14_spill] sm:$0xff] %v9698_v25  ;;  %7994 = vmatprep.subr.bf16.mxu0 %v8714_v41 }
 0x1f7   :  { %v9700_v62 = vpop.f32.mrf.mxu1  ;;  %v9702_v22 = vpop.f32.mrf.mxu0  ;;  %7363 = vmatmul.mubr.msk.bf16.gmra.mxu1 %vm1178_vm0, %v863_v45  ;;  %7370 = vmatmul.mubr.msk.bf16.gmra.mxu0 %vm1178_vm0, %v863_v45  ;;  %v8710_v45 = vld [vmem:[#allocation7 + $0x50] sm:$0xff]  }
 0x1f8   :  { %2146 = vmatprep.mubr.bf16.mxu1 %v9295_v21  ;;  %2249 = vmatprep.mubr.bf16.mxu0 %v9295_v21 }
 0x1f9   :  { %v9708_v42 = vpop.f32.mrf.mxu1  ;;  %v9710_v55 = vpop.f32.mrf.mxu0  ;;  %7954 = vmatprep.subr.bf16.mxu1 %v8710_v45  ;;  %7995 = vmatpush3.bf16.msra.mxu0 %v8715_v52  ;;  %v8725_v45 = vld [vmem:[#allocation7 + $0x108] sm:$0xff]  }
 0x1fa   :  { %7955 = vmatpush3.bf16.msra.mxu1 %v8711_v46  ;;  %7996 = vmatprep.subr.bf16.mxu0 %v8718_v61  ;;  %v891_v46 = vld [vmem:[#allocation6 + $0x8] sm:$0xff]  ;;  %v893_v61 = vld [vmem:[#allocation6 + $0x18] sm:$0xff] }
 0x1fb   :  { %v9712_v5 = vpop.f32.mrf.mxu1  ;;  %v9714_v7 = vpop.f32.mrf.mxu0 }
 0x1fd   :  { %v9716_v10 = vpop.f32.mrf.mxu1  ;;  %v9718_v11 = vpop.f32.mrf.mxu0  ;;  %7997 = vmatpush3.bf16.msra.mxu0 %v8719_v59  ;;  %v9802_v59 = vld [vmem:[#allocation6 + $0x20] sm:$0xff] }
 0x1fe   :  { %11330 = vst [vmem:[#allocation15_spill] sm:$0xff] %v9716_v10  ;;  %11331 = vst [vmem:[#allocation16_spill] sm:$0xff] %v9718_v11  ;;  %7998 = vmatprep.subr.bf16.mxu0 %v8720_v19  ;;  %v953_v10 = vunpack.c.h.bf16 %v893_v61  ;;  %v954_v25 = vunpack.c.l.bf16 %v9802_v59 }
 0x1ff   :  { %v9720_v13 = vpop.f32.mrf.mxu1  ;;  %v9722_v14 = vpop.f32.mrf.mxu0  ;;  %7364 = vmatmul.mubr.msk.bf16.gmra.mxu1 %vm1178_vm0, %v9648_v60  ;;  %7371 = vmatmul.mubr.msk.bf16.gmra.mxu0 %vm1178_vm0, %v9648_v60  ;;  %v8716_v60 = vld [vmem:[#allocation7 + $0x48] sm:$0xff]   ;;  %11344 = vst [vmem:[#allocation29_spill] sm:$0xff] %v9802_v59  ;;  %v9838_v59 = vld [vmem:[#allocation6 + $0x58] sm:$0xff] }
 0x200   :  { %2156 = vmatprep.mubr.bf16.mxu1 %v9295_v21  ;;  %2259 = vmatprep.mubr.bf16.mxu0 %v9295_v21 }
 0x201   :  { %v9730_v16 = vpop.f32.mrf.mxu1  ;;  %v9732_v24 = vpop.f32.mrf.mxu0  ;;  %7956 = vmatprep.subr.bf16.mxu1 %v8716_v60  ;;  %7999 = vmatpush3.bf16.msra.mxu0 %v8722_v33  ;;  %v892_v60 = vld [vmem:[#allocation6 + $0x10] sm:$0xff]  ;;  %v946_v33 = vunpack.c.l.bf16 %v890_v38 }
 0x202   :  { %7957 = vmatpush3.bf16.msra.mxu1 %v8717_v9  ;;  %8000 = vmatprep.subr.bf16.mxu0 %v8724_v29  ;;  %v949_v29 = vunpack.c.h.bf16 %v891_v46  ;;  %v951_v11 = vunpack.c.h.bf16 %v892_v60 }
 0x203   :  { %v9734_v2 = vpop.f32.mrf.mxu1  ;;  %v9736_v6 = vpop.f32.mrf.mxu0  ;;  %7958 = vmatprep.subr.bf16.mxu1 %v8721_v31  ;;  %v947_v31 = vunpack.c.h.bf16 %v890_v38 }
 0x205   :  { %v9738_v8 = vpop.f32.mrf.mxu1  ;;  %v9740_v12 = vpop.f32.mrf.mxu0  ;;  %8001 = vmatpush3.bf16.msra.mxu0 %v8725_v45 }
 0x206   :  { %11332 = vst [vmem:[#allocation17_spill] sm:$0xff] %v9738_v8  ;;  %11333 = vst [vmem:[#allocation18_spill] sm:$0xff] %v9740_v12  ;;  %7959 = vmatpush3.bf16.msra.mxu1 %v8723_v44  ;;  %v9818_v12 = vld [vmem:[#allocation6 + $0x40] sm:$0xff]  ;;  %v9820_v8 = vld [vmem:[#allocation6 + $0x48] sm:$0xff] }
 0x207   :  { %v9742_v20 = vpop.f32.mrf.mxu1  ;;  %v9744_v21 = vpop.f32.mrf.mxu0  ;;  %7365 = vmatmul.mubr.msk.bf16.gmra.mxu1 %vm1178_vm0, %v9656_v40  ;;  %7372 = vmatmul.mubr.msk.bf16.gmra.mxu0 %vm1178_vm0, %v9656_v40 }
 0x209   :  { %v9750_v23 = vpop.f32.mrf.mxu1  ;;  %v9752_v30 = vpop.f32.mrf.mxu0 }
 0x20b   :  { %v9754_v32 = vpop.f32.mrf.mxu1  ;;  %v9756_v35 = vpop.f32.mrf.mxu0 }
 0x20d   :  { %v9758_v36 = vpop.f32.mrf.mxu1  ;;  %v9760_v37 = vpop.f32.mrf.mxu0 }
 0x20e   :  { %11334 = vst [vmem:[#allocation19_spill] sm:$0xff] %v9758_v36  ;;  %11335 = vst [vmem:[#allocation20_spill] sm:$0xff] %v9760_v37  ;;  %v9810_v37 = vld [vmem:[#allocation6 + $0x30] sm:$0xff]  ;;  %v9812_v36 = vld [vmem:[#allocation6 + $0x38] sm:$0xff] }
 0x20f   :  { %v9762_v39 = vpop.f32.mrf.mxu1  ;;  %v9764_v43 = vpop.f32.mrf.mxu0  ;;  %11348 = vst [vmem:[#allocation33_spill] sm:$0xff] %v9810_v37  ;;  %11349 = vst [vmem:[#allocation34_spill] sm:$0xff] %v9812_v36  ;;  %v960_v38 = vunpack.c.l.bf16 %v9812_v36 }
 0x211   :  { %v9766_v49 = vpop.f32.mrf.mxu1  ;;  %v9768_v47 = vpop.f32.mrf.mxu0 }
 0x213   :  { %v9770_v50 = vpop.f32.mrf.mxu1  ;;  %v9772_v51 = vpop.f32.mrf.mxu0 }
 0x215   :  { %v9774_v57 = vpop.f32.mrf.mxu1  ;;  %v9776_v58 = vpop.f32.mrf.mxu0 }
 0x216   :  { %11336 = vst [vmem:[#allocation21_spill] sm:$0xff] %v9774_v57  ;;  %11337 = vst [vmem:[#allocation22_spill] sm:$0xff] %v9776_v58  ;;  %v950_v58 = vunpack.c.l.bf16 %v892_v60  ;;  %v952_v57 = vunpack.c.l.bf16 %v893_v61  ;;  %v9836_v61 = vld [vmem:[#allocation6 + $0x50] sm:$0xff] }
 0x217   :  { %v9778_v3 = vpop.f32.mrf.mxu1  ;;  %v9780_v40 = vpop.f32.mrf.mxu0 }
 0x219   :  { %v9782_v48 = vpop.f32.mrf.mxu1  ;;  %v9784_v17 = vpop.f32.mrf.mxu0 }
 0x21b   :  { %v9786_v34 = vpop.f32.mrf.mxu1  ;;  %v9788_v4 = vpop.f32.mrf.mxu0 }
 0x21d   :  { %v9790_v15 = vpop.f32.mrf.mxu1  ;;  %v9792_v27 = vpop.f32.mrf.mxu0 }
 0x21e   :  { %11338 = vst [vmem:[#allocation23_spill] sm:$0xff] %v9790_v15  ;;  %11339 = vst [vmem:[#allocation24_spill] sm:$0xff] %v9792_v27  ;;  %v948_v27 = vunpack.c.l.bf16 %v891_v46  ;;  %v9808_v15 = vld [vmem:[#allocation6 + $0x28] sm:$0xff]  ;;  %v9827_v46 = vadd.f32 %v9680_v53, %v946_v33  ;;  %v962_v53 = vunpack.c.l.bf16 %v9818_v12  ;;  %v964_v33 = vunpack.c.l.bf16 %v9820_v8 }
 0x21f   :  { %v9794_v28 = vpop.f32.mrf.mxu1  ;;  %v9796_v26 = vpop.f32.mrf.mxu0  ;;  %11347 = vst [vmem:[#allocation32_spill] sm:$0xff] %v9808_v15  ;;  %v956_v18 = vunpack.c.l.bf16 %v9808_v15  ;;  %v9841_v15 = vadd.f32 %v9688_v56, %v947_v31 }
 0x220   :  { %11340 = vst [vmem:[#allocation25_spill] sm:$0xff] %v9794_v28  ;;  %11341 = vst [vmem:[#allocation26_spill] sm:$0xff] %v9796_v26  ;;  %v966_v28 = vunpack.c.l.bf16 %v9836_v61 }
 0x221   :  { %v9798_v41 = vpop.f32.mrf.mxu1  ;;  %v9800_v52 = vpop.f32.mrf.mxu0  ;;  %11352 = vst [vmem:[#allocation37_spill] sm:$0xff] %v9827_v46  ;;  %11354 = vst [vmem:[#allocation39_spill] sm:$0xff] %v9841_v15  ;;  %v9860_v31 = vadd.f32 %v9694_v1, %v956_v18  ;;  %v9895_v46 = vadd.f32 %v9700_v62, %v962_v53 }
 0x222   :  { %11342 = vst [vmem:[#allocation27_spill] sm:$0xff] %v9798_v41  ;;  %11343 = vst [vmem:[#allocation28_spill] sm:$0xff] %v9800_v52  ;;  %v958_v52 = vunpack.c.l.bf16 %v9810_v37  ;;  %v9844_v37 = vadd.f32 %v9690_v63, %v949_v29  ;;  %v9857_v63 = vadd.f32 %v9692_v0, %v954_v25  ;;  %v9862_v29 = vld [vmem:[#allocation6 + $0x60] sm:$0xff]  ;;  %v9874_v25 = vld [vmem:[#allocation6 + $0x70] sm:$0xff] }
 0x223   :  { %v9804_v9 = vpop.f32.mrf.mxu1  ;;  %v9806_v19 = vpop.f32.mrf.mxu0  ;;  %11359 = vst [vmem:[#allocation44_spill] sm:$0xff] %v9860_v31  ;;  %v911_v31 = vld [vmem:[#allocation6 + $0xa8] sm:$0xff] }
 0x224   :  { %11345 = vst [vmem:[#allocation30_spill] sm:$0xff] %v9804_v9  ;;  %11346 = vst [vmem:[#allocation31_spill] sm:$0xff] %v9806_v19 }
 0x225   :  { %v9814_v44 = vpop.f32.mrf.mxu1  ;;  %v9816_v45 = vpop.f32.mrf.mxu0  ;;  %11355 = vst [vmem:[#allocation40_spill] sm:$0xff] %v9844_v37  ;;  %11358 = vst [vmem:[#allocation43_spill] sm:$0xff] %v9857_v63  ;;  %v974_v37 = vunpack.c.l.bf16 %v9874_v25 }
 0x226   :  { %11350 = vst [vmem:[#allocation35_spill] sm:$0xff] %v9814_v44  ;;  %11351 = vst [vmem:[#allocation36_spill] sm:$0xff] %v9816_v45  ;;  %v9830_v44 = vadd.f32 %v9682_v54, %v948_v27 }
 0x227   :  { %v1440_v19 = vpop.f32.mrf.mxu1  ;;  %v1543_v9 = vpop.f32.mrf.mxu0 }
 0x228   :  { %v9832_v45 = vadd.f32 %v1440_v19, %v950_v58  ;;  %v9834_v60 = vadd.f32 %v1543_v9, %v952_v57  ;;  %v8726_v58 = vld [vmem:[#allocation7 + $0xf8] sm:$0xff]   ;;  %v8727_v19 = vld [vmem:[#allocation7 + $0x140] sm:$0xff]   ;;  %v968_v57 = vunpack.c.l.bf16 %v9838_v59  ;;  %v963_v9 = vunpack.c.h.bf16 %v9818_v12 }
 0x229   :  { %v1442_v54 = vpop.f32.mrf.mxu1  ;;  %v1545_v27 = vpop.f32.mrf.mxu0  ;;  %7966 = vmatprep.subr.bf16.mxu1 %v8726_v58  ;;  %8002 = vmatprep.subr.bf16.mxu0 %v8727_v19  ;;  %v965_v58 = vunpack.c.h.bf16 %v9820_v8  ;;  %v969_v12 = vunpack.c.h.bf16 %v9838_v59  ;;  %v8731_v8 = vld [vmem:[#allocation7 + $0x278] sm:$0xff]   ;;  %v908_v59 = vld [vmem:[#allocation6 + $0x90] sm:$0xff] }
 0x22a   :  { %11353 = vst [vmem:[#allocation38_spill] sm:$0xff] %v9832_v45  ;;  %v9852_v36 = vadd.f32 %v1442_v54, %v951_v11  ;;  %v9854_v56 = vadd.f32 %v1545_v27, %v953_v10  ;;  %v8729_v11 = vld [vmem:[#allocation7 + $0x100] sm:$0xff]   ;;  %v903_v54 = vld [vmem:[#allocation6 + $0x68] sm:$0xff]  ;;  %v905_v27 = vld [vmem:[#allocation6 + $0x78] sm:$0xff] }
 0x22b   :  { %v1444_v41 = vpop.f32.mrf.mxu1  ;;  %v1547_v26 = vpop.f32.mrf.mxu0  ;;  %8003 = vmatpush3.bf16.msra.mxu0 %v8729_v11  ;;  %v9882_v10 = vld [vmem:[#allocation6 + $0x80] sm:$0xff]  ;;  %v972_v0 = vunpack.c.l.bf16 %v903_v54  ;;  %v976_v15 = vunpack.c.l.bf16 %v905_v27  ;;  %v9905_v54 = vadd.f32 %v9708_v42, %v963_v9  ;;  %v9908_v63 = vadd.f32 %v9710_v55, %v965_v58 }
 0x22c   :  { %11356 = vst [vmem:[#allocation41_spill] sm:$0xff] %v9852_v36  ;;  %11357 = vst [vmem:[#allocation42_spill] sm:$0xff] %v9854_v56  ;;  %v9870_v1 = vadd.f32 %v1444_v41, %v958_v52  ;;  %v9872_v18 = vadd.f32 %v1547_v26, %v960_v38  ;;  %v9884_v36 = vld [vmem:[#allocation6 + $0x88] sm:$0xff]  ;;  %v967_v52 = vunpack.c.h.bf16 %v9836_v61  ;;  %v970_v38 = vunpack.c.l.bf16 %v9862_v29  ;;  %8032 = vmatprep.subr.bf16.mxu0 %v8731_v8  ;;  %v910_v9 = vld [vmem:[#allocation6 + $0xa0] sm:$0xff] }
 0x22d   :  { %v9878_v19 = vpop.f32.mrf.mxu1  ;;  %v9880_v45 = vpop.f32.mrf.mxu0  ;;  %v9898_v26 = vadd.f32 %v9702_v22, %v964_v33  ;;  %11364 = vst [vmem:[#allocation49_spill] sm:$0xff] %v9905_v54  ;;  %11365 = vst [vmem:[#allocation50_spill] sm:$0xff] %v9908_v63  ;;  %v978_v27 = vunpack.c.l.bf16 %v9882_v10  ;;  %v980_v62 = vunpack.c.l.bf16 %v9884_v36  ;;  %v9924_v55 = vadd.f32 %v9714_v7, %v972_v0 }
 0x22e   :  { %11360 = vst [vmem:[#allocation45_spill] sm:$0xff] %v9870_v1  ;;  %11361 = vst [vmem:[#allocation46_spill] sm:$0xff] %v9872_v18  ;;  %v909_v1 = vld [vmem:[#allocation6 + $0x98] sm:$0xff]  ;;  %v9921_v42 = vadd.f32 %v9712_v5, %v970_v38  ;;  %v912_v5 = vld [vmem:[#allocation6 + $0xb0] sm:$0xff]  ;;  %v979_v7 = vunpack.c.h.bf16 %v9882_v10  ;;  %v981_v0 = vunpack.c.h.bf16 %v9884_v36  ;;  %v988_v10 = vunpack.c.l.bf16 %v911_v31 }
 0x22f   :  { %v1450_v56 = vpop.f32.mrf.mxu1  ;;  %v1553_v11 = vpop.f32.mrf.mxu0  ;;  %11362 = vst [vmem:[#allocation47_spill] sm:$0xff] %v9898_v26  ;;  %11369 = vst [vmem:[#allocation54_spill] sm:$0xff] %v9924_v55  ;;  %v984_v18 = vunpack.c.l.bf16 %v909_v1  ;;  %v913_v38 = vld [vmem:[#allocation6 + $0xb8] sm:$0xff]  ;;  %v990_v54 = vunpack.c.l.bf16 %v912_v5  ;;  %v9952_v63 = vadd.f32 %v9722_v14, %v980_v62  ;;  %v9996_v14 = vld [vmem:[#allocation6 + $0x108] sm:$0xff] }
 0x230   :  { %v9900_v41 = vadd.f32 %v1450_v56, %v966_v28  ;;  %v9902_v61 = vadd.f32 %v1553_v11, %v968_v57  ;;  %11368 = vst [vmem:[#allocation53_spill] sm:$0xff] %v9921_v42  ;;  %v982_v11 = vunpack.c.l.bf16 %v908_v59  ;;  %v9942_v28 = vld [vmem:[#allocation6 + $0xc8] sm:$0xff]  ;;  %v9962_v31 = vadd.f32 %v9732_v24, %v981_v0 }
 0x231   :  { %v1452_v53 = vpop.f32.mrf.mxu1  ;;  %v1555_v22 = vpop.f32.mrf.mxu0  ;;  %11374 = vst [vmem:[#allocation59_spill] sm:$0xff] %v9952_v63  ;;  %v9978_v24 = vadd.f32 %v9736_v6, %v988_v10  ;;  %v997_v10 = vunpack.c.h.bf16 %v9942_v28  ;;  %v11503_v63 = vld [vmem:[#allocation15_spill] sm:$0xff] }
 0x232   :  { %11363 = vst [vmem:[#allocation48_spill] sm:$0xff] %v9902_v61  ;;  %v9916_v57 = vadd.f32 %v1452_v53, %v967_v52  ;;  %v9918_v56 = vadd.f32 %v1555_v22, %v969_v12  ;;  %v9940_v61 = vld [vmem:[#allocation6 + $0xc0] sm:$0xff]  ;;  %v986_v52 = vunpack.c.l.bf16 %v910_v9  ;;  %11378 = vst [vmem:[#allocation63_spill] sm:$0xff] %v9962_v31 }
 0x233   :  { %v1454_v58 = vpop.f32.mrf.mxu1  ;;  %v1557_v8 = vpop.f32.mrf.mxu0  ;;  %11382 = vst [vmem:[#allocation67_spill] sm:$0xff] %v9978_v24  ;;  %v995_v6 = vunpack.c.h.bf16 %v9940_v61  ;;  %v10334_v24 = vld [vmem:[#allocation6 + $0x280] sm:$0xff] }
 0x234   :  { %11366 = vst [vmem:[#allocation51_spill] sm:$0xff] %v9916_v57  ;;  %11367 = vst [vmem:[#allocation52_spill] sm:$0xff] %v9918_v56  ;;  %v9930_v12 = vadd.f32 %v1454_v58, %v974_v37  ;;  %v9932_v53 = vadd.f32 %v1557_v8, %v976_v15  ;;  %v983_v58 = vunpack.c.h.bf16 %v908_v59  ;;  %v985_v8 = vunpack.c.h.bf16 %v909_v1  ;;  %v917_v15 = vld [vmem:[#allocation6 + $0xd8] sm:$0xff] }
 0x235   :  { %v9936_v22 = vpop.f32.mrf.mxu1  ;;  %v9938_v33 = vpop.f32.mrf.mxu0  ;;  %v992_v56 = vunpack.c.l.bf16 %v913_v38  ;;  %v9959_v1 = vadd.f32 %v9730_v16, %v979_v7  ;;  %v994_v59 = vunpack.c.l.bf16 %v9940_v61  ;;  %v9975_v16 = vadd.f32 %v9734_v2, %v986_v52  ;;  %v920_v2 = vld [vmem:[#allocation6 + $0xf0] sm:$0xff]  ;;  %v921_v52 = vld [vmem:[#allocation6 + $0xf8] sm:$0xff]  ;;  %11487 = vst [vmem:[#allocation152_spill] sm:$0xff] %v10334_v24 }
 0x236   :  { %11370 = vst [vmem:[#allocation55_spill] sm:$0xff] %v9930_v12  ;;  %11371 = vst [vmem:[#allocation56_spill] sm:$0xff] %v9932_v53  ;;  %v916_v12 = vld [vmem:[#allocation6 + $0xd0] sm:$0xff]  ;;  %v1000_v0 = vunpack.c.l.bf16 %v917_v15  ;;  %v1006_v31 = vunpack.c.l.bf16 %v920_v2  ;;  %v10520_v53 = vld [vmem:[#allocation6 + $0x2b8] sm:$0xff] }
 0x237   :  { %11372 = vst [vmem:[#allocation57_spill] sm:$0xff] %v9938_v33  ;;  %v1460_v57 = vpop.f32.mrf.mxu1  ;;  %v1563_v36 = vpop.f32.mrf.mxu0  ;;  %v9949_v33 = vadd.f32 %v9720_v13, %v978_v27  ;;  %11377 = vst [vmem:[#allocation62_spill] sm:$0xff] %v9959_v1  ;;  %v996_v13 = vunpack.c.l.bf16 %v9942_v28  ;;  %v998_v7 = vunpack.c.l.bf16 %v916_v12  ;;  %v10416_v24 = vld [vmem:[#allocation6 + $0x1d0] sm:$0xff] }
 0x238   :  { %v9954_v26 = vadd.f32 %v1460_v57, %v982_v11  ;;  %v9956_v37 = vadd.f32 %v1563_v36, %v984_v18  ;;  %11381 = vst [vmem:[#allocation66_spill] sm:$0xff] %v9975_v16  ;;  %v918_v11 = vld [vmem:[#allocation6 + $0xe0] sm:$0xff]  ;;  %v919_v36 = vld [vmem:[#allocation6 + $0xe8] sm:$0xff] }
 0x239   :  { %11373 = vst [vmem:[#allocation58_spill] sm:$0xff] %v9949_v33  ;;  %v1462_v27 = vpop.f32.mrf.mxu1  ;;  %v1565_v9 = vpop.f32.mrf.mxu0  ;;  %v1004_v61 = vunpack.c.l.bf16 %v919_v36  ;;  %v10418_v33 = vld [vmem:[#allocation6 + $0x1d8] sm:$0xff] }
 0x23a   :  { %11375 = vst [vmem:[#allocation60_spill] sm:$0xff] %v9954_v26  ;;  %11376 = vst [vmem:[#allocation61_spill] sm:$0xff] %v9956_v37  ;;  %v9970_v62 = vadd.f32 %v1462_v27, %v983_v58  ;;  %v9972_v57 = vadd.f32 %v1565_v9, %v985_v8  ;;  %v9994_v37 = vld [vmem:[#allocation6 + $0x100] sm:$0xff]  ;;  %v1002_v58 = vunpack.c.l.bf16 %v918_v11 }
 0x23b   :  { %v1464_v5 = vpop.f32.mrf.mxu1  ;;  %v1567_v38 = vpop.f32.mrf.mxu0  ;;  %v1010_v11 = vunpack.c.l.bf16 %v9994_v37 }
 0x23c   :  { %11379 = vst [vmem:[#allocation64_spill] sm:$0xff] %v9970_v62  ;;  %11380 = vst [vmem:[#allocation65_spill] sm:$0xff] %v9972_v57  ;;  %v9984_v8 = vadd.f32 %v1464_v5, %v990_v54  ;;  %v9986_v27 = vadd.f32 %v1567_v38, %v992_v56  ;;  %v999_v5 = vunpack.c.h.bf16 %v916_v12  ;;  %v1001_v38 = vunpack.c.h.bf16 %v917_v15  ;;  %v925_v56 = vld [vmem:[#allocation6 + $0x118] sm:$0xff] }
 0x23d   :  { %v9990_v9 = vpop.f32.mrf.mxu1  ;;  %v9992_v18 = vpop.f32.mrf.mxu0  ;;  %v10006_v62 = vadd.f32 %v9744_v21, %v996_v13  ;;  %v10013_v12 = vadd.f32 %v9750_v23, %v995_v6  ;;  %v10016_v15 = vadd.f32 %v9752_v30, %v997_v10  ;;  %v10029_v23 = vadd.f32 %v9754_v32, %v1002_v58  ;;  %v928_v32 = vld [vmem:[#allocation6 + $0x130] sm:$0xff]  ;;  %v929_v58 = vld [vmem:[#allocation6 + $0x138] sm:$0xff]  ;;  %v10050_v21 = vld [vmem:[#allocation6 + $0x148] sm:$0xff] }
 0x23e   :  { %11383 = vst [vmem:[#allocation68_spill] sm:$0xff] %v9984_v8  ;;  %11384 = vst [vmem:[#allocation69_spill] sm:$0xff] %v9986_v27  ;;  %v924_v8 = vld [vmem:[#allocation6 + $0x110] sm:$0xff]  ;;  %v10032_v30 = vadd.f32 %v9756_v35, %v1004_v61  ;;  %v1016_v10 = vunpack.c.l.bf16 %v925_v56  ;;  %v1011_v35 = vunpack.c.h.bf16 %v9994_v37  ;;  %v1013_v61 = vunpack.c.h.bf16 %v9996_v14 }
 0x23f   :  { %11385 = vst [vmem:[#allocation70_spill] sm:$0xff] %v9990_v9  ;;  %11386 = vst [vmem:[#allocation71_spill] sm:$0xff] %v9992_v18  ;;  %v1470_v57 = vpop.f32.mrf.mxu1  ;;  %v1573_v28 = vpop.f32.mrf.mxu0  ;;  %v1008_v9 = vunpack.c.l.bf16 %v921_v52  ;;  %v10003_v18 = vadd.f32 %v9742_v20, %v994_v59  ;;  %v1012_v20 = vunpack.c.l.bf16 %v9996_v14  ;;  %v1014_v6 = vunpack.c.l.bf16 %v924_v8 }
 0x240   :  { %11388 = vst [vmem:[#allocation73_spill] sm:$0xff] %v10006_v62  ;;  %v10008_v1 = vadd.f32 %v1470_v57, %v998_v7  ;;  %v10010_v54 = vadd.f32 %v1573_v28, %v1000_v0  ;;  %11391 = vst [vmem:[#allocation76_spill] sm:$0xff] %v10013_v12  ;;  %v926_v0 = vld [vmem:[#allocation6 + $0x120] sm:$0xff]  ;;  %v927_v28 = vld [vmem:[#allocation6 + $0x128] sm:$0xff] }
 0x241   :  { %11387 = vst [vmem:[#allocation72_spill] sm:$0xff] %v10003_v18  ;;  %11392 = vst [vmem:[#allocation77_spill] sm:$0xff] %v10016_v15  ;;  %v1472_v59 = vpop.f32.mrf.mxu1  ;;  %v1575_v36 = vpop.f32.mrf.mxu0  ;;  %v1020_v37 = vunpack.c.l.bf16 %v927_v28  ;;  %v1022_v15 = vunpack.c.l.bf16 %v928_v32  ;;  %v10324_v18 = vld [vmem:[#allocation6 + $0x268] sm:$0xff] }
 0x242   :  { %11389 = vst [vmem:[#allocation74_spill] sm:$0xff] %v10008_v1  ;;  %11390 = vst [vmem:[#allocation75_spill] sm:$0xff] %v10010_v54  ;;  %v10024_v57 = vadd.f32 %v1472_v59, %v999_v5  ;;  %v10026_v7 = vadd.f32 %v1575_v36, %v1001_v38  ;;  %v10048_v54 = vld [vmem:[#allocation6 + $0x140] sm:$0xff]  ;;  %v1018_v5 = vunpack.c.l.bf16 %v926_v0  ;;  %v11479_v1 = vld [vmem:[#allocation34_spill] sm:$0xff] }
 0x243   :  { %11395 = vst [vmem:[#allocation80_spill] sm:$0xff] %v10029_v23  ;;  %11396 = vst [vmem:[#allocation81_spill] sm:$0xff] %v10032_v30  ;;  %v1474_v2 = vpop.f32.mrf.mxu1  ;;  %v1577_v52 = vpop.f32.mrf.mxu0  ;;  %v1026_v0 = vunpack.c.l.bf16 %v10048_v54  ;;  %v10282_v30 = vld [vmem:[#allocation6 + $0x1e0] sm:$0xff] }
 0x244   :  { %11393 = vst [vmem:[#allocation78_spill] sm:$0xff] %v10024_v57  ;;  %11394 = vst [vmem:[#allocation79_spill] sm:$0xff] %v10026_v7  ;;  %v10038_v38 = vadd.f32 %v1474_v2, %v1006_v31  ;;  %v10040_v59 = vadd.f32 %v1577_v52, %v1008_v9  ;;  %v1015_v2 = vunpack.c.h.bf16 %v924_v8  ;;  %v1017_v52 = vunpack.c.h.bf16 %v925_v56  ;;  %v933_v9 = vld [vmem:[#allocation6 + $0x158] sm:$0xff] }
 0x245   :  { %v10044_v36 = vpop.f32.mrf.mxu1  ;;  %v10046_v13 = vpop.f32.mrf.mxu0  ;;  %v10060_v57 = vadd.f32 %v9764_v43, %v1012_v20  ;;  %v10067_v8 = vadd.f32 %v9766_v49, %v1011_v35  ;;  %v10070_v56 = vadd.f32 %v9768_v47, %v1013_v61  ;;  %v10083_v49 = vadd.f32 %v9770_v50, %v1018_v5  ;;  %v936_v50 = vld [vmem:[#allocation6 + $0x170] sm:$0xff]  ;;  %v937_v5 = vld [vmem:[#allocation6 + $0x178] sm:$0xff]  ;;  %11484 = vst [vmem:[#allocation149_spill] sm:$0xff] %v10324_v18 }
 0x246   :  { %11397 = vst [vmem:[#allocation82_spill] sm:$0xff] %v10038_v38  ;;  %11398 = vst [vmem:[#allocation83_spill] sm:$0xff] %v10040_v59  ;;  %v932_v38 = vld [vmem:[#allocation6 + $0x150] sm:$0xff]  ;;  %v10086_v47 = vadd.f32 %v9772_v51, %v1020_v37  ;;  %v1032_v61 = vunpack.c.l.bf16 %v933_v9  ;;  %v1027_v51 = vunpack.c.h.bf16 %v10048_v54  ;;  %v1029_v37 = vunpack.c.h.bf16 %v10050_v21 }
 0x247   :  { %11399 = vst [vmem:[#allocation84_spill] sm:$0xff] %v10044_v36  ;;  %11400 = vst [vmem:[#allocation85_spill] sm:$0xff] %v10046_v13  ;;  %v1480_v7 = vpop.f32.mrf.mxu1  ;;  %v1583_v14 = vpop.f32.mrf.mxu0  ;;  %v1024_v36 = vunpack.c.l.bf16 %v929_v58  ;;  %v10057_v13 = vadd.f32 %v9762_v39, %v1010_v11  ;;  %v1028_v39 = vunpack.c.l.bf16 %v10050_v21  ;;  %v1030_v35 = vunpack.c.l.bf16 %v932_v38 }
 0x248   :  { %11402 = vst [vmem:[#allocation87_spill] sm:$0xff] %v10060_v57  ;;  %v10062_v12 = vadd.f32 %v1480_v7, %v1014_v6  ;;  %v10064_v31 = vadd.f32 %v1583_v14, %v1016_v10  ;;  %11405 = vst [vmem:[#allocation90_spill] sm:$0xff] %v10067_v8  ;;  %v934_v10 = vld [vmem:[#allocation6 + $0x160] sm:$0xff]  ;;  %v935_v14 = vld [vmem:[#allocation6 + $0x168] sm:$0xff]  ;;  %v1040_v21 = vunpack.c.l.bf16 %v937_v5 }
 0x249   :  { %11401 = vst [vmem:[#allocation86_spill] sm:$0xff] %v10057_v13  ;;  %11406 = vst [vmem:[#allocation91_spill] sm:$0xff] %v10070_v56  ;;  %v1482_v11 = vpop.f32.mrf.mxu1  ;;  %v1585_v28 = vpop.f32.mrf.mxu0  ;;  %v939_v57 = vld [vmem:[#allocation6 + $0x188] sm:$0xff]  ;;  %v1038_v56 = vunpack.c.l.bf16 %v936_v50  ;;  %v11475_v13 = vld [vmem:[#allocation32_spill] sm:$0xff] }
 0x24a   :  { %11403 = vst [vmem:[#allocation88_spill] sm:$0xff] %v10062_v12  ;;  %11404 = vst [vmem:[#allocation89_spill] sm:$0xff] %v10064_v31  ;;  %v10078_v7 = vadd.f32 %v1482_v11, %v1015_v2  ;;  %v10080_v6 = vadd.f32 %v1585_v28, %v1017_v52  ;;  %v938_v31 = vld [vmem:[#allocation6 + $0x180] sm:$0xff]  ;;  %v1036_v2 = vunpack.c.l.bf16 %v935_v14  ;;  %v1044_v14 = vunpack.c.l.bf16 %v939_v57 }
 0x24b   :  { %11409 = vst [vmem:[#allocation94_spill] sm:$0xff] %v10083_v49  ;;  %11410 = vst [vmem:[#allocation95_spill] sm:$0xff] %v10086_v47  ;;  %v1484_v32 = vpop.f32.mrf.mxu1  ;;  %v1587_v58 = vpop.f32.mrf.mxu0  ;;  %v10276_v47 = vld [vmem:[#allocation6 + $0x1c0] sm:$0xff]  ;;  %v10278_v49 = vld [vmem:[#allocation6 + $0x1c8] sm:$0xff]  ;;  %v957_v59 = vunpack.c.h.bf16 %v11475_v13 }
 0x24c   :  { %11407 = vst [vmem:[#allocation92_spill] sm:$0xff] %v10078_v7  ;;  %11408 = vst [vmem:[#allocation93_spill] sm:$0xff] %v10080_v6  ;;  %v10092_v52 = vadd.f32 %v1484_v32, %v1022_v15  ;;  %v10094_v11 = vadd.f32 %v1587_v58, %v1024_v36  ;;  %v1031_v36 = vunpack.c.h.bf16 %v932_v38  ;;  %v1033_v32 = vunpack.c.h.bf16 %v933_v9  ;;  %v941_v15 = vld [vmem:[#allocation6 + $0x198] sm:$0xff]  ;;  %v11474_v8 = vld [vmem:[#allocation29_spill] sm:$0xff] }
 0x24d   :  { %v10098_v28 = vpop.f32.mrf.mxu1  ;;  %v10100_v20 = vpop.f32.mrf.mxu0  ;;  %v1034_v58 = vunpack.c.l.bf16 %v934_v10  ;;  %v10117_v38 = vadd.f32 %v9782_v48, %v1027_v51  ;;  %v10120_v9 = vadd.f32 %v9784_v17, %v1029_v37  ;;  %v1042_v10 = vunpack.c.l.bf16 %v938_v31 }
 0x24e   :  { %11411 = vst [vmem:[#allocation96_spill] sm:$0xff] %v10092_v52  ;;  %11412 = vst [vmem:[#allocation97_spill] sm:$0xff] %v10094_v11  ;;  %v940_v52 = vld [vmem:[#allocation6 + $0x190] sm:$0xff]  ;;  %v10134_v17 = vadd.f32 %v9788_v4, %v1036_v2  ;;  %v1048_v37 = vunpack.c.l.bf16 %v941_v15  ;;  %v10146_v4 = vld [vmem:[#allocation6 + $0x1b8] sm:$0xff]  ;;  %v1043_v2 = vunpack.c.h.bf16 %v938_v31  ;;  %v955_v12 = vunpack.c.h.bf16 %v11474_v8 }
 0x24f   :  { %11413 = vst [vmem:[#allocation98_spill] sm:$0xff] %v10098_v28  ;;  %11414 = vst [vmem:[#allocation99_spill] sm:$0xff] %v10100_v20  ;;  %v1490_v6 = vpop.f32.mrf.mxu1  ;;  %v1593_v54 = vpop.f32.mrf.mxu0  ;;  %v10107_v28 = vadd.f32 %v9778_v3, %v1026_v0  ;;  %v10110_v20 = vadd.f32 %v9780_v40, %v1028_v39  ;;  %v10131_v48 = vadd.f32 %v9786_v34, %v1034_v58  ;;  %v1046_v51 = vunpack.c.l.bf16 %v940_v52  ;;  %v944_v58 = vld [vmem:[#allocation6 + $0x1b0] sm:$0xff]  ;;  %v11431_v31 = vld [vmem:[#allocation25_spill] sm:$0xff] }
 0x250   :  { %v10112_v7 = vadd.f32 %v1490_v6, %v1030_v35  ;;  %v10114_v43 = vadd.f32 %v1593_v54, %v1032_v61  ;;  %11419 = vst [vmem:[#allocation104_spill] sm:$0xff] %v10117_v38  ;;  %11420 = vst [vmem:[#allocation105_spill] sm:$0xff] %v10120_v9  ;;  %v942_v35 = vld [vmem:[#allocation6 + $0x1a0] sm:$0xff]  ;;  %v10136_v54 = vld [vmem:[#allocation6 + $0x1a8] sm:$0xff]  ;;  %v1054_v9 = vunpack.c.l.bf16 %v944_v58 }
 0x251   :  { %11415 = vst [vmem:[#allocation100_spill] sm:$0xff] %v10107_v28  ;;  %11416 = vst [vmem:[#allocation101_spill] sm:$0xff] %v10110_v20  ;;  %v1492_v50 = vpop.f32.mrf.mxu1  ;;  %v1595_v3 = vpop.f32.mrf.mxu0  ;;  %v10296_v8 = vld [vmem:[#allocation6 + $0x208] sm:$0xff] }
 0x252   :  { %11417 = vst [vmem:[#allocation102_spill] sm:$0xff] %v10112_v7  ;;  %11418 = vst [vmem:[#allocation103_spill] sm:$0xff] %v10114_v43  ;;  %v10126_v39 = vadd.f32 %v1492_v50, %v1031_v36  ;;  %v10128_v6 = vadd.f32 %v1595_v3, %v1033_v32  ;;  %v1045_v50 = vunpack.c.h.bf16 %v939_v57  ;;  %v1047_v36 = vunpack.c.h.bf16 %v940_v52  ;;  %v11437_v52 = vld [vmem:[#allocation27_spill] sm:$0xff] }
 0x253   :  { %11423 = vst [vmem:[#allocation108_spill] sm:$0xff] %v10131_v48  ;;  %11424 = vst [vmem:[#allocation109_spill] sm:$0xff] %v10134_v17  ;;  %v1494_v61 = vpop.f32.mrf.mxu1  ;;  %v1597_v5 = vpop.f32.mrf.mxu0  ;;  %v1056_v57 = vunpack.c.l.bf16 %v10146_v4 }
 0x254   :  { %11421 = vst [vmem:[#allocation106_spill] sm:$0xff] %v10126_v39  ;;  %11422 = vst [vmem:[#allocation107_spill] sm:$0xff] %v10128_v6  ;;  %v10142_v32 = vadd.f32 %v1494_v61, %v1038_v56  ;;  %v10144_v34 = vadd.f32 %v1597_v5, %v1040_v21  ;;  %v1049_v56 = vunpack.c.h.bf16 %v941_v15  ;;  %v1050_v61 = vunpack.c.l.bf16 %v942_v35  ;;  %v11439_v35 = vld [vmem:[#allocation28_spill] sm:$0xff] }
 0x255   :  { %11425 = vst [vmem:[#allocation110_spill] sm:$0xff] %v10136_v54  ;;  %11428 = vst [vmem:[#allocation113_spill] sm:$0xff] %v10146_v4  ;;  %v10148_v3 = vpop.f32.mrf.mxu1  ;;  %v10150_v40 = vpop.f32.mrf.mxu0  ;;  %v1052_v21 = vunpack.c.l.bf16 %v10136_v54  ;;  %v10169_v15 = vadd.f32 %v11437_v52, %v1043_v2  ;;  %v10172_v0 = vadd.f32 %v11439_v35, %v1045_v50  ;;  %v10314_v4 = vld [vmem:[#allocation6 + $0x240] sm:$0xff] }
 0x256   :  { %11426 = vst [vmem:[#allocation111_spill] sm:$0xff] %v10142_v32  ;;  %11427 = vst [vmem:[#allocation112_spill] sm:$0xff] %v10144_v34 }
 0x257   :  { %11429 = vst [vmem:[#allocation114_spill] sm:$0xff] %v10148_v3  ;;  %11430 = vst [vmem:[#allocation115_spill] sm:$0xff] %v10150_v40  ;;  %v1500_v5 = vpop.f32.mrf.mxu1  ;;  %v1603_v6 = vpop.f32.mrf.mxu0  ;;  %v10159_v3 = vadd.f32 %v11431_v31, %v1042_v10  ;;  %v11433_v40 = vld [vmem:[#allocation26_spill] sm:$0xff] }
 0x258   :  { %v10162_v39 = vadd.f32 %v11433_v40, %v1044_v14  ;;  %v10164_v43 = vadd.f32 %v1500_v5, %v1046_v51  ;;  %v10166_v32 = vadd.f32 %v1603_v6, %v1048_v37  ;;  %11438 = vst [vmem:[#allocation27_spill] sm:$0xff] %v10169_v15  ;;  %11440 = vst [vmem:[#allocation28_spill] sm:$0xff] %v10172_v0  ;;  %v11443_v6 = vld [vmem:[#allocation30_spill] sm:$0xff]  ;;  %v11445_v37 = vld [vmem:[#allocation31_spill] sm:$0xff] }
 0x259   :  { %11432 = vst [vmem:[#allocation25_spill] sm:$0xff] %v10159_v3  ;;  %v1502_v34 = vpop.f32.mrf.mxu1  ;;  %v1605_v58 = vpop.f32.mrf.mxu0  ;;  %v10183_v51 = vadd.f32 %v11443_v6, %v1050_v61  ;;  %v10186_v2 = vadd.f32 %v11445_v37, %v1052_v21 }
 0x25a   :  { %11434 = vst [vmem:[#allocation26_spill] sm:$0xff] %v10162_v39  ;;  %11435 = vst [vmem:[#allocation116_spill] sm:$0xff] %v10164_v43  ;;  %v10178_v14 = vadd.f32 %v1502_v34, %v1047_v36  ;;  %v10180_v40 = vadd.f32 %v1605_v58, %v1049_v56 }
 0x25b   :  { %11436 = vst [vmem:[#allocation117_spill] sm:$0xff] %v10166_v32  ;;  %11444 = vst [vmem:[#allocation30_spill] sm:$0xff] %v10183_v51  ;;  %v1504_v50 = vpop.f32.mrf.mxu1  ;;  %v1607_v5 = vpop.f32.mrf.mxu0 }
 0x25c   :  { %11441 = vst [vmem:[#allocation118_spill] sm:$0xff] %v10178_v14  ;;  %11442 = vst [vmem:[#allocation119_spill] sm:$0xff] %v10180_v40  ;;  %v10192_v35 = vadd.f32 %v1504_v50, %v1054_v9  ;;  %v10194_v36 = vadd.f32 %v1607_v5, %v1056_v57 }
 0x25d   :  { %11446 = vst [vmem:[#allocation31_spill] sm:$0xff] %v10186_v2  ;;  %v10196_v34 = vpop.f32.mrf.mxu1  ;;  %v10198_v56 = vpop.f32.mrf.mxu0 }
 0x25e   :  { %11447 = vst [vmem:[#allocation120_spill] sm:$0xff] %v10192_v35  ;;  %11448 = vst [vmem:[#allocation121_spill] sm:$0xff] %v10194_v36 }
 0x25f   :  { %11449 = vst [vmem:[#allocation122_spill] sm:$0xff] %v10196_v34  ;;  %11450 = vst [vmem:[#allocation123_spill] sm:$0xff] %v10198_v56  ;;  %v10204_v58 = vpop.f32.mrf.mxu1  ;;  %v10206_v6 = vpop.f32.mrf.mxu0 }
 0x261   :  { %v10208_v37 = vpop.f32.mrf.mxu1  ;;  %v10210_v9 = vpop.f32.mrf.mxu0 }
 0x263   :  { %v10212_v57 = vpop.f32.mrf.mxu1  ;;  %v10214_v50 = vpop.f32.mrf.mxu0 }
 0x265   :  { %v10216_v5 = vpop.f32.mrf.mxu1  ;;  %v10218_v52 = vpop.f32.mrf.mxu0 }
 0x266   :  { %11451 = vst [vmem:[#allocation124_spill] sm:$0xff] %v10218_v52  ;;  %v11496_v52 = vld [vmem:[#allocation14_spill] sm:$0xff] }
 0x267   :  { %v10220_v61 = vpop.f32.mrf.mxu1  ;;  %v10222_v31 = vpop.f32.mrf.mxu0 }
 0x269   :  { %v10224_v21 = vpop.f32.mrf.mxu1  ;;  %v10226_v10 = vpop.f32.mrf.mxu0 }
 0x26b   :  { %v10228_v17 = vpop.f32.mrf.mxu1  ;;  %v10230_v34 = vpop.f32.mrf.mxu0 }
 0x26d   :  { %v10232_v36 = vpop.f32.mrf.mxu1  ;;  %v10234_v2 = vpop.f32.mrf.mxu0 }
 0x26e   :  { %11452 = vst [vmem:[#allocation125_spill] sm:$0xff] %v10232_v36  ;;  %11453 = vst [vmem:[#allocation126_spill] sm:$0xff] %v10234_v2  ;;  %v10302_v36 = vld [vmem:[#allocation6 + $0x220] sm:$0xff] }
 0x26f   :  { %v10236_v35 = vpop.f32.mrf.mxu1  ;;  %v10238_v51 = vpop.f32.mrf.mxu0 }
 0x270   :  { %11454 = vst [vmem:[#allocation127_spill] sm:$0xff] %v10236_v35  ;;  %11455 = vst [vmem:[#allocation128_spill] sm:$0xff] %v10238_v51 }
 0x271   :  { %v10240_v40 = vpop.f32.mrf.mxu1  ;;  %v10242_v0 = vpop.f32.mrf.mxu0 }
 0x272   :  { %11456 = vst [vmem:[#allocation129_spill] sm:$0xff] %v10240_v40  ;;  %11457 = vst [vmem:[#allocation130_spill] sm:$0xff] %v10242_v0  ;;  %v10490_v0 = vld [vmem:[#allocation6 + $0x278] sm:$0xff]  ;;  %v10492_v40 = vld [vmem:[#allocation6 + $0x290] sm:$0xff] }
 0x273   :  { %v10244_v14 = vpop.f32.mrf.mxu1  ;;  %v10246_v15 = vpop.f32.mrf.mxu0  ;;  %11526 = vst [vmem:[#allocation182_spill] sm:$0xff] %v10490_v0  ;;  %v11529_v0 = vunpack.c.h.bf16 %v10276_v47 }
 0x274   :  { %11458 = vst [vmem:[#allocation131_spill] sm:$0xff] %v10244_v14  ;;  %11459 = vst [vmem:[#allocation132_spill] sm:$0xff] %v10246_v15  ;;  %v10361_v15 = vadd.f32 %v11496_v52, %v957_v59  ;;  %v10396_v52 = vld [vmem:[#allocation6 + $0x340] sm:$0xff] }
 0x275   :  { %v10248_v32 = vpop.f32.mrf.mxu1  ;;  %v10250_v39 = vpop.f32.mrf.mxu0  ;;  %11509 = vst [vmem:[#allocation168_spill] sm:$0xff] %v10396_v52  ;;  %v10460_v52 = vld [vmem:[#allocation6 + $0x230] sm:$0xff] }
 0x276   :  { %11460 = vst [vmem:[#allocation133_spill] sm:$0xff] %v10248_v32  ;;  %11461 = vst [vmem:[#allocation134_spill] sm:$0xff] %v10250_v39 }
 0x277   :  { %v10252_v43 = vpop.f32.mrf.mxu1  ;;  %v10254_v3 = vpop.f32.mrf.mxu0  ;;  %11497 = vst [vmem:[#allocation14_spill] sm:$0xff] %v10361_v15  ;;  %v10510_v15 = vld [vmem:[#allocation6 + $0x2b0] sm:$0xff] }
 0x278   :  { %11462 = vst [vmem:[#allocation135_spill] sm:$0xff] %v10252_v43  ;;  %11463 = vst [vmem:[#allocation136_spill] sm:$0xff] %v10254_v3  ;;  %v10368_v43 = vld [vmem:[#allocation6 + $0x2e8] sm:$0xff] }
 0x279   :  { %v10256_v2 = vpop.f32.mrf.mxu1  ;;  %v10258_v56 = vpop.f32.mrf.mxu0  ;;  %11499 = vst [vmem:[#allocation160_spill] sm:$0xff] %v10368_v43  ;;  %v10434_v43 = vld [vmem:[#allocation6 + $0x1f8] sm:$0xff] }
 0x27a   :  { %11464 = vst [vmem:[#allocation137_spill] sm:$0xff] %v10256_v2  ;;  %11465 = vst [vmem:[#allocation138_spill] sm:$0xff] %v10258_v56  ;;  %v10322_v56 = vld [vmem:[#allocation6 + $0x260] sm:$0xff] }
 0x27b   :  { %v10260_v48 = vpop.f32.mrf.mxu1  ;;  %v10262_v38 = vpop.f32.mrf.mxu0  ;;  %11483 = vst [vmem:[#allocation148_spill] sm:$0xff] %v10322_v56  ;;  %v10342_v2 = vld [vmem:[#allocation6 + $0x2a0] sm:$0xff]  ;;  %11517 = vst [vmem:[#allocation176_spill] sm:$0xff] %v10434_v43 }
 0x27c   :  { %11466 = vst [vmem:[#allocation139_spill] sm:$0xff] %v10260_v48  ;;  %11467 = vst [vmem:[#allocation140_spill] sm:$0xff] %v10262_v38  ;;  %v10344_v38 = vld [vmem:[#allocation6 + $0x2a8] sm:$0xff] }
 0x27d   :  { %v10264_v20 = vpop.f32.mrf.mxu1  ;;  %v10266_v7 = vpop.f32.mrf.mxu0  ;;  %11489 = vst [vmem:[#allocation154_spill] sm:$0xff] %v10342_v2  ;;  %11490 = vst [vmem:[#allocation155_spill] sm:$0xff] %v10344_v38  ;;  %v11493_v48 = vld [vmem:[#allocation13_spill] sm:$0xff] }
 0x27e   :  { %11468 = vst [vmem:[#allocation141_spill] sm:$0xff] %v10264_v20  ;;  %11469 = vst [vmem:[#allocation142_spill] sm:$0xff] %v10266_v7  ;;  %v10284_v20 = vld [vmem:[#allocation6 + $0x1e8] sm:$0xff]  ;;  %v10351_v3 = vadd.f32 %v11493_v48, %v955_v12  ;;  %v10366_v48 = vld [vmem:[#allocation6 + $0x2e0] sm:$0xff] }
 0x27f   :  { %v10268_v28 = vpop.f32.mrf.mxu1  ;;  %v10270_v32 = vpop.f32.mrf.mxu0  ;;  %11498 = vst [vmem:[#allocation159_spill] sm:$0xff] %v10366_v48  ;;  %v10382_v12 = vld [vmem:[#allocation6 + $0x308] sm:$0xff] }
 0x280   :  { %11470 = vst [vmem:[#allocation143_spill] sm:$0xff] %v10268_v28  ;;  %11471 = vst [vmem:[#allocation144_spill] sm:$0xff] %v10270_v32  ;;  %v11478_v32 = vld [vmem:[#allocation33_spill] sm:$0xff] }
 0x281   :  { %v10272_v39 = vpop.f32.mrf.mxu1  ;;  %v10274_v11 = vpop.f32.mrf.mxu0  ;;  %v10294_v28 = vld [vmem:[#allocation6 + $0x200] sm:$0xff]  ;;  %11504 = vst [vmem:[#allocation15_spill] sm:$0xff] %v10382_v12  ;;  %v10402_v2 = vld [vmem:[#allocation6 + $0x348] sm:$0xff] }
 0x282   :  { %11472 = vst [vmem:[#allocation145_spill] sm:$0xff] %v10272_v39  ;;  %11473 = vst [vmem:[#allocation146_spill] sm:$0xff] %v10274_v11  ;;  %v971_v39 = vunpack.c.h.bf16 %v9862_v29  ;;  %v10304_v29 = vld [vmem:[#allocation6 + $0x228] sm:$0xff] }
 0x283   :  { %v10286_v7 = vpop.f32.mrf.mxu1  ;;  %v10288_v23 = vpop.f32.mrf.mxu0  ;;  %11510 = vst [vmem:[#allocation169_spill] sm:$0xff] %v10402_v2  ;;  %v10414_v38 = vld [vmem:[#allocation6 + $0x368] sm:$0xff]  ;;  %v1732_v2 = vunpack.c.h.bf16 %v10418_v33 }
 0x284   :  { %11476 = vst [vmem:[#allocation29_spill] sm:$0xff] %v10286_v7  ;;  %11477 = vst [vmem:[#allocation32_spill] sm:$0xff] %v10288_v23  ;;  %v10316_v7 = vld [vmem:[#allocation6 + $0x248] sm:$0xff]  ;;  %v10377_v26 = vadd.f32 %v11503_v63, %v971_v39 }
 0x285   :  { %v10306_v11 = vpop.f32.mrf.mxu1  ;;  %v10308_v62 = vpop.f32.mrf.mxu0  ;;  %11482 = vst [vmem:[#allocation147_spill] sm:$0xff] %v10316_v7  ;;  %v10390_v63 = vld [vmem:[#allocation6 + $0x328] sm:$0xff]  ;;  %11514 = vst [vmem:[#allocation173_spill] sm:$0xff] %v10414_v38  ;;  %v1730_v38 = vunpack.c.h.bf16 %v10416_v24 }
 0x286   :  { %11480 = vst [vmem:[#allocation33_spill] sm:$0xff] %v10306_v11  ;;  %11481 = vst [vmem:[#allocation34_spill] sm:$0xff] %v10308_v62  ;;  %v10336_v11 = vld [vmem:[#allocation6 + $0x288] sm:$0xff]  ;;  %v10370_v62 = vld [vmem:[#allocation6 + $0x300] sm:$0xff] }
 0x287   :  { %v10326_v54 = vpop.f32.mrf.mxu1  ;;  %v10328_v13 = vpop.f32.mrf.mxu0  ;;  %11488 = vst [vmem:[#allocation153_spill] sm:$0xff] %v10336_v11  ;;  %11500 = vst [vmem:[#allocation161_spill] sm:$0xff] %v10370_v62  ;;  %v10432_v11 = vld [vmem:[#allocation6 + $0x1f0] sm:$0xff] }
 0x288   :  { %11485 = vst [vmem:[#allocation150_spill] sm:$0xff] %v10326_v54  ;;  %11486 = vst [vmem:[#allocation151_spill] sm:$0xff] %v10328_v13  ;;  %v10356_v54 = vld [vmem:[#allocation6 + $0x2c0] sm:$0xff]  ;;  %v10358_v13 = vld [vmem:[#allocation6 + $0x2c8] sm:$0xff] }
 0x289   :  { %v10346_v27 = vpop.f32.mrf.mxu1  ;;  %v10348_v23 = vpop.f32.mrf.mxu0  ;;  %11494 = vst [vmem:[#allocation13_spill] sm:$0xff] %v10356_v54  ;;  %11495 = vst [vmem:[#allocation158_spill] sm:$0xff] %v10358_v13  ;;  %v1729_v13 = vunpack.c.l.bf16 %v10416_v24 }
 0x28a   :  { %11491 = vst [vmem:[#allocation156_spill] sm:$0xff] %v10346_v27  ;;  %11492 = vst [vmem:[#allocation157_spill] sm:$0xff] %v10348_v23  ;;  %v10384_v27 = vld [vmem:[#allocation6 + $0x320] sm:$0xff] }
 0x28b   :  { %v10372_v16 = vpop.f32.mrf.mxu1  ;;  %v10374_v18 = vpop.f32.mrf.mxu0  ;;  %11505 = vst [vmem:[#allocation164_spill] sm:$0xff] %v10384_v27  ;;  %11506 = vst [vmem:[#allocation165_spill] sm:$0xff] %v10390_v63  ;;  %v10462_v63 = vld [vmem:[#allocation6 + $0x238] sm:$0xff] }
 0x28c   :  { %11501 = vst [vmem:[#allocation162_spill] sm:$0xff] %v10372_v16  ;;  %11502 = vst [vmem:[#allocation163_spill] sm:$0xff] %v10374_v18  ;;  %v10404_v16 = vld [vmem:[#allocation6 + $0x360] sm:$0xff]  ;;  %v10440_v18 = vld [vmem:[#allocation6 + $0x210] sm:$0xff] }
 0x28d   :  { %v10392_v39 = vpop.f32.mrf.mxu1  ;;  %v10394_v59 = vpop.f32.mrf.mxu0  ;;  %11511 = vst [vmem:[#allocation170_spill] sm:$0xff] %v10404_v16  ;;  %v11519_v16 = vunpack.c.h.bf16 %v11479_v1  ;;  %v11525_v1 = vunpack.c.h.bf16 %v9874_v25  ;;  %v10500_v27 = vld [vmem:[#allocation6 + $0x298] sm:$0xff] }
 0x28e   :  { %11507 = vst [vmem:[#allocation166_spill] sm:$0xff] %v10392_v39  ;;  %11508 = vst [vmem:[#allocation167_spill] sm:$0xff] %v10394_v59 }
 0x28f   :  { %v10410_v54 = vpop.f32.mrf.mxu1  ;;  %v10412_v23 = vpop.f32.mrf.mxu0 }
 0x290   :  { %11512 = vst [vmem:[#allocation171_spill] sm:$0xff] %v10410_v54  ;;  %11513 = vst [vmem:[#allocation172_spill] sm:$0xff] %v10412_v23  ;;  %v1731_v54 = vunpack.c.l.bf16 %v10418_v33  ;;  %v11518_v23 = vunpack.c.h.bf16 %v11478_v32  ;;  %v10470_v32 = vld [vmem:[#allocation6 + $0x258] sm:$0xff]  ;;  %v1745_v33 = vunpack.c.l.bf16 %v10440_v18 }
 0x291   :  { %v10426_v12 = vpop.f32.mrf.mxu1  ;;  %v10429_v62 = vpop.f32.mrf.mxu0 }
 0x292   :  { %11515 = vst [vmem:[#allocation174_spill] sm:$0xff] %v10426_v12  ;;  %11516 = vst [vmem:[#allocation175_spill] sm:$0xff] %v10429_v62  ;;  %v10442_v12 = vld [vmem:[#allocation6 + $0x218] sm:$0xff]  ;;  %v10447_v48 = vadd.f32 %v9878_v19, %v11518_v23  ;;  %v10452_v62 = vadd.f32 %v9880_v45, %v11519_v16  ;;  %v1737_v19 = vunpack.c.l.bf16 %v10432_v11  ;;  %v1739_v23 = vunpack.c.l.bf16 %v10434_v43  ;;  %v10468_v16 = vld [vmem:[#allocation6 + $0x250] sm:$0xff] }
 0x293   :  { %v10454_v39 = vpop.f32.mrf.mxu1  ;;  %v10456_v59 = vpop.f32.mrf.mxu0  ;;  %v10483_v45 = vadd.f32 %v9936_v22, %v11525_v1 }
 0x294   :  { %11520 = vst [vmem:[#allocation177_spill] sm:$0xff] %v10452_v62  ;;  %11521 = vst [vmem:[#allocation178_spill] sm:$0xff] %v10454_v39  ;;  %v1747_v39 = vunpack.c.l.bf16 %v10442_v12 }
 0x295   :  { %11522 = vst [vmem:[#allocation179_spill] sm:$0xff] %v10456_v59  ;;  %v10472_v59 = vpop.f32.mrf.mxu1  ;;  %v10474_v24 = vpop.f32.mrf.mxu0 }
 0x296   :  { %11523 = vst [vmem:[#allocation180_spill] sm:$0xff] %v10472_v59  ;;  %11524 = vst [vmem:[#allocation181_spill] sm:$0xff] %v10474_v24  ;;  %v10488_v24 = vld [vmem:[#allocation6 + $0x270] sm:$0xff]  ;;  %v11527_v59 = vunpack.c.l.bf16 %v10278_v49 }
 0x297   :  { %v2098_v22 = vpop.f32.mrf.mxu1  ;;  %v2201_v1 = vpop.f32.mrf.mxu0 }
 0x298   :  { %v1996_v51 = vadd.f32 %v10206_v6, %v11527_v59  ;;  %v2202_v7 = vadd.f32 %v2201_v1, %v1731_v54  ;;  %v2099_v55 = vadd.f32 %v2098_v22, %v1729_v13  ;;  %v1779_v54 = vunpack.c.l.bf16 %v10500_v27 }
 0x299   :  { %v2100_v42 = vpop.f32.mrf.mxu1  ;;  %v2203_v25 = vpop.f32.mrf.mxu0  ;;  %v11528_v13 = vunpack.c.l.bf16 %v10276_v47  ;;  %v11531_v59 = vmax.f32 %v9830_v44, %v9834_v60  ;;  %v11534_v44 = vunpack.c.h.bf16 %v10282_v30 }
 0x29a   :  { %v2272_v6 = vmax.f32 %v1996_v51, %v2202_v7  ;;  %v2101_v1 = vadd.f32 %v2100_v42, %v1730_v38  ;;  %v2204_v62 = vadd.f32 %v2203_v25, %v1732_v2  ;;  %v1895_v7 = vadd.f32 %v10208_v37, %v11529_v0 }
 0x29b   :  { %v1893_v22 = vadd.f32 %v10204_v58, %v11528_v13  ;;  %v2102_v14 = vpop.f32.mrf.mxu1  ;;  %v2205_v43 = vpop.f32.mrf.mxu0  ;;  %v11530_v51 = vunpack.c.h.bf16 %v10278_v49  ;;  %v1785_v42 = vunpack.c.l.bf16 %v10510_v15  ;;  %v11532_v38 = vunpack.c.l.bf16 %v10284_v20 }
 0x29c   :  { %v10531_v58 = vmax.f32 %v11531_v59, %v2272_v6  ;;  %v2103_v13 = vadd.f32 %v2102_v14, %v1737_v19  ;;  %v2206_v47 = vadd.f32 %v2205_v43, %v1739_v23  ;;  %v11533_v49 = vunpack.c.l.bf16 %v10282_v30 }
 0x29d   :  { %v1998_v35 = vadd.f32 %v10210_v9, %v11530_v51  ;;  %v2000_v2 = vadd.f32 %v10214_v50, %v11532_v38  ;;  %v2270_v25 = vmax.f32 %v1893_v22, %v2099_v55  ;;  %v2104_v56 = vpop.f32.mrf.mxu1  ;;  %v10537_v0 = vpop.f32.mrf.mxu0  ;;  %v1899_v60 = vadd.f32 %v10216_v5, %v11534_v44 }
 0x29e   :  { %v1897_v37 = vadd.f32 %v10212_v57, %v11533_v49  ;;  %v11535_v9 = vunpack.c.l.bf16 %v10294_v28  ;;  %v2271_v55 = vmax.f32 %v1895_v7, %v2101_v1  ;;  %v11536_v19 = vunpack.c.h.bf16 %v10432_v11  ;;  %v11541_v11 = vld [vmem:[#allocation38_spill] sm:$0xff] }
 0x29f   :  { %v2273_v14 = vmax.f32 %v1998_v35, %v2204_v62  ;;  %v2276_v43 = vmax.f32 %v2000_v2, %v2206_v47  ;;  %v2108_v59 = vpop.f32.mrf.mxu1  ;;  %v2211_v22 = vpop.f32.mrf.mxu0  ;;  %v11537_v57 = vunpack.c.l.bf16 %v10296_v8  ;;  %v11538_v49 = vunpack.c.h.bf16 %v10294_v28  ;;  %v11540_v35 = vld [vmem:[#allocation37_spill] sm:$0xff]  ;;  %v11543_v2 = vld [vmem:[#allocation44_spill] sm:$0xff]  ;;  %v11544_v47 = vld [vmem:[#allocation46_spill] sm:$0xff] }
 0x2a0   :  { %v1903_v6 = vadd.f32 %v10220_v61, %v11535_v9  ;;  %v2105_v23 = vadd.f32 %v2104_v56, %v11536_v19  ;;  %v2274_v51 = vmax.f32 %v1897_v37, %v2103_v13  ;;  %v2109_v5 = vadd.f32 %v2108_v59, %v1745_v33  ;;  %v11550_v59 = vld [vmem:[#allocation41_spill] sm:$0xff] }
 0x2a1   :  { %v2006_v30 = vadd.f32 %v10222_v31, %v11537_v57  ;;  %v2212_v38 = vadd.f32 %v2211_v22, %v1747_v39  ;;  %v1905_v61 = vadd.f32 %v10224_v21, %v11538_v49  ;;  %v11539_v1 = vunpack.c.h.bf16 %v10296_v8  ;;  %v2110_v31 = vpop.f32.mrf.mxu1  ;;  %v2213_v33 = vpop.f32.mrf.mxu0  ;;  %v11553_v49 = vld [vmem:[#allocation42_spill] sm:$0xff] }
 0x2a2   :  { %v11542_v56 = vmax.f32 %v11540_v35, %v11541_v11  ;;  %v11545_v44 = vmax.f32 %v11543_v2, %v11544_v47  ;;  %v2278_v39 = vmax.f32 %v1903_v6, %v2109_v5  ;;  %v11546_v28 = vunpack.c.h.bf16 %v10440_v18  ;;  %v10581_v18 = vld [vmem:[#allocation6 + $0x2d0] sm:$0xff]  ;;  %v11556_v11 = vld [vmem:[#allocation45_spill] sm:$0xff] }
 0x2a3   :  { %v2008_v62 = vadd.f32 %v10226_v10, %v11539_v1  ;;  %v2280_v13 = vmax.f32 %v2006_v30, %v2212_v38  ;;  %v11547_v8 = vunpack.c.h.bf16 %v10442_v12  ;;  %v11548_v10 = vunpack.c.l.bf16 %v10302_v36  ;;  %v2112_v30 = vpop.f32.mrf.mxu1  ;;  %v2215_v5 = vpop.f32.mrf.mxu0  ;;  %v10583_v38 = vld [vmem:[#allocation6 + $0x2d8] sm:$0xff] }
 0x2a4   :  { %v2326_v7 = vmax.f32 %v11542_v56, %v2270_v25  ;;  %v10566_v9 = vmax.f32 %v11545_v44, %v2276_v43  ;;  %v2111_v21 = vadd.f32 %v2110_v31, %v11546_v28  ;;  %v11549_v25 = vld [vmem:[#allocation39_spill] sm:$0xff]  ;;  %v11552_v43 = vld [vmem:[#allocation40_spill] sm:$0xff]  ;;  %v2275_v6 = vmax.f32 %v1899_v60, %v2105_v23 }
 0x2a5   :  { %v2214_v37 = vadd.f32 %v2213_v33, %v11547_v8  ;;  %v1907_v19 = vadd.f32 %v10228_v17, %v11548_v10  ;;  %v11551_v22 = vmax.f32 %v11549_v25, %v11550_v59  ;;  %v11554_v1 = vmax.f32 %v11552_v43, %v11553_v49  ;;  %v11555_v12 = vld [vmem:[#allocation43_spill] sm:$0xff]  ;;  %v11560_v44 = vld [vmem:[#allocation48_spill] sm:$0xff]  ;;  %v11565_v59 = vld [vmem:[#allocation50_spill] sm:$0xff] }
 0x2a6   :  { %v11557_v56 = vmax.f32 %v11555_v12, %v11556_v11  ;;  %v11558_v17 = vmax.f32 %v9895_v46, %v9900_v41  ;;  %v11562_v23 = vunpack.c.l.bf16 %v10304_v29  ;;  %v2279_v28 = vmax.f32 %v1905_v61, %v2111_v21  ;;  %v10605_v46 = vpop.f32.mrf.mxu1  ;;  %v10607_v41 = vpop.f32.mrf.mxu0 }
 0x2a7   :  { %v2327_v57 = vmax.f32 %v11551_v22, %v2271_v55  ;;  %v2329_v35 = vmax.f32 %v11554_v1, %v2273_v14  ;;  %v11559_v55 = vld [vmem:[#allocation47_spill] sm:$0xff]  ;;  %v2281_v60 = vmax.f32 %v2008_v62, %v2214_v37  ;;  %v11563_v8 = vunpack.c.l.bf16 %v10460_v52 }
 0x2a8   :  { %v2330_v2 = vmax.f32 %v11557_v56, %v2274_v51  ;;  %v10591_v47 = vmax.f32 %v11558_v17, %v2278_v39  ;;  %v11561_v31 = vmax.f32 %v11559_v55, %v11560_v44  ;;  %v2010_v33 = vadd.f32 %v10230_v34, %v11562_v23  ;;  %v2118_v49 = vpop.f32.mrf.mxu1  ;;  %v2221_v1 = vpop.f32.mrf.mxu0  ;;  %v11571_v17 = vld [vmem:[#allocation49_spill] sm:$0xff]  ;;  %v11572_v55 = vld [vmem:[#allocation51_spill] sm:$0xff]  ;;  %v11604_v56 = vld [vmem:[#allocation132_spill] sm:$0xff] }
 0x2a9   :  { %v2113_v10 = vadd.f32 %v2112_v30, %v11563_v8  ;;  %v11564_v51 = vunpack.c.l.bf16 %v10462_v63  ;;  %v2382_v39 = vmax.f32 %v2326_v7, 0.0  ;;  %v11568_v61 = vmax.f32 %v10351_v3, %v10447_v48  ;;  %v11570_v30 = vld [vmem:[#allocation127_spill] sm:$0xff] }
 0x2aa   :  { %v10596_v14 = vmax.f32 %v11561_v31, %v2280_v13  ;;  %v11566_v13 = vld [vmem:[#allocation52_spill] sm:$0xff]  ;;  %v2383_v43 = vmax.f32 %v2327_v57, 0.0  ;;  %v11569_v7 = vunpack.c.l.bf16 %v10314_v4  ;;  %v2386_v12 = vmax.f32 %v2330_v2, 0.0  ;;  %v11575_v3 = vld [vmem:[#allocation55_spill] sm:$0xff]  ;;  %v11577_v57 = vld [vmem:[#allocation54_spill] sm:$0xff]  ;;  %v2120_v2 = vpop.f32.mrf.mxu1 }
 0x2ab   :  { %v2216_v25 = vadd.f32 %v2215_v5, %v11564_v51  ;;  %v11567_v22 = vmax.f32 %v11565_v59, %v11566_v13  ;;  %v2331_v21 = vmax.f32 %v11568_v61, %v2275_v6  ;;  %v2282_v63 = vmax.f32 %v1907_v19, %v2113_v10  ;;  %v11578_v6 = vld [vmem:[#allocation56_spill] sm:$0xff]  ;;  %v11580_v51 = vld [vmem:[#allocation147_spill] sm:$0xff] }
 0x2ac   :  { %v1913_v5 = vadd.f32 %v11570_v30, %v11569_v7  ;;  %v2385_v11 = vmax.f32 %v2329_v35, 0.0  ;;  %v11573_v44 = vmax.f32 %v11571_v17, %v11572_v55  ;;  %v11579_v23 = vmax.f32 %v11577_v57, %v11578_v6  ;;  %v8728_v10 = vld [vmem:[#allocation7 + $0xb8] sm:$0xff]   ;;  %v2223_v35 = vpop.f32.mrf.mxu0  ;;  %v8730_v30 = vld [vmem:[#allocation7 + $0xf0] sm:$0xff]  }
 0x2ad   :  { %v10612_v62 = vmax.f32 %v11567_v22, %v2281_v60  ;;  %v2284_v37 = vmax.f32 %v2010_v33, %v2216_v25  ;;  %v11574_v60 = vld [vmem:[#allocation53_spill] sm:$0xff]  ;;  %v2439_v8 = vpack.c.bf16 %v2383_v43, %v2383_v43  ;;  %v11581_v25 = vunpack.c.l.bf16 %v11580_v51  ;;  %v11582_v59 = vld [vmem:[#allocation128_spill] sm:$0xff]  ;;  %v11588_v57 = vld [vmem:[#allocation130_spill] sm:$0xff] }
 0x2ae   :  { %v2335_v31 = vmax.f32 %v11573_v44, %v2279_v28  ;;  %v11576_v48 = vmax.f32 %v11574_v60, %v11575_v3  ;;  %v2438_v22 = vpack.c.bf16 %v2382_v39, %v2382_v39  ;;  %v11583_v28 = vunpack.c.l.bf16 %v10468_v16  ;;  %v2122_v60 = vpop.f32.mrf.mxu1  ;;  %v2225_v3 = vpop.f32.mrf.mxu0 }
 0x2af   :  { %v10634_v33 = vmax.f32 %v11579_v23, %v2284_v37  ;;  %v2016_v13 = vadd.f32 %v11582_v59, %v11581_v25  ;;  %v11585_v17 = vunpack.c.h.bf16 %v10314_v4  ;;  %v11586_v37 = vld [vmem:[#allocation129_spill] sm:$0xff]  ;;  %3614 = vmatprep.mubr.bf16.mxu1 %v2439_v8  ;;  %v2441_v43 = vpack.c.bf16 %v2385_v11, %v2385_v11  ;;  %v8732_v4 = vld [vmem:[#allocation7 + $0xb0] sm:$0xff]   ;;  %v11590_v59 = vld [vmem:[#allocation148_spill] sm:$0xff] }
 0x2b0   :  { %v10629_v19 = vmax.f32 %v11576_v48, %v2282_v63  ;;  %v2119_v61 = vadd.f32 %v2118_v49, %v11583_v28  ;;  %v11584_v63 = vunpack.c.l.bf16 %v10470_v32  ;;  %v2387_v44 = vmax.f32 %v2331_v21, 0.0  ;;  %3615 = vmatmul.mubr.bf16.vlgmr.msra.gmra.mxu1 %v2438_v22  ;;  %v11592_v8 = vld [vmem:[#allocation131_spill] sm:$0xff] }
 0x2b1   :  { %v1915_v55 = vadd.f32 %v11586_v37, %v11585_v17  ;;  %v11587_v39 = vunpack.c.h.bf16 %v11580_v51  ;;  %v11591_v28 = vunpack.c.l.bf16 %v11590_v59  ;;  %v2442_v21 = vpack.c.bf16 %v2386_v12, %v2386_v12  ;;  %7967 = vmatpush3.bf16.msra.mxu1 %v8728_v10  ;;  %3654 = vmatprep.mubr.bf16.mxu1 %v2441_v43  ;;  %v8733_v17 = vld [vmem:[#allocation7 + $0x238] sm:$0xff]   ;;  %v10655_v51 = vpop.f32.mrf.mxu1  ;;  %v11598_v12 = vld [vmem:[#allocation61_spill] sm:$0xff]  ;;  %v8735_v59 = vld [vmem:[#allocation7 + $0x270] sm:$0xff]  }
 0x2b2   :  { %v2222_v7 = vadd.f32 %v2221_v1, %v11584_v63  ;;  %v2286_v49 = vmax.f32 %v1913_v5, %v2119_v61  ;;  %v11589_v1 = vunpack.c.h.bf16 %v10468_v16  ;;  %v2443_v63 = vpack.c.bf16 %v2387_v44, %v2387_v44  ;;  %v10659_v5 = vld [vmem:[#allocation6 + $0x2f0] sm:$0xff]  ;;  %7968 = vmatprep.subr.bf16.mxu1 %v8730_v30 }
 0x2b3   :  { %v2018_v6 = vadd.f32 %v11588_v57, %v11587_v39  ;;  %v1917_v11 = vadd.f32 %v11592_v8, %v11591_v28  ;;  %v2391_v37 = vmax.f32 %v2335_v31, 0.0  ;;  %v10657_v39 = vpop.f32.mrf.mxu0  ;;  %v11594_v16 = vld [vmem:[#allocation58_spill] sm:$0xff]  ;;  %v11601_v44 = vunpack.c.h.bf16 %v10470_v32  ;;  %v11602_v8 = vld [vmem:[#allocation149_spill] sm:$0xff]  ;;  %v10684_v32 = vld [vmem:[#allocation6 + $0x318] sm:$0xff] }
 0x2b4   :  { %v2288_v23 = vmax.f32 %v2016_v13, %v2222_v7  ;;  %v2121_v25 = vadd.f32 %v2120_v2, %v11589_v1  ;;  %11593 = vst [vmem:[#allocation37_spill] sm:$0xff] %v10657_v39  ;;  %v10661_v13 = vld [vmem:[#allocation6 + $0x2f8] sm:$0xff]  ;;  %v8734_v1 = vld [vmem:[#allocation7 + $0xe8] sm:$0xff]   ;;  %v10675_v28 = vld [vmem:[#allocation6 + $0x310] sm:$0xff]  ;;  %v11603_v48 = vunpack.c.l.bf16 %v11602_v8  ;;  %3886 = vmatprep.mubr.bf16.mxu0 %v2443_v63  ;;  %v11631_v50 = vunpack.c.l.bf16 %v10492_v40 }
 0x2b5   :  { %v11595_v2 = vld [vmem:[#allocation60_spill] sm:$0xff]  ;;  %v11597_v7 = vld [vmem:[#allocation59_spill] sm:$0xff]  ;;  %v2224_v57 = vadd.f32 %v2223_v35, %v11601_v44  ;;  %v2447_v30 = vpack.c.bf16 %v2391_v37, %v2391_v37  ;;  %v11608_v35 = vld [vmem:[#allocation62_spill] sm:$0xff]  ;;  %3887 = vmatmul.mubr.bf16.vlgmr.msra.gmra.mxu0 %v2442_v21  ;;  %7969 = vmatpush3.bf16.msra.mxu1 %v8732_v4  ;;  %v11641_v15 = vunpack.c.h.bf16 %v10302_v36 }
 0x2b6   :  { %v11596_v22 = vmax.f32 %v11594_v16, %v11595_v2  ;;  %v11599_v10 = vmax.f32 %v11597_v7, %v11598_v12  ;;  %v2287_v31 = vmax.f32 %v1915_v55, %v2121_v25  ;;  %v2020_v16 = vadd.f32 %v11604_v56, %v11603_v48  ;;  %v2128_v55 = vpop.f32.mrf.mxu1  ;;  %v2231_v25 = vpop.f32.mrf.mxu0  ;;  %v11609_v12 = vld [vmem:[#allocation64_spill] sm:$0xff]  ;;  %8033 = vmatpush3.bf16.msra.mxu0 %v8733_v17  ;;  %v8736_v48 = vld [vmem:[#allocation7 + $0xa8] sm:$0xff]   ;;  %v8737_v63 = vld [vmem:[#allocation7 + $0x230] sm:$0xff]  }
 0x2b7   :  { %v2289_v8 = vmax.f32 %v2018_v6, %v2224_v57  ;;  %v11612_v6 = vld [vmem:[#allocation124_spill] sm:$0xff]  ;;  %v11616_v17 = vld [vmem:[#allocation63_spill] sm:$0xff]  ;;  %7970 = vmatprep.subr.bf16.mxu1 %v8734_v1  ;;  %8034 = vmatprep.subr.bf16.mxu0 %v8735_v59  ;;  %v11623_v56 = vld [vmem:[#allocation137_spill] sm:$0xff] }
 0x2b8   :  { %v10666_v61 = vmax.f32 %v11596_v22, %v2286_v49  ;;  %v10671_v43 = vmax.f32 %v11599_v10, %v2288_v23  ;;  %v11605_v49 = vunpack.c.l.bf16 %v10488_v24  ;;  %v11606_v22 = vld [vmem:[#allocation182_spill] sm:$0xff]  ;;  %v11610_v10 = vmax.f32 %v11608_v35, %v11609_v12  ;;  %v2130_v37 = vpop.f32.mrf.mxu1  ;;  %v11613_v57 = vld [vmem:[#allocation152_spill] sm:$0xff]  ;;  %v11615_v12 = vld [vmem:[#allocation135_spill] sm:$0xff]  ;;  %4158 = vmatprep.mubr.bf16.mxu0 %v2447_v30 }
 0x2b9   :  { %v11607_v23 = vunpack.c.l.bf16 %v11606_v22  ;;  %v11614_v35 = vunpack.c.l.bf16 %v11613_v57  ;;  %v11619_v22 = vld [vmem:[#allocation153_spill] sm:$0xff]  ;;  %v11621_v24 = vld [vmem:[#allocation136_spill] sm:$0xff]  ;;  %7971 = vmatpush3.bf16.msra.mxu1 %v8736_v48  ;;  %v11665_v39 = vld [vmem:[#allocation79_spill] sm:$0xff] }
 0x2ba   :  { %11600 = vst [vmem:[#allocation38_spill] sm:$0xff] %v10671_v43  ;;  %v2123_v2 = vadd.f32 %v2122_v60, %v11605_v49  ;;  %v10689_v44 = vmax.f32 %v11610_v10, %v2287_v31  ;;  %v2233_v49 = vpop.f32.mrf.mxu0  ;;  %v11611_v31 = vunpack.c.h.bf16 %v10284_v20  ;;  %v8739_v10 = vld [vmem:[#allocation7 + $0x268] sm:$0xff]   ;;  %v11620_v20 = vunpack.c.l.bf16 %v11619_v22  ;;  %8035 = vmatpush3.bf16.msra.mxu0 %v8737_v63  ;;  %v10747_v63 = vld [vmem:[#allocation6 + $0x330] sm:$0xff] }
 0x2bb   :  { %v2226_v7 = vadd.f32 %v2225_v3, %v11607_v23  ;;  %v1923_v4 = vadd.f32 %v11615_v12, %v11614_v35  ;;  %v11624_v35 = vld [vmem:[#allocation66_spill] sm:$0xff]  ;;  %v11625_v12 = vld [vmem:[#allocation68_spill] sm:$0xff]  ;;  %v11628_v1 = vld [vmem:[#allocation69_spill] sm:$0xff]  ;;  %8036 = vmatprep.subr.bf16.mxu0 %v8739_v10 }
 0x2bc   :  { %v2290_v60 = vmax.f32 %v1917_v11, %v2123_v2  ;;  %v10698_v21 = vadd.f32 %v11612_v6, %v11611_v31  ;;  %v11617_v11 = vld [vmem:[#allocation65_spill] sm:$0xff]  ;;  %v2026_v31 = vadd.f32 %v11621_v24, %v11620_v20  ;;  %v11622_v6 = vunpack.c.h.bf16 %v11613_v57  ;;  %v2235_v23 = vpop.f32.mrf.mxu0 }
 0x2bd   :  { %v2292_v3 = vmax.f32 %v2020_v16, %v2226_v7  ;;  %v11618_v16 = vmax.f32 %v11616_v17, %v11617_v11  ;;  %v8738_v7 = vld [vmem:[#allocation7 + $0xe0] sm:$0xff]   ;;  %v11626_v29 = vmax.f32 %v11624_v35, %v11625_v12  ;;  %v2129_v24 = vadd.f32 %v2128_v55, %v11631_v50  ;;  %v11635_v35 = vld [vmem:[#allocation138_spill] sm:$0xff] }
 0x2be   :  { %v1925_v34 = vadd.f32 %v11623_v56, %v11622_v6  ;;  %v2232_v57 = vadd.f32 %v2231_v25, %v1779_v54  ;;  %v11632_v56 = vunpack.c.h.bf16 %v10492_v40  ;;  %v11634_v6 = vunpack.c.h.bf16 %v11619_v22  ;;  %v11636_v12 = vld [vmem:[#allocation154_spill] sm:$0xff]  ;;  %v8740_v50 = vld [vmem:[#allocation7 + $0xa0] sm:$0xff]   ;;  %v10743_v25 = vpop.f32.mrf.mxu0  ;;  %7972 = vmatprep.subr.bf16.mxu1 %v8738_v7  ;;  %v11648_v7 = vld [vmem:[#allocation143_spill] sm:$0xff] }
 0x2bf   :  { %v10706_v2 = vmax.f32 %v11618_v16, %v2289_v8  ;;  %v10718_v17 = vmax.f32 %v11626_v29, %v2290_v60  ;;  %v11627_v8 = vld [vmem:[#allocation67_spill] sm:$0xff]  ;;  %v2132_v16 = vpop.f32.mrf.mxu1  ;;  %v11633_v29 = vunpack.c.h.bf16 %v10500_v27  ;;  %v11637_v30 = vunpack.c.l.bf16 %v11636_v12  ;;  %v8741_v55 = vld [vmem:[#allocation7 + $0x228] sm:$0xff]   ;;  %11640 = vst [vmem:[#allocation39_spill] sm:$0xff] %v10743_v25  ;;  %7973 = vmatpush3.bf16.msra.mxu1 %v8740_v50  ;;  %v11673_v50 = vld [vmem:[#allocation80_spill] sm:$0xff] }
 0x2c0   :  { %v11629_v59 = vmax.f32 %v11627_v8, %v11628_v1  ;;  %v2131_v20 = vadd.f32 %v2130_v37, %v11632_v56  ;;  %v11638_v8 = vld [vmem:[#allocation139_spill] sm:$0xff]  ;;  %v2133_v54 = vadd.f32 %v2132_v16, %v1785_v42  ;;  %v2294_v37 = vmax.f32 %v1923_v4, %v2129_v24  ;;  %v8743_v56 = vld [vmem:[#allocation7 + $0x260] sm:$0xff]   ;;  %8037 = vmatpush3.bf16.msra.mxu0 %v8741_v55  ;;  %v11674_v55 = vld [vmem:[#allocation82_spill] sm:$0xff] }
 0x2c1   :  { %v2234_v60 = vadd.f32 %v2233_v49, %v11633_v29  ;;  %v1927_v1 = vadd.f32 %v11638_v8, %v11637_v30  ;;  %v10741_v40 = vpop.f32.mrf.mxu1  ;;  %v2296_v49 = vmax.f32 %v2026_v31, %v2232_v57  ;;  %v11642_v42 = vld [vmem:[#allocation125_spill] sm:$0xff]  ;;  %v11643_v29 = vld [vmem:[#allocation155_spill] sm:$0xff]  ;;  %v2241_v57 = vpop.f32.mrf.mxu0  ;;  %v11649_v30 = vld [vmem:[#allocation72_spill] sm:$0xff]  ;;  %8038 = vmatprep.subr.bf16.mxu0 %v8743_v56 }
 0x2c2   :  { %v10723_v11 = vmax.f32 %v11629_v59, %v2292_v3  ;;  %v2028_v3 = vadd.f32 %v11635_v35, %v11634_v6  ;;  %11639 = vst [vmem:[#allocation46_spill] sm:$0xff] %v10741_v40  ;;  %v2295_v22 = vmax.f32 %v1925_v34, %v2131_v20  ;;  %v8742_v59 = vld [vmem:[#allocation7 + $0xd8] sm:$0xff]   ;;  %v10752_v16 = vadd.f32 %v11642_v42, %v11641_v15  ;;  %v11646_v4 = vld [vmem:[#allocation13_spill] sm:$0xff]  ;;  %v11650_v8 = vld [vmem:[#allocation74_spill] sm:$0xff] }
 0x2c3   :  { %v11644_v6 = vunpack.c.l.bf16 %v11643_v29  ;;  %v11645_v35 = vld [vmem:[#allocation140_spill] sm:$0xff]  ;;  %v11647_v31 = vunpack.c.l.bf16 %v11646_v4  ;;  %v2138_v24 = vpop.f32.mrf.mxu1  ;;  %v11651_v48 = vmax.f32 %v11649_v30, %v11650_v8  ;;  %v11653_v15 = vld [vmem:[#allocation73_spill] sm:$0xff]  ;;  %v11654_v42 = vld [vmem:[#allocation75_spill] sm:$0xff]  ;;  %7974 = vmatprep.subr.bf16.mxu1 %v8742_v59 }
 0x2c4   :  { %11630 = vst [vmem:[#allocation44_spill] sm:$0xff] %v10723_v11  ;;  %v2297_v34 = vmax.f32 %v2028_v3, %v2234_v60  ;;  %v10760_v20 = vld [vmem:[#allocation6 + $0x338] sm:$0xff]  ;;  %v11655_v27 = vmax.f32 %v11653_v15, %v11654_v42  ;;  %v2298_v60 = vmax.f32 %v1927_v1, %v2133_v54  ;;  %v11661_v3 = vld [vmem:[#allocation158_spill] sm:$0xff]  ;;  %v11664_v40 = vld [vmem:[#allocation77_spill] sm:$0xff]  ;;  %v11669_v54 = vunpack.c.h.bf16 %v11646_v4 }
 0x2c5   :  { %v2030_v12 = vadd.f32 %v11645_v35, %v11644_v6  ;;  %v1933_v10 = vadd.f32 %v11648_v7, %v11647_v31  ;;  %v10765_v36 = vmax.f32 %v11651_v48, %v2294_v37  ;;  %v11657_v6 = vld [vmem:[#allocation76_spill] sm:$0xff]  ;;  %v11658_v35 = vld [vmem:[#allocation78_spill] sm:$0xff]  ;;  %v11662_v31 = vunpack.c.l.bf16 %v11661_v3  ;;  %v2140_v15 = vpop.f32.mrf.mxu1  ;;  %v11681_v59 = vld [vmem:[#allocation159_spill] sm:$0xff] }
 0x2c6   :  { %v10770_v29 = vmax.f32 %v11655_v27, %v2296_v49  ;;  %v11659_v25 = vmax.f32 %v11657_v6, %v11658_v35  ;;  %v11663_v7 = vld [vmem:[#allocation144_spill] sm:$0xff]  ;;  %v11666_v30 = vmax.f32 %v11664_v40, %v11665_v39  ;;  %v11668_v27 = vunpack.c.l.bf16 %v10520_v53  ;;  %v11672_v40 = vld [vmem:[#allocation146_spill] sm:$0xff] }
 0x2c7   :  { %11652 = vst [vmem:[#allocation41_spill] sm:$0xff] %v10765_v36  ;;  %v2036_v43 = vadd.f32 %v11663_v7, %v11662_v31  ;;  %v8744_v48 = vld [vmem:[#allocation7 + $0x98] sm:$0xff]   ;;  %v8745_v8 = vld [vmem:[#allocation7 + $0x220] sm:$0xff]   ;;  %v11671_v39 = vunpack.c.h.bf16 %v11661_v3  ;;  %v11675_v53 = vmax.f32 %v11673_v50, %v11674_v55  ;;  %v8746_v6 = vld [vmem:[#allocation7 + $0xd0] sm:$0xff]   ;;  %v11682_v56 = vunpack.c.l.bf16 %v11681_v59 }
 0x2c8   :  { %11656 = vst [vmem:[#allocation40_spill] sm:$0xff] %v10770_v29  ;;  %v10775_v11 = vmax.f32 %v11659_v25, %v2295_v22  ;;  %v10783_v37 = vmax.f32 %v11666_v30, %v2297_v34  ;;  %v2236_v49 = vadd.f32 %v2235_v23, %v11668_v27  ;;  %v2243_v25 = vpop.f32.mrf.mxu0  ;;  %v11670_v22 = vld [vmem:[#allocation145_spill] sm:$0xff]  ;;  %v8747_v35 = vld [vmem:[#allocation7 + $0x258] sm:$0xff]   ;;  %v11679_v27 = vunpack.c.l.bf16 %v10581_v18  ;;  %7975 = vmatpush3.bf16.msra.mxu1 %v8744_v48 }
 0x2c9   :  { %v10791_v42 = vadd.f32 %v11670_v22, %v11669_v54  ;;  %v10796_v34 = vadd.f32 %v11672_v40, %v11671_v39  ;;  %v10801_v23 = vmax.f32 %v11675_v53, %v2298_v60  ;;  %v11677_v4 = vld [vmem:[#allocation176_spill] sm:$0xff]  ;;  %v11680_v22 = vunpack.c.l.bf16 %v10583_v38  ;;  %v2142_v60 = vpop.f32.mrf.mxu1  ;;  %v11683_v50 = vld [vmem:[#allocation29_spill] sm:$0xff]  ;;  %8039 = vmatpush3.bf16.msra.mxu0 %v8745_v8  ;;  %7976 = vmatprep.subr.bf16.mxu1 %v8746_v6  ;;  %v8751_v8 = vld [vmem:[#allocation7 + $0x250] sm:$0xff]  }
 0x2ca   :  { %11660 = vst [vmem:[#allocation42_spill] sm:$0xff] %v10775_v11  ;;  %11667 = vst [vmem:[#allocation43_spill] sm:$0xff] %v10783_v37  ;;  %v11678_v7 = vunpack.c.h.bf16 %v11677_v4  ;;  %v2300_v3 = vmax.f32 %v2030_v12, %v2236_v49  ;;  %v2139_v54 = vadd.f32 %v2138_v24, %v11679_v27  ;;  %v2245_v40 = vpop.f32.mrf.mxu0  ;;  %v1937_v55 = vadd.f32 %v11683_v50, %v11682_v56  ;;  %v11684_v53 = vld [vmem:[#allocation160_spill] sm:$0xff]  ;;  %v11689_v49 = vld [vmem:[#allocation161_spill] sm:$0xff] }
 0x2cb   :  { %11676 = vst [vmem:[#allocation45_spill] sm:$0xff] %v10801_v23  ;;  %v2242_v39 = vadd.f32 %v2241_v57, %v11680_v22  ;;  %v11685_v31 = vunpack.c.l.bf16 %v11684_v53  ;;  %v11686_v1 = vld [vmem:[#allocation32_spill] sm:$0xff]  ;;  %v11690_v24 = vunpack.c.l.bf16 %v11689_v49  ;;  %v11691_v27 = vld [vmem:[#allocation150_spill] sm:$0xff]  ;;  %v11692_v57 = vld [vmem:[#allocation15_spill] sm:$0xff]  ;;  %8040 = vmatprep.subr.bf16.mxu0 %v8747_v35 }
 0x2cc   :  { %v10807_v30 = vadd.f32 %v10537_v0, %v11678_v7  ;;  %v11687_v0 = vunpack.c.h.bf16 %v11684_v53  ;;  %v11688_v7 = vld [vmem:[#allocation34_spill] sm:$0xff]  ;;  %v11693_v22 = vunpack.c.l.bf16 %v11692_v57  ;;  %v11694_v23 = vld [vmem:[#allocation151_spill] sm:$0xff]  ;;  %v11695_v56 = vld [vmem:[#allocation81_spill] sm:$0xff] }
 0x2cd   :  { %v2040_v4 = vadd.f32 %v11686_v1, %v11685_v31  ;;  %v10827_v29 = vadd.f32 %v11691_v27, %v11690_v24  ;;  %v11696_v50 = vld [vmem:[#allocation83_spill] sm:$0xff]  ;;  %v2302_v1 = vmax.f32 %v1933_v10, %v2139_v54  ;;  %v11700_v27 = vunpack.c.h.bf16 %v11689_v49  ;;  %v11701_v11 = vld [vmem:[#allocation156_spill] sm:$0xff]  ;;  %v8750_v10 = vld [vmem:[#allocation7 + $0xc8] sm:$0xff]  }
 0x2ce   :  { %v10822_v12 = vadd.f32 %v11688_v7, %v11687_v0  ;;  %v10832_v59 = vadd.f32 %v11694_v23, %v11693_v22  ;;  %v11697_v37 = vmax.f32 %v11695_v56, %v11696_v50  ;;  %v8748_v31 = vld [vmem:[#allocation7 + $0x90] sm:$0xff]   ;;  %v8749_v53 = vld [vmem:[#allocation7 + $0x218] sm:$0xff]   ;;  %v10839_v0 = vpop.f32.mrf.mxu1  ;;  %v2247_v7 = vpop.f32.mrf.mxu0  ;;  %v11702_v22 = vunpack.c.h.bf16 %v11692_v57  ;;  %v11703_v56 = vld [vmem:[#allocation157_spill] sm:$0xff] }
 0x2cf   :  { %11699 = vst [vmem:[#allocation48_spill] sm:$0xff] %v10839_v0  ;;  %v10845_v23 = vadd.f32 %v11701_v11, %v11700_v27  ;;  %v2304_v48 = vmax.f32 %v2036_v43, %v2242_v39  ;;  %v10853_v54 = vld [vmem:[#allocation6 + $0x350] sm:$0xff]  ;;  %v2277_v49 = vmax.f32 %v10698_v21, %v10807_v30  ;;  %v11705_v11 = vld [vmem:[#allocation88_spill] sm:$0xff]  ;;  %v11708_v57 = vunpack.c.h.bf16 %v10581_v18  ;;  %v11712_v30 = vld [vmem:[#allocation89_spill] sm:$0xff]  ;;  %7977 = vmatpush3.bf16.msra.mxu1 %v8748_v31 }
 0x2d0   :  { %v10837_v36 = vmax.f32 %v11697_v37, %v2300_v3  ;;  %v10850_v37 = vadd.f32 %v11703_v56, %v11702_v22  ;;  %v11704_v50 = vld [vmem:[#allocation86_spill] sm:$0xff]  ;;  %v11709_v43 = vunpack.c.h.bf16 %v10583_v38  ;;  %v2148_v35 = vpop.f32.mrf.mxu1  ;;  %v2251_v39 = vpop.f32.mrf.mxu0  ;;  %v10866_v56 = vld [vmem:[#allocation6 + $0x358] sm:$0xff]  ;;  %v11710_v3 = vunpack.c.h.bf16 %v10460_v52  ;;  %8041 = vmatpush3.bf16.msra.mxu0 %v8749_v53  ;;  %7978 = vmatprep.subr.bf16.mxu1 %v8750_v10 }
 0x2d1   :  { %v11706_v27 = vmax.f32 %v11704_v50, %v11705_v11  ;;  %v2141_v22 = vadd.f32 %v2140_v15, %v11708_v57  ;;  %v11711_v21 = vld [vmem:[#allocation87_spill] sm:$0xff]  ;;  %v11716_v15 = vunpack.c.l.bf16 %v10661_v13  ;;  %8042 = vmatprep.subr.bf16.mxu0 %v8751_v8  ;;  %v2384_v31 = vmax.f32 %v10531_v58, 0.0  ;;  %v11723_v53 = vld [vmem:[#allocation90_spill] sm:$0xff] }
 0x2d2   :  { %11698 = vst [vmem:[#allocation47_spill] sm:$0xff] %v10837_v36  ;;  %v2244_v6 = vadd.f32 %v2243_v25, %v11709_v43  ;;  %v2115_v36 = vadd.f32 %v10605_v46, %v11710_v3  ;;  %v11713_v0 = vmax.f32 %v11711_v21, %v11712_v30  ;;  %v11717_v25 = vld [vmem:[#allocation164_spill] sm:$0xff]  ;;  %v8752_v3 = vld [vmem:[#allocation7 + $0x88] sm:$0xff]   ;;  %v2253_v43 = vpop.f32.mrf.mxu0 }
 0x2d3   :  { %v10860_v24 = vmax.f32 %v11706_v27, %v2302_v1  ;;  %v11715_v1 = vunpack.c.l.bf16 %v10659_v5  ;;  %v2246_v38 = vadd.f32 %v2245_v40, %v11716_v15  ;;  %v11718_v11 = vunpack.c.l.bf16 %v11717_v25  ;;  %v11719_v27 = vld [vmem:[#allocation162_spill] sm:$0xff]  ;;  %v11722_v40 = vld [vmem:[#allocation163_spill] sm:$0xff]  ;;  %7979 = vmatpush3.bf16.msra.mxu1 %v8752_v3 }
 0x2d4   :  { %v10874_v50 = vmax.f32 %v11713_v0, %v2304_v48  ;;  %v2303_v52 = vmax.f32 %v10791_v42, %v2141_v22  ;;  %v2305_v46 = vmax.f32 %v10796_v34, %v2244_v6  ;;  %v8753_v0 = vld [vmem:[#allocation7 + $0x210] sm:$0xff]   ;;  %v2150_v48 = vpop.f32.mrf.mxu1  ;;  %v8754_v42 = vld [vmem:[#allocation7 + $0xc0] sm:$0xff]   ;;  %v8755_v22 = vld [vmem:[#allocation7 + $0x248] sm:$0xff]   ;;  %v2255_v8 = vpop.f32.mrf.mxu0  ;;  %v2283_v34 = vmax.f32 %v10752_v16, %v2115_v36 }
 0x2d5   :  { %11707 = vst [vmem:[#allocation50_spill] sm:$0xff] %v10860_v24  ;;  %v2143_v18 = vadd.f32 %v2142_v60, %v11715_v1  ;;  %v10883_v57 = vadd.f32 %v11719_v27, %v11718_v11  ;;  %v11720_v60 = vld [vmem:[#allocation165_spill] sm:$0xff]  ;;  %v2308_v15 = vmax.f32 %v2040_v4, %v2246_v38  ;;  %v11724_v6 = vld [vmem:[#allocation92_spill] sm:$0xff]  ;;  %v11726_v5 = vld [vmem:[#allocation91_spill] sm:$0xff]  ;;  %8043 = vmatpush3.bf16.msra.mxu0 %v8753_v0  ;;  %v11740_v16 = vunpack.c.l.bf16 %v10684_v32 }
 0x2d6   :  { %11714 = vst [vmem:[#allocation52_spill] sm:$0xff] %v10874_v50  ;;  %v11721_v21 = vunpack.c.l.bf16 %v11720_v60  ;;  %v11725_v11 = vmax.f32 %v11723_v53, %v11724_v6  ;;  %v11727_v50 = vld [vmem:[#allocation93_spill] sm:$0xff]  ;;  %v2152_v10 = vpop.f32.mrf.mxu1  ;;  %v11733_v53 = vld [vmem:[#allocation94_spill] sm:$0xff]  ;;  %7980 = vmatprep.subr.bf16.mxu1 %v8754_v42  ;;  %8044 = vmatprep.subr.bf16.mxu0 %v8755_v22  ;;  %v11743_v3 = vunpack.c.h.bf16 %v10675_v28 }
 0x2d7   :  { %v2306_v1 = vmax.f32 %v1937_v55, %v2143_v18  ;;  %v11728_v24 = vmax.f32 %v11726_v5, %v11727_v50  ;;  %v11729_v55 = vunpack.c.h.bf16 %v10661_v13  ;;  %v11730_v18 = vld [vmem:[#allocation14_spill] sm:$0xff]  ;;  %v11731_v38 = vld [vmem:[#allocation177_spill] sm:$0xff]  ;;  %v11736_v50 = vld [vmem:[#allocation95_spill] sm:$0xff]  ;;  %v2252_v36 = vadd.f32 %v2251_v39, %v11740_v16 }
 0x2d8   :  { %v10891_v30 = vadd.f32 %v11722_v40, %v11721_v21  ;;  %v10898_v27 = vmax.f32 %v11725_v11, %v2303_v52  ;;  %v11732_v40 = vmax.f32 %v11730_v18, %v11731_v38  ;;  %v11734_v52 = vld [vmem:[#allocation96_spill] sm:$0xff]  ;;  %v8757_v18 = vld [vmem:[#allocation7 + $0x208] sm:$0xff]   ;;  %v2257_v38 = vpop.f32.mrf.mxu0  ;;  %v2151_v0 = vadd.f32 %v2150_v48, %v11743_v3 }
 0x2d9   :  { %v10903_v21 = vmax.f32 %v11728_v24, %v2305_v46  ;;  %v10907_v4 = vadd.f32 %v2247_v7, %v11729_v55  ;;  %v11735_v6 = vmax.f32 %v11733_v53, %v11734_v52  ;;  %v11737_v24 = vld [vmem:[#allocation97_spill] sm:$0xff]  ;;  %v11739_v7 = vunpack.c.l.bf16 %v10675_v28  ;;  %v11742_v53 = vld [vmem:[#allocation166_spill] sm:$0xff]  ;;  %v8758_v39 = vld [vmem:[#allocation7 + $0x1f8] sm:$0xff]   ;;  %8045 = vmatpush3.bf16.msra.mxu0 %v8757_v18 }
 0x2da   :  { %v2333_v58 = vmax.f32 %v11732_v40, %v2277_v49  ;;  %v11738_v46 = vmax.f32 %v11736_v50, %v11737_v24  ;;  %v8756_v55 = vld [vmem:[#allocation7 + $0x80] sm:$0xff]   ;;  %v1826_v40 = vunpack.c.h.bf16 %v10853_v54  ;;  %v11745_v16 = vunpack.c.l.bf16 %v10747_v63  ;;  %v2261_v22 = vpop.f32.mrf.mxu0  ;;  %v11761_v18 = vld [vmem:[#allocation167_spill] sm:$0xff] }
 0x2db   :  { %v10916_v11 = vmax.f32 %v11735_v6, %v2306_v1  ;;  %v2149_v49 = vadd.f32 %v2148_v35, %v11739_v7  ;;  %v2154_v1 = vpop.f32.mrf.mxu1  ;;  %v11744_v35 = vunpack.c.h.bf16 %v10684_v32  ;;  %v8759_v50 = vld [vmem:[#allocation7 + $0x240] sm:$0xff]   ;;  %v11746_v28 = vmax.f32 %v10377_v26, %v10483_v45  ;;  %7981 = vmatpush3.bf16.msra.mxu1 %v8756_v55  ;;  %v8760_v45 = vld [vmem:[#allocation7 + $0x1b8] sm:$0xff]  }
 0x2dc   :  { %v10921_v5 = vmax.f32 %v11738_v46, %v2308_v15  ;;  %v11741_v15 = vunpack.c.h.bf16 %v11717_v25  ;;  %v2440_v46 = vpack.c.bf16 %v2384_v31, %v2384_v31  ;;  %v2312_v25 = vmax.f32 %v10832_v59, %v2252_v36  ;;  %v11747_v59 = vld [vmem:[#allocation100_spill] sm:$0xff]  ;;  %v11750_v3 = vld [vmem:[#allocation101_spill] sm:$0xff]  ;;  %8010 = vmatprep.subr.bf16.mxu1 %v8758_v39  ;;  %8046 = vmatprep.subr.bf16.mxu0 %v8759_v50  ;;  %v8762_v50 = vld [vmem:[#allocation7 + $0x1f0] sm:$0xff]  }
 0x2dd   :  { %v2254_v6 = vadd.f32 %v2253_v43, %v11744_v35  ;;  %v2310_v7 = vmax.f32 %v10827_v29, %v2149_v49  ;;  %v2158_v42 = vpop.f32.mrf.mxu1  ;;  %v10949_v32 = vmax.f32 %v11746_v28, %v2283_v34  ;;  %v2311_v48 = vmax.f32 %v10845_v23, %v2151_v0  ;;  %v11748_v49 = vld [vmem:[#allocation102_spill] sm:$0xff]  ;;  %v11751_v35 = vld [vmem:[#allocation103_spill] sm:$0xff]  ;;  %v8761_v23 = vld [vmem:[#allocation7 + $0x200] sm:$0xff]  }
 0x2de   :  { %v10933_v52 = vadd.f32 %v11742_v53, %v11741_v15  ;;  %v2153_v15 = vadd.f32 %v2152_v10, %v11745_v16  ;;  %v10944_v53 = vld [vmem:[#allocation6 + $0x370] sm:$0xff]  ;;  %v2389_v31 = vmax.f32 %v2333_v58, 0.0  ;;  %v2390_v29 = vmax.f32 %v10591_v47, 0.0  ;;  %v11753_v34 = vld [vmem:[#allocation104_spill] sm:$0xff]  ;;  %3655 = vmatmul.mubr.bf16.vlgmr.msra.gmra.mxu1 %v2440_v46  ;;  %8047 = vmatpush3.bf16.msra.mxu0 %v8761_v23 }
 0x2df   :  { %v2313_v43 = vmax.f32 %v10850_v37, %v2254_v6  ;;  %v11749_v36 = vmax.f32 %v11747_v59, %v11748_v49  ;;  %v11752_v16 = vmax.f32 %v11750_v3, %v11751_v35  ;;  %v2263_v37 = vpop.f32.mrf.mxu0  ;;  %v11754_v58 = vld [vmem:[#allocation106_spill] sm:$0xff]  ;;  %v11756_v6 = vld [vmem:[#allocation105_spill] sm:$0xff]  ;;  %v11760_v55 = vunpack.c.h.bf16 %v11720_v60  ;;  %v11764_v3 = vld [vmem:[#allocation171_spill] sm:$0xff]  ;;  %8011 = vmatpush3.bf16.msra.mxu1 %v8760_v45 }
 0x2e0   :  { %v2314_v26 = vmax.f32 %v10883_v57, %v2153_v15  ;;  %v11755_v47 = vmax.f32 %v11753_v34, %v11754_v58  ;;  %v1833_v57 = vunpack.c.l.bf16 %v10944_v53  ;;  %v11766_v34 = vld [vmem:[#allocation111_spill] sm:$0xff]  ;;  %v8766_v45 = vld [vmem:[#allocation7 + $0x1e8] sm:$0xff]   ;;  %8012 = vmatprep.subr.bf16.mxu1 %v8762_v50 }
 0x2e1   :  { %v10957_v10 = vmax.f32 %v11749_v36, %v2310_v7  ;;  %v10962_v13 = vmax.f32 %v11752_v16, %v2312_v25  ;;  %v11757_v7 = vld [vmem:[#allocation107_spill] sm:$0xff]  ;;  %v11759_v25 = vunpack.c.l.bf16 %v10760_v20  ;;  %v10981_v15 = vadd.f32 %v11761_v18, %v11760_v55  ;;  %v11762_v36 = vld [vmem:[#allocation168_spill] sm:$0xff]  ;;  %v11771_v18 = vld [vmem:[#allocation169_spill] sm:$0xff] }
 0x2e2   :  { %v10968_v0 = vmax.f32 %v11755_v47, %v2311_v48  ;;  %v11758_v28 = vmax.f32 %v11756_v6, %v11757_v7  ;;  %v11763_v48 = vunpack.c.l.bf16 %v11762_v36  ;;  %v11765_v16 = vld [vmem:[#allocation108_spill] sm:$0xff]  ;;  %v2160_v47 = vpop.f32.mrf.mxu1  ;;  %v11769_v6 = vunpack.c.h.bf16 %v10760_v20  ;;  %v8767_v23 = vld [vmem:[#allocation7 + $0x370] sm:$0xff]  }
 0x2e3   :  { %v2256_v49 = vadd.f32 %v2255_v8, %v11759_v25  ;;  %v11768_v8 = vunpack.c.h.bf16 %v10747_v63  ;;  %v8763_v53 = vld [vmem:[#allocation7 + $0x378] sm:$0xff]   ;;  %v11770_v25 = vunpack.c.l.bf16 %v10853_v54  ;;  %v2395_v20 = vmax.f32 %v10949_v32, 0.0 }
 0x2e4   :  { %v10973_v59 = vmax.f32 %v11758_v28, %v2313_v43  ;;  %v1953_v35 = vadd.f32 %v11764_v3, %v11763_v48  ;;  %v11767_v43 = vmax.f32 %v11765_v16, %v11766_v34  ;;  %v10998_v7 = vadd.f32 %v2257_v38, %v11769_v6  ;;  %v11773_v63 = vld [vmem:[#allocation172_spill] sm:$0xff]  ;;  %v2265_v38 = vpop.f32.mrf.mxu0  ;;  %8076 = vmatprep.subr.bf16.mxu0 %v8763_v53  ;;  %v11785_v16 = vld [vmem:[#allocation25_spill] sm:$0xff] }
 0x2e5   :  { %v10993_v39 = vadd.f32 %v2154_v1, %v11768_v8  ;;  %v2316_v60 = vmax.f32 %v10891_v30, %v2256_v49  ;;  %v2445_v28 = vpack.c.bf16 %v2389_v31, %v2389_v31  ;;  %v2159_v55 = vadd.f32 %v2158_v42, %v11770_v25  ;;  %v8764_v30 = vld [vmem:[#allocation7 + $0x1b0] sm:$0xff]   ;;  %v8765_v46 = vld [vmem:[#allocation7 + $0x338] sm:$0xff]   ;;  %v11774_v31 = vld [vmem:[#allocation109_spill] sm:$0xff] }
 0x2e6   :  { %v10989_v58 = vmax.f32 %v11767_v43, %v2314_v26  ;;  %v1724_v26 = vld [vmem:[#allocation6 + $0x378] sm:$0xff]  ;;  %v11772_v48 = vunpack.c.l.bf16 %v11771_v18  ;;  %v2446_v3 = vpack.c.bf16 %v2390_v29, %v2390_v29  ;;  %v11777_v8 = vunpack.c.l.bf16 %v10866_v56  ;;  %8013 = vmatpush3.bf16.msra.mxu1 %v8764_v30 }
 0x2e7   :  { %v11775_v49 = vld [vmem:[#allocation112_spill] sm:$0xff]  ;;  %3926 = vmatprep.mubr.bf16.mxu1 %v2445_v28  ;;  %v2318_v29 = vmax.f32 %v1953_v35, %v2159_v55  ;;  %v11778_v25 = vunpack.c.h.bf16 %v11762_v36  ;;  %v11782_v35 = vld [vmem:[#allocation123_spill] sm:$0xff]  ;;  %8014 = vmatprep.subr.bf16.mxu1 %v8766_v45 }
 0x2e8   :  { %v2056_v1 = vadd.f32 %v11773_v63, %v11772_v48  ;;  %v11776_v34 = vmax.f32 %v11774_v31, %v11775_v49  ;;  %v2262_v6 = vadd.f32 %v2261_v22, %v11777_v8  ;;  %v11779_v48 = vld [vmem:[#allocation174_spill] sm:$0xff]  ;;  %v2162_v63 = vpop.f32.mrf.mxu1  ;;  %v1835_v31 = vunpack.c.l.bf16 %v1724_v26  ;;  %v11784_v8 = vld [vmem:[#allocation175_spill] sm:$0xff]  ;;  %v11786_v36 = vld [vmem:[#allocation116_spill] sm:$0xff]  ;;  %4159 = vmatmul.mubr.bf16.vlgmr.msra.gmra.mxu0 %v2446_v3 }
 0x2e9   :  { %v1955_v32 = vadd.f32 %v11779_v48, %v11778_v25  ;;  %v1836_v49 = vunpack.c.h.bf16 %v1724_v26  ;;  %v11783_v22 = vunpack.c.h.bf16 %v11771_v18  ;;  %v11787_v24 = vmax.f32 %v11785_v16, %v11786_v36  ;;  %8077 = vmatpush3.bf16.msra.mxu0 %v8765_v46  ;;  %v2267_v26 = vpop.f32.mrf.mxu0  ;;  %v8768_v48 = vld [vmem:[#allocation7 + $0x1a8] sm:$0xff]   ;;  %v11798_v46 = vld [vmem:[#allocation179_spill] sm:$0xff] }
 0x2ea   :  { %v11011_v42 = vmax.f32 %v11776_v34, %v2316_v60  ;;  %v2161_v60 = vadd.f32 %v2160_v47, %v1826_v40  ;;  %v11780_v34 = vld [vmem:[#allocation113_spill] sm:$0xff]  ;;  %v2320_v50 = vmax.f32 %v2056_v1, %v2262_v6  ;;  %v11788_v40 = vunpack.c.h.bf16 %v10866_v56  ;;  %v11789_v18 = vld [vmem:[#allocation170_spill] sm:$0xff]  ;;  %8078 = vmatprep.subr.bf16.mxu0 %v8767_v23  ;;  %v11799_v6 = vld [vmem:[#allocation27_spill] sm:$0xff]  ;;  %8015 = vmatpush3.bf16.msra.mxu1 %v8768_v48 }
 0x2eb   :  { %v11781_v28 = vunpack.c.h.bf16 %v11780_v34  ;;  %v2058_v43 = vadd.f32 %v11784_v8, %v11783_v22  ;;  %v11031_v25 = vmax.f32 %v11787_v24, %v2318_v29  ;;  %v2451_v47 = vpack.c.bf16 %v2395_v20, %v2395_v20  ;;  %v8769_v34 = vld [vmem:[#allocation7 + $0x330] sm:$0xff]   ;;  %v11793_v16 = vld [vmem:[#allocation117_spill] sm:$0xff] }
 0x2ec   :  { %v2319_v54 = vmax.f32 %v1955_v32, %v2161_v60  ;;  %v2264_v53 = vadd.f32 %v2263_v37, %v11788_v40  ;;  %v11792_v8 = vld [vmem:[#allocation26_spill] sm:$0xff]  ;;  %v2163_v1 = vadd.f32 %v2162_v63, %v1833_v57  ;;  %v8770_v56 = vld [vmem:[#allocation7 + $0x1e0] sm:$0xff]  }
 0x2ed   :  { %v1610_v55 = vadd.f32 %v11782_v35, %v11781_v28  ;;  %v11790_v28 = vunpack.c.l.bf16 %v11789_v18  ;;  %v11791_v35 = vld [vmem:[#allocation178_spill] sm:$0xff]  ;;  %v11794_v24 = vmax.f32 %v11792_v8, %v11793_v16  ;;  %v11796_v3 = vld [vmem:[#allocation173_spill] sm:$0xff]  ;;  %4430 = vmatprep.mubr.bf16.mxu0 %v2451_v47  ;;  %v2266_v18 = vadd.f32 %v2265_v38, %v1835_v31  ;;  %8079 = vmatpush3.bf16.msra.mxu0 %v8769_v34  ;;  %v11811_v47 = vld [vmem:[#allocation120_spill] sm:$0xff] }
 0x2ee   :  { %v8771_v37 = vld [vmem:[#allocation7 + $0x368] sm:$0xff]   ;;  %v11797_v30 = vunpack.c.l.bf16 %v11796_v3  ;;  %v2321_v40 = vmax.f32 %v2058_v43, %v2264_v53  ;;  %v11805_v45 = vunpack.c.h.bf16 %v11796_v3  ;;  %v2268_v16 = vadd.f32 %v2267_v26, %v1836_v49  ;;  %v8772_v43 = vld [vmem:[#allocation7 + $0x1a0] sm:$0xff]   ;;  %8016 = vmatprep.subr.bf16.mxu1 %v8770_v56  ;;  %v8774_v49 = vld [vmem:[#allocation7 + $0x1d8] sm:$0xff]  }
 0x2ef   :  { %v1957_v22 = vadd.f32 %v11791_v35, %v11790_v28  ;;  %v11041_v29 = vmax.f32 %v11794_v24, %v2320_v50  ;;  %v11800_v32 = vld [vmem:[#allocation118_spill] sm:$0xff]  ;;  %v11804_v35 = vld [vmem:[#allocation36_spill] sm:$0xff]  ;;  %v11806_v23 = vld [vmem:[#allocation181_spill] sm:$0xff]  ;;  %8080 = vmatprep.subr.bf16.mxu0 %v8771_v37  ;;  %8017 = vmatpush3.bf16.msra.mxu1 %v8772_v43 }
 0x2f0   :  { %v2060_v20 = vadd.f32 %v11798_v46, %v11797_v30  ;;  %v11801_v60 = vmax.f32 %v11799_v6, %v11800_v32  ;;  %v11802_v28 = vld [vmem:[#allocation110_spill] sm:$0xff]  ;;  %v2062_v63 = vadd.f32 %v11806_v23, %v11805_v45  ;;  %v11807_v24 = vld [vmem:[#allocation28_spill] sm:$0xff]  ;;  %v11808_v30 = vld [vmem:[#allocation119_spill] sm:$0xff]  ;;  %8018 = vmatprep.subr.bf16.mxu1 %v8774_v49 }
 0x2f1   :  { %11795 = vst [vmem:[#allocation127_spill] sm:$0xff] %v11041_v29  ;;  %v11803_v50 = vunpack.c.h.bf16 %v11802_v28  ;;  %v2322_v8 = vmax.f32 %v1957_v22, %v2163_v1  ;;  %v11809_v46 = vmax.f32 %v11807_v24, %v11808_v30  ;;  %v8773_v38 = vld [vmem:[#allocation7 + $0x328] sm:$0xff]   ;;  %v8775_v26 = vld [vmem:[#allocation7 + $0x360] sm:$0xff]   ;;  %v11813_v22 = vld [vmem:[#allocation31_spill] sm:$0xff] }
 0x2f2   :  { %v11049_v36 = vmax.f32 %v11801_v60, %v2319_v54  ;;  %v2324_v54 = vmax.f32 %v2060_v20, %v2266_v18  ;;  %v11810_v53 = vld [vmem:[#allocation30_spill] sm:$0xff]  ;;  %v2325_v3 = vmax.f32 %v2062_v63, %v2268_v16  ;;  %v11814_v1 = vld [vmem:[#allocation121_spill] sm:$0xff]  ;;  %8081 = vmatpush3.bf16.msra.mxu0 %v8773_v38  ;;  %v8779_v18 = vld [vmem:[#allocation7 + $0x358] sm:$0xff]   ;;  %v2388_v16 = vmax.f32 %v10566_v9, 0.0 }
 0x2f3   :  { %v1404_v57 = vadd.f32 %v11804_v35, %v11803_v50  ;;  %v11060_v29 = vmax.f32 %v11809_v46, %v2321_v40  ;;  %v11812_v6 = vmax.f32 %v11810_v53, %v11811_v47  ;;  %v11815_v60 = vmax.f32 %v11813_v22, %v11814_v1  ;;  %v8777_v34 = vld [vmem:[#allocation7 + $0x320] sm:$0xff]   ;;  %8082 = vmatprep.subr.bf16.mxu0 %v8775_v26  ;;  %v8778_v20 = vld [vmem:[#allocation7 + $0x1d0] sm:$0xff]   ;;  %v8781_v37 = vld [vmem:[#allocation7 + $0x318] sm:$0xff]  }
 0x2f4   :  { %v8780_v56 = vld [vmem:[#allocation7 + $0x190] sm:$0xff]   ;;  %v8782_v28 = vld [vmem:[#allocation7 + $0x1c8] sm:$0xff]   ;;  %v8786_v45 = vld [vmem:[#allocation7 + $0x1c0] sm:$0xff]   ;;  %v2393_v46 = vmax.f32 %v10612_v62, 0.0  ;;  %v2444_v43 = vpack.c.bf16 %v2388_v16, %v2388_v16  ;;  %v2394_v53 = vmax.f32 %v10629_v19, 0.0  ;;  %v2399_v9 = vmax.f32 %v10689_v44, 0.0 }
 0x2f5   :  { %v1667_v31 = vmax.f32 %v1404_v57, %v1610_v55  ;;  %v11065_v32 = vmax.f32 %v11812_v6, %v2322_v8  ;;  %v11070_v40 = vmax.f32 %v11815_v60, %v2324_v54  ;;  %v8776_v55 = vld [vmem:[#allocation7 + $0x198] sm:$0xff]   ;;  %v8783_v50 = vld [vmem:[#allocation7 + $0x350] sm:$0xff]   ;;  %v8784_v35 = vld [vmem:[#allocation7 + $0x188] sm:$0xff]  }
 0x2f6   :  { %8019 = vmatpush3.bf16.msra.mxu1 %v8776_v55  ;;  %8083 = vmatpush3.bf16.msra.mxu0 %v8777_v34  ;;  %v8785_v57 = vld [vmem:[#allocation7 + $0x310] sm:$0xff]   ;;  %v8787_v23 = vld [vmem:[#allocation7 + $0x348] sm:$0xff]   ;;  %v8788_v63 = vld [vmem:[#allocation7 + $0x180] sm:$0xff]   ;;  %v2449_v47 = vpack.c.bf16 %v2393_v46, %v2393_v46  ;;  %v2450_v49 = vpack.c.bf16 %v2394_v53, %v2394_v53  ;;  %v2455_v1 = vpack.c.bf16 %v2399_v9, %v2399_v9 }
 0x2f7   :  { %v11072_v48 = vmax.f32 %v1667_v31, %v2325_v3  ;;  %8020 = vmatprep.subr.bf16.mxu1 %v8778_v20  ;;  %8084 = vmatprep.subr.bf16.mxu0 %v8779_v18  ;;  %v8789_v8 = vld [vmem:[#allocation7 + $0x308] sm:$0xff]   ;;  %v8790_v24 = vld [vmem:[#allocation7 + $0x2f8] sm:$0xff]   ;;  %v8791_v30 = vld [vmem:[#allocation7 + $0x340] sm:$0xff]  }
 0x2f8   :  { %v8792_v54 = vld [vmem:[#allocation7 + $0x2b8] sm:$0xff]   ;;  %v8793_v38 = vld [vmem:[#allocation7 + $0x300] sm:$0xff]   ;;  %v8794_v31 = vld [vmem:[#allocation7 + $0x2f0] sm:$0xff]  }
 0x2f9   :  { %v8795_v6 = vld [vmem:[#allocation7 + $0x478] sm:$0xff]   ;;  %v8796_v3 = vld [vmem:[#allocation7 + $0x2b0] sm:$0xff]   ;;  %v8798_v26 = vld [vmem:[#allocation7 + $0x2e8] sm:$0xff]  }
 0x2fa   :  { %8021 = vmatpush3.bf16.msra.mxu1 %v8780_v56  ;;  %8085 = vmatpush3.bf16.msra.mxu0 %v8781_v37  ;;  %v8797_v62 = vld [vmem:[#allocation7 + $0x438] sm:$0xff]   ;;  %v8799_v22 = vld [vmem:[#allocation7 + $0x470] sm:$0xff]   ;;  %v8800_v60 = vld [vmem:[#allocation7 + $0x2a8] sm:$0xff]  }
 0x2fb   :  { %8022 = vmatprep.subr.bf16.mxu1 %v8782_v28  ;;  %8086 = vmatprep.subr.bf16.mxu0 %v8783_v50  ;;  %v8801_v19 = vld [vmem:[#allocation7 + $0x430] sm:$0xff]   ;;  %v8802_v55 = vld [vmem:[#allocation7 + $0x2e0] sm:$0xff]   ;;  %v8803_v44 = vld [vmem:[#allocation7 + $0x468] sm:$0xff]  }
 0x2fc   :  { %v8804_v34 = vld [vmem:[#allocation7 + $0x2a0] sm:$0xff]   ;;  %v8805_v20 = vld [vmem:[#allocation7 + $0x428] sm:$0xff]   ;;  %v8806_v18 = vld [vmem:[#allocation7 + $0x2d8] sm:$0xff]  }
 0x2fd   :  { %v9144_v56 = vld [vmem:[#allocation6 + $0x238] sm:$0xff]  ;;  %v8807_v28 = vld [vmem:[#allocation7 + $0x460] sm:$0xff]   ;;  %v9147_v16 = vld [vmem:[#allocation6 + $0x68] sm:$0xff] }
 0x2fe   :  { %8023 = vmatpush3.bf16.msra.mxu1 %v8784_v35  ;;  %8087 = vmatpush3.bf16.msra.mxu0 %v8785_v57  ;;  %v1756_v37 = vunpack.c.h.bf16 %v9144_v56  ;;  %v9145_v50 = vld [vmem:[#allocation6 + $0x78] sm:$0xff]  ;;  %v9146_v57 = vld [vmem:[#allocation6 + $0x228] sm:$0xff]  ;;  %v9149_v9 = vld [vmem:[#allocation6 + $0xb0] sm:$0xff] }
 0x2ff   :  { %8024 = vmatprep.subr.bf16.mxu1 %v8786_v45  ;;  %8088 = vmatprep.subr.bf16.mxu0 %v8787_v23  ;;  %v977_v35 = vunpack.c.h.bf16 %v9145_v50  ;;  %v1752_v45 = vunpack.c.h.bf16 %v9146_v57  ;;  %v8808_v23 = vld [vmem:[#allocation7 + $0x298] sm:$0xff]   ;;  %v11817_v53 = vld [vmem:[#allocation126_spill] sm:$0xff]  ;;  %v8818_v57 = vld [vmem:[#allocation7 + $0x2c0] sm:$0xff]  }
 0x300   :  { %v8811_v46 = vld [vmem:[#allocation7 + $0x458] sm:$0xff]   ;;  %v11819_v56 = vld [vmem:[#allocation70_spill] sm:$0xff] }
 0x302   :  { %8025 = vmatpush3.bf16.msra.mxu1 %v8788_v63  ;;  %8089 = vmatpush3.bf16.msra.mxu0 %v8789_v8  ;;  %v8809_v63 = vld [vmem:[#allocation7 + $0x420] sm:$0xff]   ;;  %v8810_v8 = vld [vmem:[#allocation7 + $0x2d0] sm:$0xff]  }
 0x303   :  { %8054 = vmatprep.subr.bf16.mxu1 %v8790_v24  ;;  %8090 = vmatprep.subr.bf16.mxu0 %v8791_v30  ;;  %v973_v24 = vunpack.c.h.bf16 %v9147_v16  ;;  %v2218_v30 = vadd.f32 %v10607_v41, %v1756_v37 }
 0x305   :  { %3927 = vmatmul.mubr.bf16.vlgmr.msra.gmra.mxu1 %v2444_v43 }
 0x306   :  { %8055 = vmatpush3.bf16.msra.mxu1 %v8792_v54  ;;  %4198 = vmatprep.mubr.bf16.mxu1 %v2449_v47  ;;  %v9148_v54 = vld [vmem:[#allocation6 + $0x270] sm:$0xff]  ;;  %v2012_v47 = vadd.f32 %v11817_v53, %v1752_v45  ;;  %v8824_v53 = vld [vmem:[#allocation7 + $0x3b8] sm:$0xff]  }
 0x307   :  { %8091 = vmatpush3.bf16.msra.mxu0 %v8793_v38  ;;  %8056 = vmatprep.subr.bf16.mxu1 %v8794_v31  ;;  %v1770_v43 = vunpack.c.h.bf16 %v9148_v54  ;;  %v11816_v38 = vld [vmem:[#allocation57_spill] sm:$0xff]  ;;  %v8822_v54 = vld [vmem:[#allocation7 + $0x3f8] sm:$0xff]  }
 0x308   :  { %8120 = vmatprep.subr.bf16.mxu0 %v8795_v6  ;;  %v1560_v31 = vadd.f32 %v11816_v38, %v977_v35  ;;  %v8812_v6 = vld [vmem:[#allocation7 + $0x290] sm:$0xff]  }
 0x309   :  { %v8817_v35 = vld [vmem:[#allocation7 + $0x410] sm:$0xff]  }
 0x30a   :  { %4431 = vmatmul.mubr.bf16.vlgmr.msra.gmra.mxu0 %v2450_v49  ;;  %8057 = vmatpush3.bf16.msra.mxu1 %v8796_v3  ;;  %v991_v3 = vunpack.c.h.bf16 %v9149_v9  ;;  %v8826_v9 = vld [vmem:[#allocation7 + $0x3f0] sm:$0xff]  }
 0x30b   :  { %8121 = vmatpush3.bf16.msra.mxu0 %v8797_v62  ;;  %4702 = vmatprep.mubr.bf16.mxu0 %v2455_v1  ;;  %v9150_v62 = vld [vmem:[#allocation6 + $0x260] sm:$0xff] }
 0x30c   :  { %8058 = vmatprep.subr.bf16.mxu1 %v8798_v26  ;;  %8122 = vmatprep.subr.bf16.mxu0 %v8799_v22  ;;  %v1766_v49 = vunpack.c.h.bf16 %v9150_v62  ;;  %v8813_v26 = vld [vmem:[#allocation7 + $0x418] sm:$0xff]   ;;  %v8814_v22 = vld [vmem:[#allocation7 + $0x2c8] sm:$0xff]   ;;  %v1467_v37 = vadd.f32 %v11819_v56, %v991_v3  ;;  %v2398_v3 = vmax.f32 %v10666_v61, 0.0  ;;  %v8833_v61 = vld [vmem:[#allocation7 + $0x530] sm:$0xff]  }
 0x30d   :  { %v11818_v1 = vld [vmem:[#allocation16_spill] sm:$0xff] }
 0x30e   :  { %8059 = vmatpush3.bf16.msra.mxu1 %v8800_v60  ;;  %v1354_v41 = vadd.f32 %v11818_v1, %v973_v24  ;;  %v2285_v60 = vmax.f32 %v2012_v47, %v2218_v30  ;;  %v8820_v24 = vld [vmem:[#allocation7 + $0x280] sm:$0xff]   ;;  %v2392_v30 = vmax.f32 %v10596_v14, 0.0  ;;  %v8827_v14 = vld [vmem:[#allocation7 + $0x578] sm:$0xff]   ;;  %v2454_v1 = vpack.c.bf16 %v2398_v3, %v2398_v3  ;;  %v8858_v3 = vld [vmem:[#allocation7 + $0x4f0] sm:$0xff]  }
 0x30f   :  { %8123 = vmatpush3.bf16.msra.mxu0 %v8801_v19  ;;  %8060 = vmatprep.subr.bf16.mxu1 %v8802_v55  ;;  %v8815_v19 = vld [vmem:[#allocation7 + $0x450] sm:$0xff]   ;;  %v9151_v55 = vld [vmem:[#allocation6 + $0xa0] sm:$0xff]  ;;  %v8838_v56 = vld [vmem:[#allocation7 + $0x3d8] sm:$0xff]  }
 0x310   :  { %8124 = vmatprep.subr.bf16.mxu0 %v8803_v44  ;;  %v987_v44 = vunpack.c.h.bf16 %v9151_v55  ;;  %v2448_v47 = vpack.c.bf16 %v2392_v30, %v2392_v30  ;;  %v8832_v55 = vld [vmem:[#allocation7 + $0x3a8] sm:$0xff]  }
 0x311   :  { %v8851_v30 = vld [vmem:[#allocation7 + $0x548] sm:$0xff]  }
 0x312   :  { %8061 = vmatpush3.bf16.msra.mxu1 %v8804_v34  ;;  %v2125_v34 = vadd.f32 %v10655_v51, %v1770_v43  ;;  %v8823_v43 = vld [vmem:[#allocation7 + $0x440] sm:$0xff]  }
 0x313   :  { %8125 = vmatpush3.bf16.msra.mxu0 %v8805_v20  ;;  %8062 = vmatprep.subr.bf16.mxu1 %v8806_v18  ;;  %v1627_v20 = vmax.f32 %v1354_v41, %v1560_v31  ;;  %v8816_v18 = vld [vmem:[#allocation7 + $0x288] sm:$0xff]  }
 0x314   :  { %8126 = vmatprep.subr.bf16.mxu0 %v8807_v28  ;;  %v11820_v28 = vld [vmem:[#allocation133_spill] sm:$0xff] }
 0x315   :  { %v1919_v50 = vadd.f32 %v11820_v28, %v1766_v49  ;;  %v2341_v45 = vmax.f32 %v1627_v20, %v2285_v60  ;;  %v8830_v41 = vld [vmem:[#allocation7 + $0x3e8] sm:$0xff]   ;;  %v8831_v60 = vld [vmem:[#allocation7 + $0x570] sm:$0xff]   ;;  %v8836_v20 = vld [vmem:[#allocation7 + $0x3a0] sm:$0xff]  }
 0x316   :  { %8063 = vmatpush3.bf16.msra.mxu1 %v8808_v23  ;;  %v8819_v23 = vld [vmem:[#allocation7 + $0x448] sm:$0xff]   ;;  %v8840_v28 = vld [vmem:[#allocation7 + $0x398] sm:$0xff]  }
 0x317   :  { %8127 = vmatpush3.bf16.msra.mxu0 %v8809_v63  ;;  %8064 = vmatprep.subr.bf16.mxu1 %v8810_v8  ;;  %v11821_v63 = vld [vmem:[#allocation17_spill] sm:$0xff]  ;;  %v2291_v16 = vmax.f32 %v1919_v50, %v2125_v34  ;;  %v2397_v38 = vmax.f32 %v2341_v45, 0.0  ;;  %v8844_v45 = vld [vmem:[#allocation7 + $0x390] sm:$0xff]  }
 0x318   :  { %8128 = vmatprep.subr.bf16.mxu0 %v8811_v46  ;;  %v1261_v8 = vadd.f32 %v11821_v63, %v987_v44  ;;  %v8821_v46 = vld [vmem:[#allocation7 + $0x408] sm:$0xff]   ;;  %v8834_v44 = vld [vmem:[#allocation7 + $0x3e0] sm:$0xff]  }
 0x319   :  { %v2453_v62 = vpack.c.bf16 %v2397_v38, %v2397_v38  ;;  %v8835_v34 = vld [vmem:[#allocation7 + $0x568] sm:$0xff]   ;;  %v8841_v50 = vld [vmem:[#allocation7 + $0x520] sm:$0xff]   ;;  %v8854_v38 = vld [vmem:[#allocation7 + $0x4f8] sm:$0xff]  }
 0x31a   :  { %8065 = vmatpush3.bf16.msra.mxu1 %v8812_v6  ;;  %v1633_v51 = vmax.f32 %v1261_v8, %v1467_v37  ;;  %v8825_v6 = vld [vmem:[#allocation7 + $0x400] sm:$0xff]   ;;  %v8846_v63 = vld [vmem:[#allocation7 + $0x3c8] sm:$0xff]   ;;  %v8847_v8 = vld [vmem:[#allocation7 + $0x550] sm:$0xff]  }
 0x31b   :  { %8129 = vmatpush3.bf16.msra.mxu0 %v8813_v26  ;;  %8066 = vmatprep.subr.bf16.mxu1 %v8814_v22  ;;  %v8828_v26 = vld [vmem:[#allocation7 + $0x3b0] sm:$0xff]   ;;  %v8829_v22 = vld [vmem:[#allocation7 + $0x538] sm:$0xff]   ;;  %v8839_v37 = vld [vmem:[#allocation7 + $0x560] sm:$0xff]  }
 0x31c   :  { %8130 = vmatprep.subr.bf16.mxu0 %v8815_v19  ;;  %v2347_v31 = vmax.f32 %v1633_v51, %v2291_v16  ;;  %v8848_v16 = vld [vmem:[#allocation7 + $0x388] sm:$0xff]   ;;  %v8850_v51 = vld [vmem:[#allocation7 + $0x3c0] sm:$0xff]  }
 0x31e   :  { %8067 = vmatpush3.bf16.msra.mxu1 %v8816_v18  ;;  %v2403_v49 = vmax.f32 %v2347_v31, 0.0  ;;  %v8837_v18 = vld [vmem:[#allocation7 + $0x528] sm:$0xff]   ;;  %v8855_v31 = vld [vmem:[#allocation7 + $0x540] sm:$0xff]  }
 0x31f   :  { %8131 = vmatpush3.bf16.msra.mxu0 %v8817_v35  ;;  %8068 = vmatprep.subr.bf16.mxu1 %v8818_v57  ;;  %v8842_v35 = vld [vmem:[#allocation7 + $0x3d0] sm:$0xff]   ;;  %v8843_v57 = vld [vmem:[#allocation7 + $0x558] sm:$0xff]  }
 0x320   :  { %8132 = vmatprep.subr.bf16.mxu0 %v8819_v23  ;;  %v2459_v19 = vpack.c.bf16 %v2403_v49, %v2403_v49  ;;  %v8845_v23 = vld [vmem:[#allocation7 + $0x518] sm:$0xff]   ;;  %v11822_v49 = vld [vmem:[#allocation42_spill] sm:$0xff] }
 0x322   :  { %8069 = vmatpush3.bf16.msra.mxu1 %v8820_v24  ;;  %v8849_v24 = vld [vmem:[#allocation7 + $0x510] sm:$0xff]  }
 0x323   :  { %8133 = vmatpush3.bf16.msra.mxu0 %v8821_v46  ;;  %8098 = vmatprep.subr.bf16.mxu1 %v8822_v54  ;;  %v8852_v46 = vld [vmem:[#allocation7 + $0x380] sm:$0xff]   ;;  %v2396_v54 = vmax.f32 %v10634_v33, 0.0  ;;  %v8859_v33 = vld [vmem:[#allocation7 + $0x678] sm:$0xff]  }
 0x324   :  { %8134 = vmatprep.subr.bf16.mxu0 %v8823_v43  ;;  %v8853_v43 = vld [vmem:[#allocation7 + $0x508] sm:$0xff]  }
 0x325   :  { %4199 = vmatmul.mubr.bf16.vlgmr.msra.gmra.mxu1 %v2448_v47  ;;  %v8856_v47 = vld [vmem:[#allocation7 + $0x4b8] sm:$0xff]  }
 0x326   :  { %8099 = vmatpush3.bf16.msra.mxu1 %v8824_v53  ;;  %4470 = vmatprep.mubr.bf16.mxu1 %v2453_v62  ;;  %v2401_v53 = vmax.f32 %v10706_v2, 0.0  ;;  %v2402_v62 = vmax.f32 %v10718_v17, 0.0  ;;  %v8861_v2 = vld [vmem:[#allocation7 + $0x638] sm:$0xff]   ;;  %v8864_v17 = vld [vmem:[#allocation7 + $0x4a8] sm:$0xff]  }
 0x327   :  { %8135 = vmatpush3.bf16.msra.mxu0 %v8825_v6  ;;  %8100 = vmatprep.subr.bf16.mxu1 %v8826_v9  ;;  %v2452_v6 = vpack.c.bf16 %v2396_v54, %v2396_v54  ;;  %v8857_v9 = vld [vmem:[#allocation7 + $0x500] sm:$0xff]   ;;  %v9156_v54 = vld [vmem:[#allocation6 + $0x2b0] sm:$0xff] }
 0x328   :  { %8164 = vmatprep.subr.bf16.mxu0 %v8827_v14  ;;  %v2457_v14 = vpack.c.bf16 %v2401_v53, %v2401_v53  ;;  %v11825_v53 = vld [vmem:[#allocation134_spill] sm:$0xff] }
 0x32a   :  { %4703 = vmatmul.mubr.bf16.vlgmr.msra.gmra.mxu0 %v2454_v1  ;;  %8101 = vmatpush3.bf16.msra.mxu1 %v8828_v26  ;;  %v2407_v26 = vmax.f32 %v11822_v49, 0.0  ;;  %v2458_v1 = vpack.c.bf16 %v2402_v62, %v2402_v62  ;;  %v9158_v62 = vld [vmem:[#allocation6 + $0x2a0] sm:$0xff]  ;;  %v8878_v49 = vld [vmem:[#allocation7 + $0x4c8] sm:$0xff]  }
 0x32b   :  { %8165 = vmatpush3.bf16.msra.mxu0 %v8829_v22  ;;  %4974 = vmatprep.mubr.bf16.mxu0 %v2459_v19  ;;  %v8860_v22 = vld [vmem:[#allocation7 + $0x4b0] sm:$0xff]  }
 0x32c   :  { %8102 = vmatprep.subr.bf16.mxu1 %v8830_v41  ;;  %8166 = vmatprep.subr.bf16.mxu0 %v8831_v60  ;;  %v8862_v41 = vld [vmem:[#allocation7 + $0x4e8] sm:$0xff]   ;;  %v8863_v60 = vld [vmem:[#allocation7 + $0x670] sm:$0xff]   ;;  %v2463_v19 = vpack.c.bf16 %v2407_v26, %v2407_v26 }
 0x32d   :  { %v11826_v26 = vld [vmem:[#allocation18_spill] sm:$0xff] }
 0x32e   :  { %8103 = vmatpush3.bf16.msra.mxu1 %v8832_v55  ;;  %v8865_v55 = vld [vmem:[#allocation7 + $0x630] sm:$0xff]  }
 0x32f   :  { %8167 = vmatpush3.bf16.msra.mxu0 %v8833_v61  ;;  %8104 = vmatprep.subr.bf16.mxu1 %v8834_v44  ;;  %v8866_v61 = vld [vmem:[#allocation7 + $0x4e0] sm:$0xff]   ;;  %v8867_v44 = vld [vmem:[#allocation7 + $0x668] sm:$0xff]  }
 0x330   :  { %8168 = vmatprep.subr.bf16.mxu0 %v8835_v34  ;;  %v8868_v34 = vld [vmem:[#allocation7 + $0x4a0] sm:$0xff]  }
 0x332   :  { %8105 = vmatpush3.bf16.msra.mxu1 %v8836_v20  ;;  %v8869_v20 = vld [vmem:[#allocation7 + $0x628] sm:$0xff]  }
 0x333   :  { %8169 = vmatpush3.bf16.msra.mxu0 %v8837_v18  ;;  %8106 = vmatprep.subr.bf16.mxu1 %v8838_v56  ;;  %v8870_v18 = vld [vmem:[#allocation7 + $0x4d8] sm:$0xff]  }
 0x334   :  { %8170 = vmatprep.subr.bf16.mxu0 %v8839_v37  ;;  %v9152_v56 = vld [vmem:[#allocation6 + $0x278] sm:$0xff] }
 0x335   :  { %v1772_v37 = vunpack.c.h.bf16 %v9152_v56  ;;  %v8881_v56 = vld [vmem:[#allocation7 + $0x610] sm:$0xff]  }
 0x336   :  { %8107 = vmatpush3.bf16.msra.mxu1 %v8840_v28  ;;  %v8871_v28 = vld [vmem:[#allocation7 + $0x660] sm:$0xff]  }
 0x337   :  { %8171 = vmatpush3.bf16.msra.mxu0 %v8841_v50  ;;  %8108 = vmatprep.subr.bf16.mxu1 %v8842_v35  ;;  %v9153_v50 = vld [vmem:[#allocation6 + $0xb8] sm:$0xff] }
 0x338   :  { %8172 = vmatprep.subr.bf16.mxu0 %v8843_v57  ;;  %v993_v35 = vunpack.c.h.bf16 %v9153_v50  ;;  %v9154_v57 = vld [vmem:[#allocation6 + $0x268] sm:$0xff] }
 0x339   :  { %v8883_v50 = vld [vmem:[#allocation7 + $0x648] sm:$0xff]  }
 0x33a   :  { %8109 = vmatpush3.bf16.msra.mxu1 %v8844_v45  ;;  %v1768_v45 = vunpack.c.h.bf16 %v9154_v57 }
 0x33b   :  { %8173 = vmatpush3.bf16.msra.mxu0 %v8845_v23  ;;  %8110 = vmatprep.subr.bf16.mxu1 %v8846_v63  ;;  %v8872_v23 = vld [vmem:[#allocation7 + $0x498] sm:$0xff]   ;;  %v8873_v63 = vld [vmem:[#allocation7 + $0x620] sm:$0xff]  }
 0x33c   :  { %8174 = vmatprep.subr.bf16.mxu0 %v8847_v8  ;;  %v8874_v8 = vld [vmem:[#allocation7 + $0x4d0] sm:$0xff]  }
 0x33e   :  { %8111 = vmatpush3.bf16.msra.mxu1 %v8848_v16  ;;  %v9155_v16 = vld [vmem:[#allocation6 + $0xa8] sm:$0xff] }
 0x33f   :  { %8175 = vmatpush3.bf16.msra.mxu0 %v8849_v24  ;;  %8112 = vmatprep.subr.bf16.mxu1 %v8850_v51  ;;  %v989_v24 = vunpack.c.h.bf16 %v9155_v16  ;;  %v11823_v51 = vld [vmem:[#allocation37_spill] sm:$0xff] }
 0x340   :  { %8176 = vmatprep.subr.bf16.mxu0 %v8851_v30  ;;  %v2228_v30 = vadd.f32 %v11823_v51, %v1772_v37  ;;  %v8882_v37 = vld [vmem:[#allocation7 + $0x4c0] sm:$0xff]   ;;  %v8886_v51 = vld [vmem:[#allocation7 + $0x5f8] sm:$0xff]  }
 0x342   :  { %8113 = vmatpush3.bf16.msra.mxu1 %v8852_v46  ;;  %v8875_v46 = vld [vmem:[#allocation7 + $0x658] sm:$0xff]  }
 0x343   :  { %8177 = vmatpush3.bf16.msra.mxu0 %v8853_v43  ;;  %8142 = vmatprep.subr.bf16.mxu1 %v8854_v38  ;;  %v1786_v43 = vunpack.c.h.bf16 %v9156_v54  ;;  %v11824_v38 = vld [vmem:[#allocation71_spill] sm:$0xff] }
 0x344   :  { %8178 = vmatprep.subr.bf16.mxu0 %v8855_v31  ;;  %v1570_v31 = vadd.f32 %v11824_v38, %v993_v35  ;;  %v11830_v35 = vld [vmem:[#allocation19_spill] sm:$0xff] }
 0x345   :  { %4471 = vmatmul.mubr.bf16.vlgmr.msra.gmra.mxu1 %v2452_v6  ;;  %v8876_v6 = vld [vmem:[#allocation7 + $0x490] sm:$0xff]  }
 0x346   :  { %8143 = vmatpush3.bf16.msra.mxu1 %v8856_v47  ;;  %4742 = vmatprep.mubr.bf16.mxu1 %v2457_v14  ;;  %v2022_v47 = vadd.f32 %v11825_v53, %v1768_v45  ;;  %v1782_v14 = vunpack.c.h.bf16 %v9158_v62  ;;  %v8890_v53 = vld [vmem:[#allocation7 + $0x5f0] sm:$0xff]  }
 0x347   :  { %8179 = vmatpush3.bf16.msra.mxu0 %v8857_v9  ;;  %8144 = vmatprep.subr.bf16.mxu1 %v8858_v3  ;;  %v9157_v9 = vld [vmem:[#allocation6 + $0xf0] sm:$0xff] }
 0x348   :  { %8208 = vmatprep.subr.bf16.mxu0 %v8859_v33  ;;  %v1007_v3 = vunpack.c.h.bf16 %v9157_v9  ;;  %v8877_v33 = vld [vmem:[#allocation7 + $0x618] sm:$0xff]  }
 0x34a   :  { %4975 = vmatmul.mubr.bf16.vlgmr.msra.gmra.mxu0 %v2458_v1  ;;  %8145 = vmatpush3.bf16.msra.mxu1 %v8860_v22  ;;  %v1364_v22 = vadd.f32 %v11826_v26, %v989_v24  ;;  %v8879_v1 = vld [vmem:[#allocation7 + $0x650] sm:$0xff]   ;;  %v8885_v24 = vld [vmem:[#allocation7 + $0x608] sm:$0xff]  }
 0x34b   :  { %8209 = vmatpush3.bf16.msra.mxu0 %v8861_v2  ;;  %5246 = vmatprep.mubr.bf16.mxu0 %v2463_v19  ;;  %v2293_v2 = vmax.f32 %v2022_v47, %v2228_v30  ;;  %v11827_v19 = vld [vmem:[#allocation46_spill] sm:$0xff]  ;;  %v8887_v30 = vld [vmem:[#allocation7 + $0x640] sm:$0xff]  }
 0x34c   :  { %8146 = vmatprep.subr.bf16.mxu1 %v8862_v41  ;;  %8210 = vmatprep.subr.bf16.mxu0 %v8863_v60  ;;  %v9159_v41 = vld [vmem:[#allocation6 + $0xe0] sm:$0xff]  ;;  %v8894_v26 = vld [vmem:[#allocation7 + $0x5e8] sm:$0xff]  }
 0x34d   :  { %v1003_v60 = vunpack.c.h.bf16 %v9159_v41  ;;  %v11832_v47 = vld [vmem:[#allocation41_spill] sm:$0xff]  ;;  %v8897_v41 = vld [vmem:[#allocation7 + $0x730] sm:$0xff]  }
 0x34e   :  { %8147 = vmatpush3.bf16.msra.mxu1 %v8864_v17  ;;  %v2135_v17 = vadd.f32 %v11827_v19, %v1786_v43  ;;  %v8888_v43 = vld [vmem:[#allocation7 + $0x5b8] sm:$0xff]   ;;  %v8899_v19 = vld [vmem:[#allocation7 + $0x768] sm:$0xff]  }
 0x34f   :  { %8211 = vmatpush3.bf16.msra.mxu0 %v8865_v55  ;;  %8148 = vmatprep.subr.bf16.mxu1 %v8866_v61  ;;  %v1635_v55 = vmax.f32 %v1364_v22, %v1570_v31  ;;  %v8880_v61 = vld [vmem:[#allocation7 + $0x488] sm:$0xff]   ;;  %v1271_v57 = vadd.f32 %v11830_v35, %v1003_v60  ;;  %v8889_v31 = vld [vmem:[#allocation7 + $0x600] sm:$0xff]   ;;  %v8895_v22 = vld [vmem:[#allocation7 + $0x770] sm:$0xff]  }
 0x350   :  { %8212 = vmatprep.subr.bf16.mxu0 %v8867_v44  ;;  %v11828_v44 = vld [vmem:[#allocation84_spill] sm:$0xff]  ;;  %v8911_v35 = vld [vmem:[#allocation7 + $0x750] sm:$0xff]  }
 0x351   :  { %v8898_v60 = vld [vmem:[#allocation7 + $0x5e0] sm:$0xff]  }
 0x352   :  { %8149 = vmatpush3.bf16.msra.mxu1 %v8868_v34  ;;  %v1477_v34 = vadd.f32 %v11828_v44, %v1007_v3  ;;  %v8891_v3 = vld [vmem:[#allocation7 + $0x778] sm:$0xff]   ;;  %v8903_v44 = vld [vmem:[#allocation7 + $0x760] sm:$0xff]  }
 0x353   :  { %8213 = vmatpush3.bf16.msra.mxu0 %v8869_v20  ;;  %8150 = vmatprep.subr.bf16.mxu1 %v8870_v18  ;;  %v11829_v20 = vld [vmem:[#allocation141_spill] sm:$0xff] }
 0x354   :  { %8214 = vmatprep.subr.bf16.mxu0 %v8871_v28  ;;  %v1929_v18 = vadd.f32 %v11829_v20, %v1782_v14  ;;  %v2349_v28 = vmax.f32 %v1635_v55, %v2293_v2  ;;  %v8892_v14 = vld [vmem:[#allocation7 + $0x5b0] sm:$0xff]   ;;  %v8901_v55 = vld [vmem:[#allocation7 + $0x728] sm:$0xff]   ;;  %v8905_v20 = vld [vmem:[#allocation7 + $0x720] sm:$0xff]  }
 0x356   :  { %8151 = vmatpush3.bf16.msra.mxu1 %v8872_v23  ;;  %v2299_v45 = vmax.f32 %v1929_v18, %v2135_v17  ;;  %v8884_v23 = vld [vmem:[#allocation7 + $0x480] sm:$0xff]   ;;  %v8906_v18 = vld [vmem:[#allocation7 + $0x5d0] sm:$0xff]  }
 0x357   :  { %8215 = vmatpush3.bf16.msra.mxu0 %v8873_v63  ;;  %8152 = vmatprep.subr.bf16.mxu1 %v8874_v8  ;;  %v1641_v63 = vmax.f32 %v1271_v57, %v1477_v34  ;;  %v11831_v8 = vld [vmem:[#allocation38_spill] sm:$0xff]  ;;  %v8900_v17 = vld [vmem:[#allocation7 + $0x5a0] sm:$0xff]   ;;  %v8904_v34 = vld [vmem:[#allocation7 + $0x598] sm:$0xff]  }
 0x358   :  { %8216 = vmatprep.subr.bf16.mxu0 %v8875_v46  ;;  %v2400_v16 = vmax.f32 %v11831_v8, 0.0  ;;  %v2405_v46 = vmax.f32 %v2349_v28, 0.0  ;;  %v8909_v28 = vld [vmem:[#allocation7 + $0x718] sm:$0xff]   ;;  %v8912_v57 = vld [vmem:[#allocation7 + $0x588] sm:$0xff]   ;;  %v8916_v8 = vld [vmem:[#allocation7 + $0x580] sm:$0xff]  }
 0x359   :  { %v2355_v54 = vmax.f32 %v1641_v63, %v2299_v45  ;;  %v8913_v45 = vld [vmem:[#allocation7 + $0x710] sm:$0xff]   ;;  %v8915_v63 = vld [vmem:[#allocation7 + $0x748] sm:$0xff]  }
 0x35a   :  { %8153 = vmatpush3.bf16.msra.mxu1 %v8876_v6  ;;  %v2456_v38 = vpack.c.bf16 %v2400_v16, %v2400_v16  ;;  %v2406_v6 = vmax.f32 %v11832_v47, 0.0  ;;  %v2461_v9 = vpack.c.bf16 %v2405_v46, %v2405_v46  ;;  %v11833_v16 = vld [vmem:[#allocation44_spill] sm:$0xff] }
 0x35b   :  { %8217 = vmatpush3.bf16.msra.mxu0 %v8877_v33  ;;  %8154 = vmatprep.subr.bf16.mxu1 %v8878_v49  ;;  %v2411_v62 = vmax.f32 %v2355_v54, 0.0  ;;  %v8893_v33 = vld [vmem:[#allocation7 + $0x738] sm:$0xff]   ;;  %v8919_v46 = vld [vmem:[#allocation7 + $0x740] sm:$0xff]  }
 0x35c   :  { %8218 = vmatprep.subr.bf16.mxu0 %v8879_v1  ;;  %v2462_v49 = vpack.c.bf16 %v2406_v6, %v2406_v6  ;;  %v8896_v1 = vld [vmem:[#allocation7 + $0x5a8] sm:$0xff]   ;;  %v11834_v54 = vld [vmem:[#allocation43_spill] sm:$0xff]  ;;  %v8921_v47 = vld [vmem:[#allocation7 + $0x700] sm:$0xff]  }
 0x35d   :  { %v2467_v2 = vpack.c.bf16 %v2411_v62, %v2411_v62  ;;  %v8922_v6 = vld [vmem:[#allocation7 + $0x6f0] sm:$0xff]  }
 0x35e   :  { %8155 = vmatpush3.bf16.msra.mxu1 %v8880_v61  ;;  %v8902_v61 = vld [vmem:[#allocation7 + $0x5d8] sm:$0xff]  }
 0x35f   :  { %8219 = vmatpush3.bf16.msra.mxu0 %v8881_v56  ;;  %8156 = vmatprep.subr.bf16.mxu1 %v8882_v37  ;;  %v8907_v56 = vld [vmem:[#allocation7 + $0x758] sm:$0xff]   ;;  %v8908_v37 = vld [vmem:[#allocation7 + $0x590] sm:$0xff]  }
 0x360   :  { %8220 = vmatprep.subr.bf16.mxu0 %v8883_v50  ;;  %v8910_v50 = vld [vmem:[#allocation7 + $0x5c8] sm:$0xff]  }
 0x362   :  { %8157 = vmatpush3.bf16.msra.mxu1 %v8884_v23  ;;  %v8914_v23 = vld [vmem:[#allocation7 + $0x5c0] sm:$0xff]  }
 0x363   :  { %8221 = vmatpush3.bf16.msra.mxu0 %v8885_v24  ;;  %8186 = vmatprep.subr.bf16.mxu1 %v8886_v51  ;;  %v2404_v24 = vmax.f32 %v11833_v16, 0.0  ;;  %v8917_v51 = vld [vmem:[#allocation7 + $0x708] sm:$0xff]   ;;  %v9161_v16 = vld [vmem:[#allocation6 + $0xf8] sm:$0xff] }
 0x364   :  { %8222 = vmatprep.subr.bf16.mxu0 %v8887_v30  ;;  %v8918_v30 = vld [vmem:[#allocation7 + $0x6f8] sm:$0xff]  }
 0x365   :  { %4743 = vmatmul.mubr.bf16.vlgmr.msra.gmra.mxu1 %v2456_v38  ;;  %v8920_v38 = vld [vmem:[#allocation7 + $0x6b8] sm:$0xff]  }
 0x366   :  { %8187 = vmatpush3.bf16.msra.mxu1 %v8888_v43  ;;  %5014 = vmatprep.mubr.bf16.mxu1 %v2461_v9  ;;  %v2409_v43 = vmax.f32 %v11834_v54, 0.0  ;;  %v11835_v9 = vld [vmem:[#allocation45_spill] sm:$0xff] }
 0x367   :  { %8223 = vmatpush3.bf16.msra.mxu0 %v8889_v31  ;;  %8188 = vmatprep.subr.bf16.mxu1 %v8890_v53  ;;  %v2460_v31 = vpack.c.bf16 %v2404_v24, %v2404_v24  ;;  %v11104_v53 = vpop.f32.mrf.mxu1  ;;  %v1009_v24 = vunpack.c.h.bf16 %v9161_v16  ;;  %v8937_v54 = vld [vmem:[#allocation7 + $0x820] sm:$0xff]  }
 0x368   :  { %8252 = vmatprep.subr.bf16.mxu0 %v8891_v3  ;;  %v2410_v3 = vmax.f32 %v11835_v9, 0.0  ;;  %v2465_v62 = vpack.c.bf16 %v2409_v43, %v2409_v43  ;;  %v8938_v43 = vld [vmem:[#allocation7 + $0x6d0] sm:$0xff]   ;;  %v8939_v9 = vld [vmem:[#allocation7 + $0x858] sm:$0xff]   ;;  %v8946_v16 = vld [vmem:[#allocation7 + $0x6c0] sm:$0xff]  }
 0x36a   :  { %5247 = vmatmul.mubr.bf16.vlgmr.msra.gmra.mxu0 %v2462_v49  ;;  %8189 = vmatpush3.bf16.msra.mxu1 %v8892_v14  ;;  %v8923_v14 = vld [vmem:[#allocation7 + $0x878] sm:$0xff]   ;;  %v2415_v49 = vmax.f32 %v10898_v27, 0.0 }
 0x36b   :  { %8253 = vmatpush3.bf16.msra.mxu0 %v8893_v33  ;;  %5518 = vmatprep.mubr.bf16.mxu0 %v2467_v2  ;;  %v8925_v2 = vld [vmem:[#allocation7 + $0x838] sm:$0xff]  }
 0x36c   :  { %8190 = vmatprep.subr.bf16.mxu1 %v8894_v26  ;;  %8254 = vmatprep.subr.bf16.mxu0 %v8895_v22  ;;  %v8924_v26 = vld [vmem:[#allocation7 + $0x6b0] sm:$0xff]  }
 0x36e   :  { %8191 = vmatpush3.bf16.msra.mxu1 %v8896_v1  ;;  %v2466_v1 = vpack.c.bf16 %v2410_v3, %v2410_v3  ;;  %v9164_v3 = vld [vmem:[#allocation6 + $0x2f0] sm:$0xff] }
 0x36f   :  { %8255 = vmatpush3.bf16.msra.mxu0 %v8897_v41  ;;  %8192 = vmatprep.subr.bf16.mxu1 %v8898_v60  ;;  %v8926_v60 = vld [vmem:[#allocation7 + $0x6e8] sm:$0xff]  }
 0x370   :  { %8256 = vmatprep.subr.bf16.mxu0 %v8899_v19  ;;  %v7960_v33 = vpop.f32.mrf.mxu1  ;;  %v8927_v19 = vld [vmem:[#allocation7 + $0x870] sm:$0xff]  }
 0x372   :  { %8193 = vmatpush3.bf16.msra.mxu1 %v8900_v17  ;;  %v7961_v22 = vpop.f32.mrf.mxu1 }
 0x373   :  { %8257 = vmatpush3.bf16.msra.mxu0 %v8901_v55  ;;  %8194 = vmatprep.subr.bf16.mxu1 %v8902_v61  ;;  %v11108_v41 = vadd.f32 %v7961_v22, %v7960_v33  ;;  %v2471_v61 = vpack.c.bf16 %v2415_v49, %v2415_v49  ;;  %v11838_v49 = vld [vmem:[#allocation142_spill] sm:$0xff] }
 0x374   :  { %8258 = vmatprep.subr.bf16.mxu0 %v8903_v44  ;;  %v7963_v17 = vpop.f32.mrf.mxu1  ;;  %v8928_v44 = vld [vmem:[#allocation7 + $0x6a8] sm:$0xff]   ;;  %v8940_v22 = vld [vmem:[#allocation7 + $0x690] sm:$0xff]  }
 0x375   :  { %v8004_v55 = vpop.f32.mrf.mxu0  ;;  %v8941_v17 = vld [vmem:[#allocation7 + $0x818] sm:$0xff]  }
 0x376   :  { %8195 = vmatpush3.bf16.msra.mxu1 %v8904_v34  ;;  %v7964_v27 = vpop.f32.mrf.mxu1 }
 0x377   :  { %8259 = vmatpush3.bf16.msra.mxu0 %v8905_v20  ;;  %8196 = vmatprep.subr.bf16.mxu1 %v8906_v18  ;;  %v8005_v34 = vpop.f32.mrf.mxu0  ;;  %v8929_v20 = vld [vmem:[#allocation7 + $0x830] sm:$0xff]   ;;  %v8930_v18 = vld [vmem:[#allocation7 + $0x6e0] sm:$0xff]  }
 0x378   :  { %8260 = vmatprep.subr.bf16.mxu0 %v8907_v56  ;;  %v11110_v56 = vadd.f32 %v8005_v34, %v8004_v55  ;;  %v8942_v55 = vld [vmem:[#allocation7 + $0x6c8] sm:$0xff]   ;;  %v8943_v34 = vld [vmem:[#allocation7 + $0x850] sm:$0xff]  }
 0x37a   :  { %8197 = vmatpush3.bf16.msra.mxu1 %v8908_v37  ;;  %v8931_v37 = vld [vmem:[#allocation7 + $0x868] sm:$0xff]  }
 0x37b   :  { %8261 = vmatpush3.bf16.msra.mxu0 %v8909_v28  ;;  %8198 = vmatprep.subr.bf16.mxu1 %v8910_v50  ;;  %v8007_v28 = vpop.f32.mrf.mxu0  ;;  %v8932_v50 = vld [vmem:[#allocation7 + $0x6a0] sm:$0xff]  }
 0x37c   :  { %8262 = vmatprep.subr.bf16.mxu0 %v8911_v35 }
 0x37d   :  { %v8008_v35 = vpop.f32.mrf.mxu0 }
 0x37e   :  { %8199 = vmatpush3.bf16.msra.mxu1 %v8912_v57  ;;  %v8933_v57 = vld [vmem:[#allocation7 + $0x828] sm:$0xff]  }
 0x37f   :  { %8263 = vmatpush3.bf16.msra.mxu0 %v8913_v45  ;;  %8200 = vmatprep.subr.bf16.mxu1 %v8914_v23  ;;  %v8934_v45 = vld [vmem:[#allocation7 + $0x6d8] sm:$0xff]   ;;  %v8944_v35 = vld [vmem:[#allocation7 + $0x688] sm:$0xff]  }
 0x380   :  { %8264 = vmatprep.subr.bf16.mxu0 %v8915_v63  ;;  %v9160_v23 = vld [vmem:[#allocation6 + $0x2b8] sm:$0xff] }
 0x381   :  { %v1788_v63 = vunpack.c.h.bf16 %v9160_v23  ;;  %v11842_v23 = vld [vmem:[#allocation33_spill] sm:$0xff] }
 0x382   :  { %8201 = vmatpush3.bf16.msra.mxu1 %v8916_v8  ;;  %v8935_v8 = vld [vmem:[#allocation7 + $0x860] sm:$0xff]  }
 0x383   :  { %8265 = vmatpush3.bf16.msra.mxu0 %v8917_v51  ;;  %8230 = vmatprep.subr.bf16.mxu1 %v8918_v30  ;;  %v9162_v51 = vld [vmem:[#allocation6 + $0x2a8] sm:$0xff] }
 0x384   :  { %8266 = vmatprep.subr.bf16.mxu0 %v8919_v46  ;;  %v1784_v30 = vunpack.c.h.bf16 %v9162_v51  ;;  %v8936_v46 = vld [vmem:[#allocation7 + $0x698] sm:$0xff]   ;;  %v8947_v51 = vld [vmem:[#allocation7 + $0x848] sm:$0xff]  }
 0x385   :  { %5015 = vmatmul.mubr.bf16.vlgmr.msra.gmra.mxu1 %v2460_v31 }
 0x386   :  { %8231 = vmatpush3.bf16.msra.mxu1 %v8920_v38  ;;  %5286 = vmatprep.mubr.bf16.mxu1 %v2465_v62  ;;  %v9163_v38 = vld [vmem:[#allocation6 + $0xe8] sm:$0xff]  ;;  %v1802_v62 = vunpack.c.h.bf16 %v9164_v3  ;;  %v8951_v3 = vld [vmem:[#allocation7 + $0x840] sm:$0xff]  }
 0x387   :  { %8267 = vmatpush3.bf16.msra.mxu0 %v8921_v47  ;;  %8232 = vmatprep.subr.bf16.mxu1 %v8922_v6  ;;  %v1005_v31 = vunpack.c.h.bf16 %v9163_v38  ;;  %v11836_v47 = vld [vmem:[#allocation39_spill] sm:$0xff] }
 0x388   :  { %8296 = vmatprep.subr.bf16.mxu0 %v8923_v14  ;;  %v2238_v6 = vadd.f32 %v11836_v47, %v1788_v63  ;;  %v11837_v14 = vld [vmem:[#allocation85_spill] sm:$0xff] }
 0x389   :  { %v1580_v33 = vadd.f32 %v11837_v14, %v1009_v24 }
 0x38a   :  { %5519 = vmatmul.mubr.bf16.vlgmr.msra.gmra.mxu0 %v2466_v1  ;;  %8233 = vmatpush3.bf16.msra.mxu1 %v8924_v26  ;;  %v2032_v26 = vadd.f32 %v11838_v49, %v1784_v30  ;;  %v11843_v30 = vld [vmem:[#allocation21_spill] sm:$0xff] }
 0x38b   :  { %8297 = vmatpush3.bf16.msra.mxu0 %v8925_v2  ;;  %5790 = vmatprep.mubr.bf16.mxu0 %v2471_v61  ;;  %v9165_v2 = vld [vmem:[#allocation6 + $0x130] sm:$0xff]  ;;  %v11839_v61 = vld [vmem:[#allocation20_spill] sm:$0xff] }
 0x38c   :  { %8234 = vmatprep.subr.bf16.mxu1 %v8926_v60  ;;  %8298 = vmatprep.subr.bf16.mxu0 %v8927_v19  ;;  %v1023_v1 = vunpack.c.h.bf16 %v9165_v2  ;;  %v9166_v60 = vld [vmem:[#allocation6 + $0x2e0] sm:$0xff]  ;;  %v2301_v27 = vmax.f32 %v2032_v26, %v2238_v6  ;;  %v8949_v6 = vld [vmem:[#allocation7 + $0x808] sm:$0xff]  }
 0x38d   :  { %v1798_v19 = vunpack.c.h.bf16 %v9166_v60  ;;  %v8953_v26 = vld [vmem:[#allocation7 + $0x800] sm:$0xff]   ;;  %v11845_v2 = vld [vmem:[#allocation50_spill] sm:$0xff] }
 0x38e   :  { %8235 = vmatpush3.bf16.msra.mxu1 %v8928_v44  ;;  %v1374_v44 = vadd.f32 %v11839_v61, %v1005_v31  ;;  %v11844_v31 = vld [vmem:[#allocation40_spill] sm:$0xff]  ;;  %v8956_v61 = vld [vmem:[#allocation7 + $0x7b0] sm:$0xff]  }
 0x38f   :  { %8299 = vmatpush3.bf16.msra.mxu0 %v8929_v20  ;;  %8236 = vmatprep.subr.bf16.mxu1 %v8930_v18  ;;  %v9167_v20 = vld [vmem:[#allocation6 + $0x120] sm:$0xff]  ;;  %v1939_v63 = vadd.f32 %v11842_v23, %v1798_v19  ;;  %v2408_v47 = vmax.f32 %v11844_v31, 0.0  ;;  %v8955_v19 = vld [vmem:[#allocation7 + $0x978] sm:$0xff]  }
 0x390   :  { %8300 = vmatprep.subr.bf16.mxu0 %v8931_v37  ;;  %v1019_v18 = vunpack.c.h.bf16 %v9167_v20  ;;  %v11840_v37 = vld [vmem:[#allocation48_spill] sm:$0xff] }
 0x391   :  { %v2145_v28 = vadd.f32 %v11840_v37, %v1802_v62  ;;  %v2464_v49 = vpack.c.bf16 %v2408_v47, %v2408_v47  ;;  %v8959_v37 = vld [vmem:[#allocation7 + $0x970] sm:$0xff]   ;;  %v8968_v31 = vld [vmem:[#allocation7 + $0x798] sm:$0xff]   ;;  %v8969_v47 = vld [vmem:[#allocation7 + $0x920] sm:$0xff]  }
 0x392   :  { %8237 = vmatpush3.bf16.msra.mxu1 %v8932_v50  ;;  %v1643_v50 = vmax.f32 %v1374_v44, %v1580_v33  ;;  %v8952_v33 = vld [vmem:[#allocation7 + $0x7b8] sm:$0xff]  }
 0x393   :  { %8301 = vmatpush3.bf16.msra.mxu0 %v8933_v57  ;;  %8238 = vmatprep.subr.bf16.mxu1 %v8934_v45  ;;  %v11841_v57 = vld [vmem:[#allocation98_spill] sm:$0xff] }
 0x394   :  { %8302 = vmatprep.subr.bf16.mxu0 %v8935_v8  ;;  %v1487_v45 = vadd.f32 %v11841_v57, %v1023_v1  ;;  %v8945_v8 = vld [vmem:[#allocation7 + $0x810] sm:$0xff]   ;;  %v2357_v24 = vmax.f32 %v1643_v50, %v2301_v27  ;;  %v2414_v1 = vmax.f32 %v11845_v2, 0.0  ;;  %v8957_v27 = vld [vmem:[#allocation7 + $0x938] sm:$0xff]   ;;  %v8979_v2 = vld [vmem:[#allocation7 + $0x948] sm:$0xff]  }
 0x396   :  { %8239 = vmatpush3.bf16.msra.mxu1 %v8936_v46  ;;  %v1281_v46 = vadd.f32 %v11843_v30, %v1019_v18  ;;  %v2413_v62 = vmax.f32 %v2357_v24, 0.0  ;;  %v8958_v18 = vld [vmem:[#allocation7 + $0x7e8] sm:$0xff]  }
 0x397   :  { %8303 = vmatpush3.bf16.msra.mxu0 %v8937_v54  ;;  %8240 = vmatprep.subr.bf16.mxu1 %v8938_v43  ;;  %v2307_v54 = vmax.f32 %v1939_v63, %v2145_v28  ;;  %v8948_v43 = vld [vmem:[#allocation7 + $0x680] sm:$0xff]  }
 0x398   :  { %8304 = vmatprep.subr.bf16.mxu0 %v8939_v9  ;;  %v1649_v38 = vmax.f32 %v1281_v46, %v1487_v45  ;;  %v8950_v9 = vld [vmem:[#allocation7 + $0x7f8] sm:$0xff]   ;;  %v2469_v60 = vpack.c.bf16 %v2413_v62, %v2413_v62  ;;  %v8960_v45 = vld [vmem:[#allocation7 + $0x7a8] sm:$0xff]   ;;  %v8964_v46 = vld [vmem:[#allocation7 + $0x7a0] sm:$0xff]  }
 0x399   :  { %v8973_v62 = vld [vmem:[#allocation7 + $0x918] sm:$0xff]  }
 0x39a   :  { %8241 = vmatpush3.bf16.msra.mxu1 %v8940_v22  ;;  %v2363_v14 = vmax.f32 %v1649_v38, %v2307_v54  ;;  %v8954_v22 = vld [vmem:[#allocation7 + $0x7f0] sm:$0xff]   ;;  %v8965_v54 = vld [vmem:[#allocation7 + $0x928] sm:$0xff]   ;;  %v8967_v38 = vld [vmem:[#allocation7 + $0x960] sm:$0xff]  }
 0x39b   :  { %8305 = vmatpush3.bf16.msra.mxu0 %v8941_v17  ;;  %8242 = vmatprep.subr.bf16.mxu1 %v8942_v55 }
 0x39c   :  { %8306 = vmatprep.subr.bf16.mxu0 %v8943_v34  ;;  %v2419_v55 = vmax.f32 %v2363_v14, 0.0  ;;  %v2470_v34 = vpack.c.bf16 %v2414_v1, %v2414_v1  ;;  %v8974_v14 = vld [vmem:[#allocation7 + $0x7c8] sm:$0xff]   ;;  %v8980_v1 = vld [vmem:[#allocation7 + $0x780] sm:$0xff]  }
 0x39e   :  { %8243 = vmatpush3.bf16.msra.mxu1 %v8944_v35  ;;  %v7982_v17 = vpop.f32.mrf.mxu1  ;;  %v2475_v35 = vpack.c.bf16 %v2419_v55, %v2419_v55  ;;  %v8982_v55 = vld [vmem:[#allocation7 + $0x8f8] sm:$0xff]  }
 0x39f   :  { %8307 = vmatpush3.bf16.msra.mxu0 %v8945_v8  ;;  %8244 = vmatprep.subr.bf16.mxu1 %v8946_v16  ;;  %v8961_v8 = vld [vmem:[#allocation7 + $0x930] sm:$0xff]   ;;  %v8962_v16 = vld [vmem:[#allocation7 + $0x7e0] sm:$0xff]  }
 0x3a0   :  { %8308 = vmatprep.subr.bf16.mxu0 %v8947_v51  ;;  %v7983_v44 = vpop.f32.mrf.mxu1  ;;  %v8963_v51 = vld [vmem:[#allocation7 + $0x968] sm:$0xff]  }
 0x3a1   :  { %v7984_v20 = vadd.f32 %v7983_v44, %v7982_v17  ;;  %v8981_v17 = vld [vmem:[#allocation7 + $0x908] sm:$0xff]   ;;  %v2417_v44 = vmax.f32 %v10903_v21, 0.0 }
 0x3a2   :  { %8245 = vmatpush3.bf16.msra.mxu1 %v8948_v43  ;;  %v7985_v28 = vpop.f32.mrf.mxu1  ;;  %v8966_v43 = vld [vmem:[#allocation7 + $0x7d8] sm:$0xff]  }
 0x3a3   :  { %8309 = vmatpush3.bf16.msra.mxu0 %v8949_v6  ;;  %8274 = vmatprep.subr.bf16.mxu1 %v8950_v9  ;;  %v11123_v57 = vadd.f32 %v7984_v20, %v11108_v41  ;;  %v8970_v6 = vld [vmem:[#allocation7 + $0x7d0] sm:$0xff]   ;;  %v8971_v9 = vld [vmem:[#allocation7 + $0x958] sm:$0xff]   ;;  %v8985_v20 = vld [vmem:[#allocation7 + $0x900] sm:$0xff]   ;;  %v2473_v28 = vpack.c.bf16 %v2417_v44, %v2417_v44 }
 0x3a4   :  { %8310 = vmatprep.subr.bf16.mxu0 %v8951_v3  ;;  %v7986_v23 = vpop.f32.mrf.mxu1  ;;  %v8972_v3 = vld [vmem:[#allocation7 + $0x790] sm:$0xff]  }
 0x3a5   :  { %5287 = vmatmul.mubr.bf16.vlgmr.msra.gmra.mxu1 %v2464_v49  ;;  %v8976_v49 = vld [vmem:[#allocation7 + $0x788] sm:$0xff]   ;;  %v8988_v23 = vld [vmem:[#allocation7 + $0x8b0] sm:$0xff]  }
 0x3a6   :  { %8275 = vmatpush3.bf16.msra.mxu1 %v8952_v33  ;;  %5558 = vmatprep.mubr.bf16.mxu1 %v2469_v60  ;;  %v8975_v33 = vld [vmem:[#allocation7 + $0x950] sm:$0xff]  }
 0x3a7   :  { %8311 = vmatpush3.bf16.msra.mxu0 %v8953_v26  ;;  %8276 = vmatprep.subr.bf16.mxu1 %v8954_v22  ;;  %v8977_v26 = vld [vmem:[#allocation7 + $0x910] sm:$0xff]   ;;  %v8978_v22 = vld [vmem:[#allocation7 + $0x7c0] sm:$0xff]  }
 0x3a8   :  { %8340 = vmatprep.subr.bf16.mxu0 %v8955_v19  ;;  %v8048_v50 = vpop.f32.mrf.mxu0  ;;  %v11846_v60 = vld [vmem:[#allocation47_spill] sm:$0xff] }
 0x3a9   :  { %v2412_v19 = vmax.f32 %v11846_v60, 0.0  ;;  %v9002_v60 = vld [vmem:[#allocation7 + $0x8d0] sm:$0xff]  }
 0x3aa   :  { %5791 = vmatmul.mubr.bf16.vlgmr.msra.gmra.mxu0 %v2470_v34  ;;  %8277 = vmatpush3.bf16.msra.mxu1 %v8956_v61  ;;  %v8049_v63 = vpop.f32.mrf.mxu0  ;;  %v8983_v61 = vld [vmem:[#allocation7 + $0x940] sm:$0xff]  }
 0x3ab   :  { %8341 = vmatpush3.bf16.msra.mxu0 %v8957_v27  ;;  %6062 = vmatprep.mubr.bf16.mxu0 %v2475_v35  ;;  %v11125_v24 = vadd.f32 %v8049_v63, %v8048_v50  ;;  %v8984_v27 = vld [vmem:[#allocation7 + $0x8b8] sm:$0xff]   ;;  %v2468_v34 = vpack.c.bf16 %v2412_v19, %v2412_v19  ;;  %v9169_v19 = vld [vmem:[#allocation6 + $0x128] sm:$0xff] }
 0x3ac   :  { %8278 = vmatprep.subr.bf16.mxu1 %v8958_v18  ;;  %8342 = vmatprep.subr.bf16.mxu0 %v8959_v37  ;;  %v8051_v30 = vpop.f32.mrf.mxu0  ;;  %v8986_v18 = vld [vmem:[#allocation7 + $0x8f0] sm:$0xff]   ;;  %v2418_v37 = vmax.f32 %v10916_v11, 0.0  ;;  %v8987_v50 = vld [vmem:[#allocation7 + $0xa78] sm:$0xff]  }
 0x3ad   :  { %v8989_v63 = vld [vmem:[#allocation7 + $0xa38] sm:$0xff]   ;;  %v8991_v30 = vld [vmem:[#allocation7 + $0xa70] sm:$0xff]  }
 0x3ae   :  { %8279 = vmatpush3.bf16.msra.mxu1 %v8960_v45  ;;  %v8052_v41 = vpop.f32.mrf.mxu0  ;;  %v2423_v45 = vmax.f32 %v10968_v0, 0.0  ;;  %v8992_v0 = vld [vmem:[#allocation7 + $0x8a8] sm:$0xff]  }
 0x3af   :  { %8343 = vmatpush3.bf16.msra.mxu0 %v8961_v8  ;;  %8280 = vmatprep.subr.bf16.mxu1 %v8962_v16  ;;  %v2474_v8 = vpack.c.bf16 %v2418_v37, %v2418_v37  ;;  %v9006_v37 = vld [vmem:[#allocation7 + $0x8c8] sm:$0xff]  }
 0x3b0   :  { %8344 = vmatprep.subr.bf16.mxu0 %v8963_v51  ;;  %v8990_v51 = vld [vmem:[#allocation7 + $0x8e8] sm:$0xff]  }
 0x3b2   :  { %8281 = vmatpush3.bf16.msra.mxu1 %v8964_v46  ;;  %v2479_v46 = vpack.c.bf16 %v2423_v45, %v2423_v45  ;;  %v9171_v45 = vld [vmem:[#allocation6 + $0x160] sm:$0xff] }
 0x3b3   :  { %8345 = vmatpush3.bf16.msra.mxu0 %v8965_v54  ;;  %8282 = vmatprep.subr.bf16.mxu1 %v8966_v43 }
 0x3b4   :  { %8346 = vmatprep.subr.bf16.mxu0 %v8967_v38  ;;  %v8993_v38 = vld [vmem:[#allocation7 + $0xa30] sm:$0xff]  }
 0x3b6   :  { %8283 = vmatpush3.bf16.msra.mxu1 %v8968_v31  ;;  %v8994_v31 = vld [vmem:[#allocation7 + $0x8e0] sm:$0xff]  }
 0x3b7   :  { %8347 = vmatpush3.bf16.msra.mxu0 %v8969_v47  ;;  %8284 = vmatprep.subr.bf16.mxu1 %v8970_v6 }
 0x3b8   :  { %8348 = vmatprep.subr.bf16.mxu0 %v8971_v9  ;;  %v8995_v9 = vld [vmem:[#allocation7 + $0xa68] sm:$0xff]  }
 0x3ba   :  { %8285 = vmatpush3.bf16.msra.mxu1 %v8972_v3 }
 0x3bb   :  { %8349 = vmatpush3.bf16.msra.mxu0 %v8973_v62  ;;  %8286 = vmatprep.subr.bf16.mxu1 %v8974_v14  ;;  %v8997_v14 = vld [vmem:[#allocation7 + $0xa28] sm:$0xff]  }
 0x3bc   :  { %8350 = vmatprep.subr.bf16.mxu0 %v8975_v33  ;;  %v8998_v33 = vld [vmem:[#allocation7 + $0x8d8] sm:$0xff]  }
 0x3be   :  { %8287 = vmatpush3.bf16.msra.mxu1 %v8976_v49 }
 0x3bf   :  { %8351 = vmatpush3.bf16.msra.mxu0 %v8977_v26  ;;  %8288 = vmatprep.subr.bf16.mxu1 %v8978_v22  ;;  %v8999_v26 = vld [vmem:[#allocation7 + $0xa60] sm:$0xff]   ;;  %v9168_v22 = vld [vmem:[#allocation6 + $0x138] sm:$0xff] }
 0x3c0   :  { %8352 = vmatprep.subr.bf16.mxu0 %v8979_v2  ;;  %v1025_v2 = vunpack.c.h.bf16 %v9168_v22  ;;  %v9018_v22 = vld [vmem:[#allocation7 + $0x9f0] sm:$0xff]  }
 0x3c2   :  { %8289 = vmatpush3.bf16.msra.mxu1 %v8980_v1  ;;  %v9001_v1 = vld [vmem:[#allocation7 + $0xa20] sm:$0xff]  }
 0x3c3   :  { %8353 = vmatpush3.bf16.msra.mxu0 %v8981_v17  ;;  %8318 = vmatprep.subr.bf16.mxu1 %v8982_v55  ;;  %v1021_v17 = vunpack.c.h.bf16 %v9169_v19  ;;  %v9003_v55 = vld [vmem:[#allocation7 + $0xa58] sm:$0xff]  }
 0x3c4   :  { %8354 = vmatprep.subr.bf16.mxu0 %v8983_v61  ;;  %v11847_v61 = vld [vmem:[#allocation99_spill] sm:$0xff] }
 0x3c5   :  { %v8026_v35 = vpop.f32.mrf.mxu1  ;;  %5559 = vmatmul.mubr.bf16.vlgmr.msra.gmra.mxu1 %v2468_v34  ;;  %v1590_v44 = vadd.f32 %v11847_v61, %v1025_v2  ;;  %v9170_v34 = vld [vmem:[#allocation6 + $0x170] sm:$0xff]  ;;  %v2422_v2 = vmax.f32 %v10957_v10, 0.0 }
 0x3c6   :  { %8319 = vmatpush3.bf16.msra.mxu1 %v8984_v27  ;;  %5830 = vmatprep.mubr.bf16.mxu1 %v2473_v28  ;;  %v9004_v27 = vld [vmem:[#allocation7 + $0x890] sm:$0xff]  }
 0x3c7   :  { %8355 = vmatpush3.bf16.msra.mxu0 %v8985_v20  ;;  %v8027_v21 = vpop.f32.mrf.mxu1  ;;  %8320 = vmatprep.subr.bf16.mxu1 %v8986_v18  ;;  %v1039_v20 = vunpack.c.h.bf16 %v9170_v34  ;;  %v9005_v18 = vld [vmem:[#allocation7 + $0xa18] sm:$0xff]   ;;  %v11848_v28 = vld [vmem:[#allocation22_spill] sm:$0xff] }
 0x3c8   :  { %v8028_v16 = vadd.f32 %v8027_v21, %v8026_v35  ;;  %8384 = vmatprep.subr.bf16.mxu0 %v8987_v50  ;;  %v1384_v50 = vadd.f32 %v11848_v28, %v1021_v17  ;;  %v9007_v35 = vld [vmem:[#allocation7 + $0xa50] sm:$0xff]  }
 0x3c9   :  { %v8029_v11 = vpop.f32.mrf.mxu1  ;;  %v9020_v17 = vld [vmem:[#allocation7 + $0x9b0] sm:$0xff]  }
 0x3ca   :  { %v3929_v41 = vadd.f32 %v8028_v16, %v11110_v56  ;;  %v8092_v54 = vpop.f32.mrf.mxu0  ;;  %6063 = vmatmul.mubr.bf16.vlgmr.msra.gmra.mxu0 %v2474_v8  ;;  %8321 = vmatpush3.bf16.msra.mxu1 %v8988_v23  ;;  %v8996_v56 = vld [vmem:[#allocation7 + $0x8a0] sm:$0xff]   ;;  %v1035_v23 = vunpack.c.h.bf16 %v9171_v45  ;;  %v1651_v21 = vmax.f32 %v1384_v50, %v1590_v44  ;;  %v11849_v8 = vld [vmem:[#allocation114_spill] sm:$0xff]  ;;  %v11850_v11 = vmax.f32 %v10822_v12, %v10907_v4 }
 0x3cb   :  { %8385 = vmatpush3.bf16.msra.mxu0 %v8989_v63  ;;  %6334 = vmatprep.mubr.bf16.mxu0 %v2479_v46  ;;  %v8030_v43 = vpop.f32.mrf.mxu1  ;;  %v9008_v63 = vld [vmem:[#allocation7 + $0x888] sm:$0xff]   ;;  %v1497_v16 = vadd.f32 %v11849_v8, %v1039_v20  ;;  %v11853_v12 = vmax.f32 %v10933_v52, %v10993_v39  ;;  %v9021_v39 = vld [vmem:[#allocation7 + $0xb38] sm:$0xff]   ;;  %v9025_v50 = vld [vmem:[#allocation7 + $0xb30] sm:$0xff]  }
 0x3cc   :  { %v11133_v47 = vadd.f32 %v3929_v41, %v11123_v57  ;;  %v8093_v6 = vpop.f32.mrf.mxu0  ;;  %8322 = vmatprep.subr.bf16.mxu1 %v8990_v51  ;;  %8386 = vmatprep.subr.bf16.mxu0 %v8991_v30  ;;  %v9000_v57 = vld [vmem:[#allocation7 + $0x898] sm:$0xff]   ;;  %v9009_v51 = vld [vmem:[#allocation7 + $0xa10] sm:$0xff]   ;;  %v9010_v30 = vld [vmem:[#allocation7 + $0x8c0] sm:$0xff]   ;;  %v2365_v46 = vmax.f32 %v1651_v21, %v11850_v11 }
 0x3cd   :  { %v11135_v3 = vadd.f32 %v8093_v6, %v8092_v54  ;;  %v9011_v41 = vld [vmem:[#allocation7 + $0xa48] sm:$0xff]   ;;  %v11851_v54 = vld [vmem:[#allocation23_spill] sm:$0xff]  ;;  %v9012_v43 = vld [vmem:[#allocation7 + $0x880] sm:$0xff]  }
 0x3ce   :  { %v8095_v62 = vpop.f32.mrf.mxu0  ;;  %8323 = vmatpush3.bf16.msra.mxu1 %v8992_v0  ;;  %v1291_v0 = vadd.f32 %v11851_v54, %v1035_v23  ;;  %v9022_v44 = vld [vmem:[#allocation7 + $0x9e8] sm:$0xff]   ;;  %v9031_v11 = vld [vmem:[#allocation7 + $0xb60] sm:$0xff]   ;;  %v9035_v54 = vld [vmem:[#allocation7 + $0xb58] sm:$0xff]  }
 0x3cf   :  { %8387 = vmatpush3.bf16.msra.mxu0 %v8993_v38  ;;  %8324 = vmatprep.subr.bf16.mxu1 %v8994_v31  ;;  %v11852_v31 = vld [vmem:[#allocation52_spill] sm:$0xff]  ;;  %v9027_v21 = vld [vmem:[#allocation7 + $0xb68] sm:$0xff]  }
 0x3d0   :  { %v8096_v49 = vpop.f32.mrf.mxu0  ;;  %8388 = vmatprep.subr.bf16.mxu0 %v8995_v9  ;;  %v1657_v38 = vmax.f32 %v1291_v0, %v1497_v16  ;;  %v2416_v6 = vmax.f32 %v11852_v31, 0.0  ;;  %v9013_v9 = vld [vmem:[#allocation7 + $0xa08] sm:$0xff]   ;;  %v9014_v62 = vld [vmem:[#allocation7 + $0x9f8] sm:$0xff]   ;;  %v9036_v0 = vld [vmem:[#allocation7 + $0x990] sm:$0xff]  }
 0x3d1   :  { %v9029_v16 = vld [vmem:[#allocation7 + $0xb28] sm:$0xff]   ;;  %v9039_v31 = vld [vmem:[#allocation7 + $0xb50] sm:$0xff]  }
 0x3d2   :  { %8325 = vmatpush3.bf16.msra.mxu1 %v8996_v56  ;;  %v9015_v56 = vld [vmem:[#allocation7 + $0xa40] sm:$0xff]   ;;  %v2371_v4 = vmax.f32 %v1657_v38, %v11853_v12  ;;  %v2472_v49 = vpack.c.bf16 %v2416_v6, %v2416_v6  ;;  %v9038_v38 = vld [vmem:[#allocation7 + $0x9c8] sm:$0xff]   ;;  %v2420_v12 = vmax.f32 %v10921_v5, 0.0  ;;  %v9051_v5 = vld [vmem:[#allocation7 + $0xc78] sm:$0xff]  }
 0x3d3   :  { %8389 = vmatpush3.bf16.msra.mxu0 %v8997_v14  ;;  %8326 = vmatprep.subr.bf16.mxu1 %v8998_v33  ;;  %v2421_v14 = vmax.f32 %v2365_v46, 0.0  ;;  %v9016_v33 = vld [vmem:[#allocation7 + $0x9b8] sm:$0xff]   ;;  %v9040_v6 = vld [vmem:[#allocation7 + $0x988] sm:$0xff]  }
 0x3d4   :  { %8390 = vmatprep.subr.bf16.mxu0 %v8999_v26  ;;  %v9017_v26 = vld [vmem:[#allocation7 + $0xa00] sm:$0xff]   ;;  %v2427_v19 = vmax.f32 %v2371_v4, 0.0  ;;  %v9032_v46 = vld [vmem:[#allocation7 + $0x998] sm:$0xff]   ;;  %v9045_v4 = vld [vmem:[#allocation7 + $0xb08] sm:$0xff]  }
 0x3d6   :  { %8327 = vmatpush3.bf16.msra.mxu1 %v9000_v57  ;;  %v2477_v57 = vpack.c.bf16 %v2421_v14, %v2421_v14  ;;  %v2483_v10 = vpack.c.bf16 %v2427_v19, %v2427_v19  ;;  %v9044_v14 = vld [vmem:[#allocation7 + $0x980] sm:$0xff]  }
 0x3d7   :  { %8391 = vmatpush3.bf16.msra.mxu0 %v9001_v1  ;;  %8328 = vmatprep.subr.bf16.mxu1 %v9002_v60  ;;  %v9019_v1 = vld [vmem:[#allocation7 + $0xb78] sm:$0xff]  }
 0x3d8   :  { %8392 = vmatprep.subr.bf16.mxu0 %v9003_v55  ;;  %v2478_v55 = vpack.c.bf16 %v2422_v2, %v2422_v2  ;;  %v2476_v2 = vpack.c.bf16 %v2420_v12, %v2420_v12 }
 0x3da   :  { %8329 = vmatpush3.bf16.msra.mxu1 %v9004_v27  ;;  %v9023_v27 = vld [vmem:[#allocation7 + $0xb70] sm:$0xff]  }
 0x3db   :  { %8393 = vmatpush3.bf16.msra.mxu0 %v9005_v18  ;;  %8330 = vmatprep.subr.bf16.mxu1 %v9006_v37  ;;  %v9024_v37 = vld [vmem:[#allocation7 + $0x9a8] sm:$0xff]  }
 0x3dc   :  { %8394 = vmatprep.subr.bf16.mxu0 %v9007_v35  ;;  %v9026_v35 = vld [vmem:[#allocation7 + $0x9e0] sm:$0xff]  }
 0x3de   :  { %8331 = vmatpush3.bf16.msra.mxu1 %v9008_v63 }
 0x3df   :  { %8395 = vmatpush3.bf16.msra.mxu0 %v9009_v51  ;;  %8332 = vmatprep.subr.bf16.mxu1 %v9010_v30  ;;  %v9030_v51 = vld [vmem:[#allocation7 + $0x9d8] sm:$0xff]  }
 0x3e0   :  { %8396 = vmatprep.subr.bf16.mxu0 %v9011_v41  ;;  %v9034_v41 = vld [vmem:[#allocation7 + $0x9d0] sm:$0xff]  }
 0x3e2   :  { %8333 = vmatpush3.bf16.msra.mxu1 %v9012_v43  ;;  %v9037_v43 = vld [vmem:[#allocation7 + $0xb18] sm:$0xff]  }
 0x3e3   :  { %8397 = vmatpush3.bf16.msra.mxu0 %v9013_v9  ;;  %8362 = vmatprep.subr.bf16.mxu1 %v9014_v62  ;;  %v9041_v9 = vld [vmem:[#allocation7 + $0xb10] sm:$0xff]   ;;  %v9042_v62 = vld [vmem:[#allocation7 + $0x9c0] sm:$0xff]  }
 0x3e4   :  { %8398 = vmatprep.subr.bf16.mxu0 %v9015_v56  ;;  %v9043_v56 = vld [vmem:[#allocation7 + $0xb48] sm:$0xff]  }
 0x3e5   :  { %v8070_v60 = vpop.f32.mrf.mxu1  ;;  %5831 = vmatmul.mubr.bf16.vlgmr.msra.gmra.mxu1 %v2472_v49  ;;  %v9047_v49 = vld [vmem:[#allocation7 + $0xb40] sm:$0xff]  }
 0x3e6   :  { %8363 = vmatpush3.bf16.msra.mxu1 %v9016_v33  ;;  %6102 = vmatprep.mubr.bf16.mxu1 %v2477_v57  ;;  %v9046_v33 = vld [vmem:[#allocation7 + $0xaf8] sm:$0xff]   ;;  %v9049_v57 = vld [vmem:[#allocation7 + $0xb00] sm:$0xff]  }
 0x3e7   :  { %8399 = vmatpush3.bf16.msra.mxu0 %v9017_v26  ;;  %v8071_v52 = vpop.f32.mrf.mxu1  ;;  %8364 = vmatprep.subr.bf16.mxu1 %v9018_v22  ;;  %v2425_v26 = vmax.f32 %v10973_v59, 0.0  ;;  %v9048_v22 = vld [vmem:[#allocation7 + $0xab8] sm:$0xff]  }
 0x3e8   :  { %v8072_v61 = vadd.f32 %v8071_v52, %v8070_v60  ;;  %8428 = vmatprep.subr.bf16.mxu0 %v9019_v1  ;;  %v9050_v1 = vld [vmem:[#allocation7 + $0xaf0] sm:$0xff]   ;;  %v2426_v60 = vmax.f32 %v10989_v58, 0.0  ;;  %v2431_v52 = vmax.f32 %v11049_v36, 0.0  ;;  %v9056_v36 = vld [vmem:[#allocation7 + $0xaa8] sm:$0xff]  }
 0x3e9   :  { %v8073_v34 = vpop.f32.mrf.mxu1  ;;  %v2481_v19 = vpack.c.bf16 %v2425_v26, %v2425_v26  ;;  %v9070_v26 = vld [vmem:[#allocation7 + $0xac8] sm:$0xff]  }
 0x3ea   :  { %v4201_v20 = vadd.f32 %v8072_v61, %v11125_v24  ;;  %v8136_v18 = vpop.f32.mrf.mxu0  ;;  %6335 = vmatmul.mubr.bf16.vlgmr.msra.gmra.mxu0 %v2478_v55  ;;  %8365 = vmatpush3.bf16.msra.mxu1 %v9020_v17  ;;  %v9028_v24 = vld [vmem:[#allocation7 + $0x9a0] sm:$0xff]   ;;  %v9053_v55 = vld [vmem:[#allocation7 + $0xc38] sm:$0xff]   ;;  %v2482_v61 = vpack.c.bf16 %v2426_v60, %v2426_v60  ;;  %v9055_v34 = vld [vmem:[#allocation7 + $0xc70] sm:$0xff]  }
 0x3eb   :  { %8429 = vmatpush3.bf16.msra.mxu0 %v9021_v39  ;;  %6606 = vmatprep.mubr.bf16.mxu0 %v2483_v10  ;;  %v8074_v28 = vpop.f32.mrf.mxu1  ;;  %v9052_v39 = vld [vmem:[#allocation7 + $0xab0] sm:$0xff]   ;;  %v2487_v10 = vpack.c.bf16 %v2431_v52, %v2431_v52 }
 0x3ec   :  { %v11151_v45 = vadd.f32 %v11133_v47, %v4201_v20  ;;  %v8137_v23 = vpop.f32.mrf.mxu0  ;;  %8366 = vmatprep.subr.bf16.mxu1 %v9022_v44  ;;  %8430 = vmatprep.subr.bf16.mxu0 %v9023_v27  ;;  %v9033_v47 = vld [vmem:[#allocation7 + $0xb20] sm:$0xff]   ;;  %v9054_v27 = vld [vmem:[#allocation7 + $0xae8] sm:$0xff]   ;;  %v9057_v28 = vld [vmem:[#allocation7 + $0xc30] sm:$0xff]  }
 0x3ed   :  { %v11153_v63 = vadd.f32 %v8137_v23, %v8136_v18  ;;  %v11856_v52 = vld [vmem:[#allocation122_spill] sm:$0xff] }
 0x3ee   :  { %v8139_v8 = vpop.f32.mrf.mxu0  ;;  %8367 = vmatpush3.bf16.msra.mxu1 %v9024_v37 }
 0x3ef   :  { %8431 = vmatpush3.bf16.msra.mxu0 %v9025_v50  ;;  %8368 = vmatprep.subr.bf16.mxu1 %v9026_v35  ;;  %v9058_v50 = vld [vmem:[#allocation7 + $0xae0] sm:$0xff]  }
 0x3f0   :  { %v8140_v30 = vpop.f32.mrf.mxu0  ;;  %8432 = vmatprep.subr.bf16.mxu0 %v9027_v21  ;;  %v9059_v21 = vld [vmem:[#allocation7 + $0xc68] sm:$0xff]  }
 0x3f2   :  { %8369 = vmatpush3.bf16.msra.mxu1 %v9028_v24 }
 0x3f3   :  { %8433 = vmatpush3.bf16.msra.mxu0 %v9029_v16  ;;  %8370 = vmatprep.subr.bf16.mxu1 %v9030_v51  ;;  %v9061_v16 = vld [vmem:[#allocation7 + $0xc28] sm:$0xff]   ;;  %v9062_v51 = vld [vmem:[#allocation7 + $0xad8] sm:$0xff]  }
 0x3f4   :  { %8434 = vmatprep.subr.bf16.mxu0 %v9031_v11  ;;  %v9063_v11 = vld [vmem:[#allocation7 + $0xc60] sm:$0xff]  }
 0x3f6   :  { %8371 = vmatpush3.bf16.msra.mxu1 %v9032_v46  ;;  %v9172_v46 = vld [vmem:[#allocation6 + $0x178] sm:$0xff] }
 0x3f7   :  { %8435 = vmatpush3.bf16.msra.mxu0 %v9033_v47  ;;  %8372 = vmatprep.subr.bf16.mxu1 %v9034_v41  ;;  %v1041_v47 = vunpack.c.h.bf16 %v9172_v46  ;;  %v9065_v41 = vld [vmem:[#allocation7 + $0xc20] sm:$0xff]  }
 0x3f8   :  { %8436 = vmatprep.subr.bf16.mxu0 %v9035_v54  ;;  %v9066_v54 = vld [vmem:[#allocation7 + $0xad0] sm:$0xff]  }
 0x3fa   :  { %8373 = vmatpush3.bf16.msra.mxu1 %v9036_v0  ;;  %v9173_v0 = vld [vmem:[#allocation6 + $0x168] sm:$0xff] }
 0x3fb   :  { %8437 = vmatpush3.bf16.msra.mxu0 %v9037_v43  ;;  %8374 = vmatprep.subr.bf16.mxu1 %v9038_v38  ;;  %v1037_v43 = vunpack.c.h.bf16 %v9173_v0  ;;  %v9067_v38 = vld [vmem:[#allocation7 + $0xc58] sm:$0xff]  }
 0x3fc   :  { %8438 = vmatprep.subr.bf16.mxu0 %v9039_v31  ;;  %v9174_v31 = vld [vmem:[#allocation6 + $0x370] sm:$0xff] }
 0x3fe   :  { %8375 = vmatpush3.bf16.msra.mxu1 %v9040_v6  ;;  %v1834_v6 = vunpack.c.h.bf16 %v9174_v31 }
 0x3ff   :  { %8439 = vmatpush3.bf16.msra.mxu0 %v9041_v9  ;;  %8376 = vmatprep.subr.bf16.mxu1 %v9042_v62  ;;  %v11854_v9 = vld [vmem:[#allocation115_spill] sm:$0xff] }
 0x400   :  { %8440 = vmatprep.subr.bf16.mxu0 %v9043_v56  ;;  %v1600_v62 = vadd.f32 %v11854_v9, %v1041_v47  ;;  %v9068_v56 = vld [vmem:[#allocation7 + $0xa90] sm:$0xff]  }
 0x401   :  { %v9084_v47 = vld [vmem:[#allocation7 + $0xbb0] sm:$0xff]  }
 0x402   :  { %8377 = vmatpush3.bf16.msra.mxu1 %v9044_v14  ;;  %v9175_v14 = vld [vmem:[#allocation6 + $0x1b0] sm:$0xff] }
 0x403   :  { %8441 = vmatpush3.bf16.msra.mxu0 %v9045_v4  ;;  %8406 = vmatprep.subr.bf16.mxu1 %v9046_v33  ;;  %v1055_v12 = vunpack.c.h.bf16 %v9175_v14  ;;  %v9176_v4 = vld [vmem:[#allocation6 + $0x360] sm:$0xff]  ;;  %v9089_v14 = vld [vmem:[#allocation7 + $0xd30] sm:$0xff]  }
 0x404   :  { %8442 = vmatprep.subr.bf16.mxu0 %v9047_v49  ;;  %v1830_v33 = vunpack.c.h.bf16 %v9176_v4  ;;  %v9069_v49 = vld [vmem:[#allocation7 + $0xc18] sm:$0xff]  }
 0x405   :  { %v8114_v17 = vpop.f32.mrf.mxu1  ;;  %6103 = vmatmul.mubr.bf16.vlgmr.msra.gmra.mxu1 %v2476_v2 }
 0x406   :  { %8407 = vmatpush3.bf16.msra.mxu1 %v9048_v22  ;;  %6374 = vmatprep.mubr.bf16.mxu1 %v2481_v19  ;;  %v11855_v22 = vld [vmem:[#allocation24_spill] sm:$0xff]  ;;  %v2165_v19 = vadd.f32 %v11104_v53, %v1834_v6 }
 0x407   :  { %8443 = vmatpush3.bf16.msra.mxu0 %v9049_v57  ;;  %v8115_v59 = vpop.f32.mrf.mxu1  ;;  %8408 = vmatprep.subr.bf16.mxu1 %v9050_v1  ;;  %v1394_v2 = vadd.f32 %v11855_v22, %v1037_v43  ;;  %v9071_v57 = vld [vmem:[#allocation7 + $0xc50] sm:$0xff]   ;;  %v9177_v1 = vld [vmem:[#allocation6 + $0x1a0] sm:$0xff]  ;;  %v9086_v43 = vld [vmem:[#allocation7 + $0xbe8] sm:$0xff]  }
 0x408   :  { %v8116_v44 = vadd.f32 %v8115_v59, %v8114_v17  ;;  %8472 = vmatprep.subr.bf16.mxu0 %v9051_v5  ;;  %v1051_v60 = vunpack.c.h.bf16 %v9177_v1  ;;  %v9072_v17 = vld [vmem:[#allocation7 + $0xa88] sm:$0xff]   ;;  %v11857_v59 = vld [vmem:[#allocation180_spill] sm:$0xff] }
 0x409   :  { %v8117_v58 = vpop.f32.mrf.mxu1  ;;  %v1659_v5 = vmax.f32 %v1394_v2, %v1600_v62  ;;  %v9088_v62 = vld [vmem:[#allocation7 + $0xba8] sm:$0xff]  }
 0x40a   :  { %v4473_v20 = vadd.f32 %v8116_v44, %v11135_v3  ;;  %v8180_v18 = vpop.f32.mrf.mxu0  ;;  %6607 = vmatmul.mubr.bf16.vlgmr.msra.gmra.mxu0 %v2482_v61  ;;  %8409 = vmatpush3.bf16.msra.mxu1 %v9052_v39  ;;  %v9060_v3 = vld [vmem:[#allocation7 + $0xaa0] sm:$0xff]   ;;  %v1507_v39 = vadd.f32 %v11856_v52, %v1055_v12  ;;  %v9073_v61 = vld [vmem:[#allocation7 + $0xc10] sm:$0xff]   ;;  %v9075_v58 = vld [vmem:[#allocation7 + $0xc48] sm:$0xff]  }
 0x40b   :  { %8473 = vmatpush3.bf16.msra.mxu0 %v9053_v55  ;;  %6878 = vmatprep.mubr.bf16.mxu0 %v2487_v10  ;;  %v8118_v37 = vpop.f32.mrf.mxu1  ;;  %v1959_v55 = vadd.f32 %v11857_v59, %v1830_v33  ;;  %v9074_v44 = vld [vmem:[#allocation7 + $0xac0] sm:$0xff]   ;;  %v11859_v10 = vld [vmem:[#allocation35_spill] sm:$0xff]  ;;  %v9093_v2 = vld [vmem:[#allocation7 + $0xd28] sm:$0xff]  }
 0x40c   :  { %v11161_v35 = vadd.f32 %v11151_v45, %v4473_v20  ;;  %v8181_v23 = vpop.f32.mrf.mxu0  ;;  %8410 = vmatprep.subr.bf16.mxu1 %v9054_v27  ;;  %8474 = vmatprep.subr.bf16.mxu0 %v9055_v34  ;;  %v9064_v45 = vld [vmem:[#allocation7 + $0xa98] sm:$0xff]   ;;  %v11858_v27 = vmax.f32 %v10981_v15, %v10998_v7  ;;  %v1301_v20 = vadd.f32 %v11859_v10, %v1051_v60  ;;  %v2424_v37 = vmax.f32 %v10962_v13, 0.0  ;;  %v9090_v12 = vld [vmem:[#allocation7 + $0xbe0] sm:$0xff]   ;;  %v9100_v52 = vld [vmem:[#allocation7 + $0xb90] sm:$0xff]  }
 0x40d   :  { %v11163_v8 = vadd.f32 %v8181_v23, %v8180_v18  ;;  %v2323_v53 = vmax.f32 %v1959_v55, %v2165_v19  ;;  %v9076_v18 = vld [vmem:[#allocation7 + $0xa80] sm:$0xff]   ;;  %v9080_v15 = vld [vmem:[#allocation7 + $0xbb8] sm:$0xff]   ;;  %v9102_v59 = vld [vmem:[#allocation7 + $0xbc8] sm:$0xff]   ;;  %v2428_v10 = vmax.f32 %v11011_v42, 0.0 }
 0x40e   :  { %v8183_v24 = vpop.f32.mrf.mxu0  ;;  %8411 = vmatpush3.bf16.msra.mxu1 %v9056_v36  ;;  %v2373_v34 = vmax.f32 %v1659_v5, %v11858_v27  ;;  %v1665_v36 = vmax.f32 %v1301_v20, %v1507_v39  ;;  %v9079_v23 = vld [vmem:[#allocation7 + $0xc40] sm:$0xff]   ;;  %v2480_v7 = vpack.c.bf16 %v2424_v37, %v2424_v37  ;;  %v9083_v13 = vld [vmem:[#allocation7 + $0xd78] sm:$0xff]   ;;  %v9098_v5 = vld [vmem:[#allocation7 + $0xbd0] sm:$0xff]  }
 0x40f   :  { %8475 = vmatpush3.bf16.msra.mxu0 %v9057_v28  ;;  %8412 = vmatprep.subr.bf16.mxu1 %v9058_v50  ;;  %v9077_v28 = vld [vmem:[#allocation7 + $0xc08] sm:$0xff]   ;;  %v9078_v50 = vld [vmem:[#allocation7 + $0xbf8] sm:$0xff]   ;;  %v9095_v60 = vld [vmem:[#allocation7 + $0xd60] sm:$0xff]  }
 0x410   :  { %v8184_v30 = vpop.f32.mrf.mxu0  ;;  %8476 = vmatprep.subr.bf16.mxu0 %v9059_v21  ;;  %v2429_v21 = vmax.f32 %v2373_v34, 0.0  ;;  %v2379_v24 = vmax.f32 %v1665_v36, %v2323_v53  ;;  %v9096_v19 = vld [vmem:[#allocation7 + $0xb98] sm:$0xff]   ;;  %v9103_v55 = vld [vmem:[#allocation7 + $0xd50] sm:$0xff]   ;;  %v9106_v27 = vld [vmem:[#allocation7 + $0xbc0] sm:$0xff]   ;;  %v2433_v36 = vmax.f32 %v11060_v29, 0.0 }
 0x411   :  { %v9101_v39 = vld [vmem:[#allocation7 + $0xd18] sm:$0xff]   ;;  %v9107_v34 = vld [vmem:[#allocation7 + $0xd48] sm:$0xff]  }
 0x412   :  { %8413 = vmatpush3.bf16.msra.mxu1 %v9060_v3  ;;  %v9081_v3 = vld [vmem:[#allocation7 + $0xc00] sm:$0xff]   ;;  %v2485_v30 = vpack.c.bf16 %v2429_v21, %v2429_v21  ;;  %v2435_v46 = vmax.f32 %v2379_v24, 0.0  ;;  %v9109_v20 = vld [vmem:[#allocation7 + $0xd08] sm:$0xff]   ;;  %v9110_v53 = vld [vmem:[#allocation7 + $0xcf8] sm:$0xff]   ;;  %v2434_v21 = vmax.f32 %v11065_v32, 0.0  ;;  %v2489_v24 = vpack.c.bf16 %v2433_v36, %v2433_v36 }
 0x413   :  { %8477 = vmatpush3.bf16.msra.mxu0 %v9061_v16  ;;  %8414 = vmatprep.subr.bf16.mxu1 %v9062_v51  ;;  %v9082_v16 = vld [vmem:[#allocation7 + $0xbf0] sm:$0xff]   ;;  %v2430_v51 = vmax.f32 %v11031_v25, 0.0  ;;  %v9112_v37 = vld [vmem:[#allocation7 + $0xcb8] sm:$0xff]   ;;  %v9116_v29 = vld [vmem:[#allocation7 + $0xce8] sm:$0xff]  }
 0x414   :  { %8478 = vmatprep.subr.bf16.mxu0 %v9063_v11  ;;  %v2491_v25 = vpack.c.bf16 %v2435_v46, %v2435_v46  ;;  %v9117_v32 = vld [vmem:[#allocation7 + $0xca8] sm:$0xff]   ;;  %v9118_v46 = vld [vmem:[#allocation7 + $0xce0] sm:$0xff]  }
 0x415   :  { %v9141_v36 = vld [vmem:[#allocation7 + $0xd88] sm:$0xff]  }
 0x416   :  { %8415 = vmatpush3.bf16.msra.mxu1 %v9064_v45 }
 0x417   :  { %8479 = vmatpush3.bf16.msra.mxu0 %v9065_v41  ;;  %8416 = vmatprep.subr.bf16.mxu1 %v9066_v54  ;;  %v9085_v41 = vld [vmem:[#allocation7 + $0xd38] sm:$0xff]   ;;  %v2486_v54 = vpack.c.bf16 %v2430_v51, %v2430_v51 }
 0x418   :  { %8480 = vmatprep.subr.bf16.mxu0 %v9067_v38  ;;  %v9087_v38 = vld [vmem:[#allocation7 + $0xd70] sm:$0xff]  }
 0x41a   :  { %8417 = vmatpush3.bf16.msra.mxu1 %v9068_v56 }
 0x41b   :  { %8481 = vmatpush3.bf16.msra.mxu0 %v9069_v49  ;;  %8418 = vmatprep.subr.bf16.mxu1 %v9070_v26  ;;  %v9091_v49 = vld [vmem:[#allocation7 + $0xd68] sm:$0xff]  }
 0x41c   :  { %8482 = vmatprep.subr.bf16.mxu0 %v9071_v57  ;;  %v9094_v57 = vld [vmem:[#allocation7 + $0xbd8] sm:$0xff]  }
 0x41e   :  { %8419 = vmatpush3.bf16.msra.mxu1 %v9072_v17  ;;  %v9099_v17 = vld [vmem:[#allocation7 + $0xd58] sm:$0xff]  }
 0x41f   :  { %8483 = vmatpush3.bf16.msra.mxu0 %v9073_v61  ;;  %8420 = vmatprep.subr.bf16.mxu1 %v9074_v44  ;;  %v9104_v61 = vld [vmem:[#allocation7 + $0xb88] sm:$0xff]   ;;  %v9105_v44 = vld [vmem:[#allocation7 + $0xd10] sm:$0xff]  }
 0x420   :  { %8484 = vmatprep.subr.bf16.mxu0 %v9075_v58  ;;  %v9108_v58 = vld [vmem:[#allocation7 + $0xb80] sm:$0xff]  }
 0x422   :  { %8421 = vmatpush3.bf16.msra.mxu1 %v9076_v18  ;;  %v9111_v18 = vld [vmem:[#allocation7 + $0xd40] sm:$0xff]  }
 0x423   :  { %8485 = vmatpush3.bf16.msra.mxu0 %v9077_v28  ;;  %8450 = vmatprep.subr.bf16.mxu1 %v9078_v50  ;;  %v2484_v28 = vpack.c.bf16 %v2428_v10, %v2428_v10  ;;  %v9113_v50 = vld [vmem:[#allocation7 + $0xd00] sm:$0xff]  }
 0x424   :  { %8486 = vmatprep.subr.bf16.mxu0 %v9079_v23  ;;  %v9114_v23 = vld [vmem:[#allocation7 + $0xcf0] sm:$0xff]  }
 0x425   :  { %v8158_v11 = vpop.f32.mrf.mxu1  ;;  %6375 = vmatmul.mubr.bf16.vlgmr.msra.gmra.mxu1 %v2480_v7 }
 0x426   :  { %8451 = vmatpush3.bf16.msra.mxu1 %v9080_v15  ;;  %6646 = vmatprep.mubr.bf16.mxu1 %v2485_v30  ;;  %v9115_v15 = vld [vmem:[#allocation7 + $0xcb0] sm:$0xff]  }
 0x427   :  { %8487 = vmatpush3.bf16.msra.mxu0 %v9081_v3  ;;  %v8159_v45 = vpop.f32.mrf.mxu1  ;;  %8452 = vmatprep.subr.bf16.mxu1 %v9082_v16  ;;  %v2490_v3 = vpack.c.bf16 %v2434_v21, %v2434_v21 }
 0x428   :  { %v8160_v0 = vadd.f32 %v8159_v45, %v8158_v11  ;;  %8516 = vmatprep.subr.bf16.mxu0 %v9083_v13 }
 0x429   :  { %v8161_v31 = vpop.f32.mrf.mxu1 }
 0x42a   :  { %v4745_v6 = vadd.f32 %v8160_v0, %v11153_v63  ;;  %v8224_v9 = vpop.f32.mrf.mxu0  ;;  %6879 = vmatmul.mubr.bf16.vlgmr.msra.gmra.mxu0 %v2486_v54  ;;  %8453 = vmatpush3.bf16.msra.mxu1 %v9084_v47  ;;  %v9092_v63 = vld [vmem:[#allocation7 + $0xba0] sm:$0xff]   ;;  %v9122_v31 = vld [vmem:[#allocation7 + $0xcd0] sm:$0xff]  }
 0x42b   :  { %8517 = vmatpush3.bf16.msra.mxu0 %v9085_v41  ;;  %7150 = vmatprep.mubr.bf16.mxu0 %v2491_v25  ;;  %v8162_v56 = vpop.f32.mrf.mxu1  ;;  %v9119_v0 = vld [vmem:[#allocation7 + $0xca0] sm:$0xff]   ;;  %v9123_v25 = vld [vmem:[#allocation7 + $0xc90] sm:$0xff]  }
 0x42c   :  { %v11178_v4 = vadd.f32 %v11161_v35, %v4745_v6  ;;  %v8225_v33 = vpop.f32.mrf.mxu0  ;;  %8454 = vmatprep.subr.bf16.mxu1 %v9086_v43  ;;  %8518 = vmatprep.subr.bf16.mxu0 %v9087_v38  ;;  %v9097_v35 = vld [vmem:[#allocation7 + $0xd20] sm:$0xff]   ;;  %v9120_v43 = vld [vmem:[#allocation7 + $0xcd8] sm:$0xff]   ;;  %v9124_v6 = vld [vmem:[#allocation7 + $0xcc8] sm:$0xff]  }
 0x42d   :  { %v11180_v26 = vadd.f32 %v8225_v33, %v8224_v9  ;;  %v9125_v9 = vld [vmem:[#allocation7 + $0xc88] sm:$0xff]   ;;  %v9127_v56 = vld [vmem:[#allocation7 + $0xc80] sm:$0xff]   ;;  %v2437_v33 = vmax.f32 %v11072_v48, 0.0 }
 0x42e   :  { %v8227_v22 = vpop.f32.mrf.mxu0  ;;  %8455 = vmatpush3.bf16.msra.mxu1 %v9088_v62  ;;  %v9126_v62 = vld [vmem:[#allocation7 + $0xcc0] sm:$0xff]   ;;  %v9133_v48 = vld [vmem:[#allocation7 + $0xda8] sm:$0xff]  }
 0x42f   :  { %8519 = vmatpush3.bf16.msra.mxu0 %v9089_v14  ;;  %8456 = vmatprep.subr.bf16.mxu1 %v9090_v12  ;;  %v11860_v14 = vld [vmem:[#allocation127_spill] sm:$0xff] }
 0x430   :  { %v8228_v1 = vpop.f32.mrf.mxu0  ;;  %8520 = vmatprep.subr.bf16.mxu0 %v9091_v49  ;;  %v2432_v12 = vmax.f32 %v11860_v14, 0.0  ;;  %v9129_v49 = vld [vmem:[#allocation7 + $0xdb8] sm:$0xff]  }
 0x431   :  { %v9131_v1 = vld [vmem:[#allocation7 + $0xdb0] sm:$0xff]  }
 0x432   :  { %8457 = vmatpush3.bf16.msra.mxu1 %v9092_v63  ;;  %v2488_v22 = vpack.c.bf16 %v2432_v12, %v2432_v12  ;;  %v9130_v63 = vld [vmem:[#allocation7 + $0xdf0] sm:$0xff]  }
 0x433   :  { %8521 = vmatpush3.bf16.msra.mxu0 %v9093_v2  ;;  %8458 = vmatprep.subr.bf16.mxu1 %v9094_v57  ;;  %v2493_v2 = vpack.c.bf16 %v2437_v33, %v2437_v33 }
 0x434   :  { %8522 = vmatprep.subr.bf16.mxu0 %v9095_v60 }
 0x436   :  { %8459 = vmatpush3.bf16.msra.mxu1 %v9096_v19  ;;  %v9132_v19 = vld [vmem:[#allocation7 + $0xde8] sm:$0xff]  }
 0x437   :  { %8523 = vmatpush3.bf16.msra.mxu0 %v9097_v35  ;;  %8460 = vmatprep.subr.bf16.mxu1 %v9098_v5 }
 0x438   :  { %8524 = vmatprep.subr.bf16.mxu0 %v9099_v17 }
 0x43a   :  { %8461 = vmatpush3.bf16.msra.mxu1 %v9100_v52 }
 0x43b   :  { %8525 = vmatpush3.bf16.msra.mxu0 %v9101_v39  ;;  %8462 = vmatprep.subr.bf16.mxu1 %v9102_v59  ;;  %v9134_v59 = vld [vmem:[#allocation7 + $0xde0] sm:$0xff]  }
 0x43c   :  { %8526 = vmatprep.subr.bf16.mxu0 %v9103_v55 }
 0x43e   :  { %8463 = vmatpush3.bf16.msra.mxu1 %v9104_v61 }
 0x43f   :  { %8527 = vmatpush3.bf16.msra.mxu0 %v9105_v44  ;;  %8464 = vmatprep.subr.bf16.mxu1 %v9106_v27 }
 0x440   :  { %8528 = vmatprep.subr.bf16.mxu0 %v9107_v34  ;;  %v9135_v34 = vld [vmem:[#allocation7 + $0xda0] sm:$0xff]  }
 0x442   :  { %8465 = vmatpush3.bf16.msra.mxu1 %v9108_v58  ;;  %v9136_v58 = vld [vmem:[#allocation7 + $0xdd8] sm:$0xff]  }
 0x443   :  { %8529 = vmatpush3.bf16.msra.mxu0 %v9109_v20  ;;  %8494 = vmatprep.subr.bf16.mxu1 %v9110_v53  ;;  %v9137_v20 = vld [vmem:[#allocation7 + $0xd98] sm:$0xff]   ;;  %v9138_v53 = vld [vmem:[#allocation7 + $0xdd0] sm:$0xff]  }
 0x444   :  { %8530 = vmatprep.subr.bf16.mxu0 %v9111_v18  ;;  %v9140_v18 = vld [vmem:[#allocation7 + $0xdc8] sm:$0xff]  }
 0x445   :  { %v8202_v42 = vpop.f32.mrf.mxu1  ;;  %6647 = vmatmul.mubr.bf16.vlgmr.msra.gmra.mxu1 %v2484_v28  ;;  %v9143_v28 = vld [vmem:[#allocation7 + $0xd80] sm:$0xff]  }
 0x446   :  { %8495 = vmatpush3.bf16.msra.mxu1 %v9112_v37  ;;  %6918 = vmatprep.mubr.bf16.mxu1 %v2489_v24  ;;  %v9142_v37 = vld [vmem:[#allocation7 + $0xdc0] sm:$0xff]  }
 0x447   :  { %8531 = vmatpush3.bf16.msra.mxu0 %v9113_v50  ;;  %v8203_v7 = vpop.f32.mrf.mxu1  ;;  %8496 = vmatprep.subr.bf16.mxu1 %v9114_v23  ;;  %v2436_v50 = vmax.f32 %v11070_v40, 0.0 }
 0x448   :  { %v8204_v16 = vadd.f32 %v8203_v7, %v8202_v42 }
 0x449   :  { %v8205_v51 = vpop.f32.mrf.mxu1  ;;  %v2492_v23 = vpack.c.bf16 %v2436_v50, %v2436_v50 }
 0x44a   :  { %v5017_v30 = vadd.f32 %v8204_v16, %v11163_v8  ;;  %v8268_v13 = vpop.f32.mrf.mxu0  ;;  %7151 = vmatmul.mubr.bf16.vlgmr.msra.gmra.mxu0 %v2490_v3  ;;  %8497 = vmatpush3.bf16.msra.mxu1 %v9115_v15  ;;  %v9121_v8 = vld [vmem:[#allocation7 + $0xc98] sm:$0xff]  }
 0x44b   :  { %v8206_v11 = vpop.f32.mrf.mxu1  ;;  %8498 = vmatprep.subr.bf16.mxu1 %v9116_v29 }
 0x44c   :  { %v7202_v47 = vadd.f32 %v11178_v4, %v5017_v30  ;;  %v8269_v45 = vpop.f32.mrf.mxu0  ;;  %v9128_v4 = vld [vmem:[#allocation7 + $0xdf8] sm:$0xff]  }
 0x44d   :  { %v11187_v41 = vadd.f32 %v8269_v45, %v8268_v13 }
 0x44e   :  { %v8271_v54 = vpop.f32.mrf.mxu0  ;;  %8499 = vmatpush3.bf16.msra.mxu1 %v9117_v32 }
 0x44f   :  { %8500 = vmatprep.subr.bf16.mxu1 %v9118_v46 }
 0x450   :  { %v8272_v38 = vpop.f32.mrf.mxu0 }
 0x452   :  { %8501 = vmatpush3.bf16.msra.mxu1 %v9119_v0 }
 0x453   :  { %8502 = vmatprep.subr.bf16.mxu1 %v9120_v43 }
 0x456   :  { %8503 = vmatpush3.bf16.msra.mxu1 %v9121_v8 }
 0x457   :  { %8504 = vmatprep.subr.bf16.mxu1 %v9122_v31 }
 0x45a   :  { %8505 = vmatpush3.bf16.msra.mxu1 %v9123_v25 }
 0x45b   :  { %8506 = vmatprep.subr.bf16.mxu1 %v9124_v6 }
 0x45e   :  { %8507 = vmatpush3.bf16.msra.mxu1 %v9125_v9 }
 0x45f   :  { %8508 = vmatprep.subr.bf16.mxu1 %v9126_v62 }
 0x462   :  { %8509 = vmatpush3.bf16.msra.mxu1 %v9127_v56 }
 0x463   :  { %8538 = vmatprep.subr.bf16.mxu1 %v9128_v4 }
 0x465   :  { %v8246_v57 = vpop.f32.mrf.mxu1  ;;  %6919 = vmatmul.mubr.bf16.vlgmr.msra.gmra.mxu1 %v2488_v22 }
 0x466   :  { %8539 = vmatpush3.bf16.msra.mxu1 %v9129_v49  ;;  %7190 = vmatprep.mubr.bf16.mxu1 %v2493_v2 }
 0x467   :  { %v8247_v60 = vpop.f32.mrf.mxu1  ;;  %8540 = vmatprep.subr.bf16.mxu1 %v9130_v63 }
 0x468   :  { %v8248_v35 = vadd.f32 %v8247_v60, %v8246_v57 }
 0x469   :  { %v8249_v5 = vpop.f32.mrf.mxu1 }
 0x46a   :  { %v5289_v17 = vadd.f32 %v8248_v35, %v11180_v26  ;;  %v8312_v52 = vpop.f32.mrf.mxu0  ;;  %8541 = vmatpush3.bf16.msra.mxu1 %v9131_v1  ;;  %v9139_v26 = vld [vmem:[#allocation7 + $0xd90] sm:$0xff]  }
 0x46b   :  { %v8250_v39 = vpop.f32.mrf.mxu1  ;;  %8542 = vmatprep.subr.bf16.mxu1 %v9132_v19 }
 0x46c   :  { %v7203_v55 = vadd.f32 %v7202_v47, %v5289_v17  ;;  %v8313_v61 = vpop.f32.mrf.mxu0 }
 0x46d   :  { %v8314_v44 = vadd.f32 %v8313_v61, %v8312_v52 }
 0x46e   :  { %v8315_v27 = vpop.f32.mrf.mxu0  ;;  %8543 = vmatpush3.bf16.msra.mxu1 %v9133_v48 }
 0x46f   :  { %8544 = vmatprep.subr.bf16.mxu1 %v9134_v59 }
 0x470   :  { %v8316_v10 = vpop.f32.mrf.mxu0 }
 0x472   :  { %8545 = vmatpush3.bf16.msra.mxu1 %v9135_v34 }
 0x473   :  { %8546 = vmatprep.subr.bf16.mxu1 %v9136_v58 }
 0x476   :  { %8547 = vmatpush3.bf16.msra.mxu1 %v9137_v20 }
 0x477   :  { %8548 = vmatprep.subr.bf16.mxu1 %v9138_v53 }
 0x47a   :  { %8549 = vmatpush3.bf16.msra.mxu1 %v9139_v26 }
 0x47b   :  { %8550 = vmatprep.subr.bf16.mxu1 %v9140_v18 }
 0x47e   :  { %8551 = vmatpush3.bf16.msra.mxu1 %v9141_v36 }
 0x47f   :  { %8552 = vmatprep.subr.bf16.mxu1 %v9142_v37 }
 0x482   :  { %8553 = vmatpush3.bf16.msra.mxu1 %v9143_v28 }
 0x485   :  { %v8290_v21 = vpop.f32.mrf.mxu1  ;;  %7191 = vmatmul.mubr.bf16.vlgmr.msra.gmra.mxu1 %v2492_v23 }
 0x487   :  { %v8291_v24 = vpop.f32.mrf.mxu1 }
 0x488   :  { %v8292_v42 = vadd.f32 %v8291_v24, %v8290_v21 }
 0x489   :  { %v8293_v15 = vpop.f32.mrf.mxu1 }
 0x48a   :  { %v5561_v7 = vadd.f32 %v8292_v42, %v11187_v41  ;;  %v8356_v29 = vpop.f32.mrf.mxu0 }
 0x48b   :  { %v8294_v3 = vpop.f32.mrf.mxu1 }
 0x48c   :  { %v7204_v16 = vadd.f32 %v7203_v55, %v5561_v7  ;;  %v8357_v51 = vpop.f32.mrf.mxu0 }
 0x48d   :  { %v8358_v30 = vadd.f32 %v8357_v51, %v8356_v29  ;;  %v7821_v51 = vld [vmem:[#allocation9] ss:$0 sm:$0xff] }
 0x48e   :  { %v8359_v13 = vpop.f32.mrf.mxu0 }
 0x490   :  { %v8360_v32 = vpop.f32.mrf.mxu0 }
 0x4a5   :  { %v8334_v11 = vpop.f32.mrf.mxu1 }
 0x4a7   :  { %v8335_v46 = vpop.f32.mrf.mxu1 }
 0x4a8   :  { %v8336_v40 = vadd.f32 %v8335_v46, %v8334_v11 }
 0x4a9   :  { %v8337_v47 = vpop.f32.mrf.mxu1 }
 0x4aa   :  { %v5833_v45 = vadd.f32 %v8336_v40, %v8314_v44  ;;  %v8400_v54 = vpop.f32.mrf.mxu0 }
 0x4ab   :  { %v8338_v0 = vpop.f32.mrf.mxu1 }
 0x4ac   :  { %v7205_v43 = vadd.f32 %v7204_v16, %v5833_v45  ;;  %v8401_v38 = vpop.f32.mrf.mxu0 }
 0x4ad   :  { %v8402_v8 = vadd.f32 %v8401_v38, %v8400_v54 }
 0x4ae   :  { %v8403_v31 = vpop.f32.mrf.mxu0 }
 0x4b0   :  { %v8404_v25 = vpop.f32.mrf.mxu0 }
 0x4c5   :  { %v8378_v41 = vpop.f32.mrf.mxu1 }
 0x4c7   :  { %v8379_v6 = vpop.f32.mrf.mxu1 }
 0x4c8   :  { %v8380_v9 = vadd.f32 %v8379_v6, %v8378_v41 }
 0x4c9   :  { %v8381_v62 = vpop.f32.mrf.mxu1 }
 0x4ca   :  { %v6105_v56 = vadd.f32 %v8380_v9, %v8358_v30  ;;  %v8444_v14 = vpop.f32.mrf.mxu0 }
 0x4cb   :  { %v8382_v12 = vpop.f32.mrf.mxu1 }
 0x4cc   :  { %v7206_v4 = vadd.f32 %v7205_v43, %v6105_v56  ;;  %v8445_v33 = vpop.f32.mrf.mxu0 }
 0x4cd   :  { %v8446_v49 = vadd.f32 %v8445_v33, %v8444_v14 }
 0x4ce   :  { %v8447_v22 = vpop.f32.mrf.mxu0 }
 0x4d0   :  { %v8448_v63 = vpop.f32.mrf.mxu0 }
 0x4e5   :  { %v8422_v2 = vpop.f32.mrf.mxu1 }
 0x4e7   :  { %v8423_v57 = vpop.f32.mrf.mxu1 }
 0x4e8   :  { %v8424_v1 = vadd.f32 %v8423_v57, %v8422_v2 }
 0x4e9   :  { %v8425_v60 = vpop.f32.mrf.mxu1 }
 0x4ea   :  { %v6377_v19 = vadd.f32 %v8424_v1, %v8402_v8  ;;  %v8488_v35 = vpop.f32.mrf.mxu0 }
 0x4eb   :  { %v8426_v5 = vpop.f32.mrf.mxu1 }
 0x4ec   :  { %v7207_v17 = vadd.f32 %v7206_v4, %v6377_v19  ;;  %v8489_v52 = vpop.f32.mrf.mxu0 }
 0x4ed   :  { %v8490_v48 = vadd.f32 %v8489_v52, %v8488_v35 }
 0x4ee   :  { %v8491_v39 = vpop.f32.mrf.mxu0 }
 0x4f0   :  { %v8492_v59 = vpop.f32.mrf.mxu0 }
 0x505   :  { %v8466_v55 = vpop.f32.mrf.mxu1 }
 0x507   :  { %v8467_v61 = vpop.f32.mrf.mxu1 }
 0x508   :  { %v8468_v44 = vadd.f32 %v8467_v61, %v8466_v55 }
 0x509   :  { %v8469_v27 = vpop.f32.mrf.mxu1 }
 0x50a   :  { %v6649_v34 = vadd.f32 %v8468_v44, %v8446_v49  ;;  %v8532_v58 = vpop.f32.mrf.mxu0 }
 0x50b   :  { %v8470_v10 = vpop.f32.mrf.mxu1 }
 0x50c   :  { %v7208_v20 = vadd.f32 %v7207_v17, %v6649_v34  ;;  %v8533_v53 = vpop.f32.mrf.mxu0 }
 0x50d   :  { %v8534_v7 = vadd.f32 %v8533_v53, %v8532_v58 }
 0x50e   :  { %v8535_v26 = vpop.f32.mrf.mxu0 }
 0x510   :  { %v8536_v18 = vpop.f32.mrf.mxu0 }
 0x525   :  { %v8510_v36 = vpop.f32.mrf.mxu1 }
 0x527   :  { %v8511_v37 = vpop.f32.mrf.mxu1 }
 0x528   :  { %v8512_v28 = vadd.f32 %v8511_v37, %v8510_v36 }
 0x529   :  { %v8513_v50 = vpop.f32.mrf.mxu1 }
 0x52a   :  { %v6921_v23 = vadd.f32 %v8512_v28, %v8490_v48 }
 0x52b   :  { %v8514_v21 = vpop.f32.mrf.mxu1 }
 0x52c   :  { %v7209_v24 = vadd.f32 %v7208_v20, %v6921_v23 }
 0x545   :  { %v8554_v42 = vpop.f32.mrf.mxu1 }
 0x547   :  { %v8555_v15 = vpop.f32.mrf.mxu1 }
 0x548   :  { %v8556_v29 = vadd.f32 %v8555_v15, %v8554_v42 }
 0x549   :  { %v8557_v3 = vpop.f32.mrf.mxu1 }
 0x54a   :  { %v7193_v16 = vadd.f32 %v8556_v29, %v8534_v7 }
 0x54b   :  { %v8558_v30 = vpop.f32.mrf.mxu1 }
 0x54c   :  { %v7210_v13 = vadd.f32 %v7209_v24, %v7193_v16 }
 0x54e   :  { %v7218_v32 = vadd.f32 %v7821_v51, %v7210_v13 }
 0x550   :  { %7219 = vst [vmem:[%s11203_s6] sm:$0xff] %v7218_v32 }
 0x551   :  { %7224 = vsyncpa [#allocation3], 1 }
 0x552   :  { %7225 = vsyncpa [#allocation5], 1 }
 0x553   :  { %7226 = vsyncpa [#allocation8], 1 }

</bundles_post_ra>
